<compile_context>
chip_gen: v7x
topology: tpu7x:2x2x1
jax: 0.10.0
libtpu: 0.0.40
codegen_flags: <defaults>
</compile_context>

<pallas_src>
import jax
import jax.numpy as jnp
from jax.experimental import pallas as pl
from jax.experimental.pallas import tpu as pltpu

# ---------------------------------------------------------------------------
# Model dims (from the PyTorch module) + lane-padded dims
# ---------------------------------------------------------------------------
D_IN, D_H1, D_H2, D_H3, D_OUT = 100, 256, 512, 1024, 784
D_IN_PAD = 128          # 100 -> 128  (lane multiple, odd-K matmul removed)
D_OUT_PAD = 896         # 784 -> 896  (7 * 128, unmasked lane-dense stores)
TILE_B_DEFAULT = 256    # fills the 256-row MXU on v6e/v7x; fine on v5e too


def _round_up(n, m):
    return (n + m - 1) // m * m


# ---------------------------------------------------------------------------
# Pallas kernel: whole 4-layer MLP fused for one batch tile.
# Weights (bf16, ~3.2 MiB total) are passed as full blocks and stay resident
# in VMEM across batch tiles; activations are cast to bf16 at each dot with
# fp32 accumulation.
# ---------------------------------------------------------------------------
def generator_kernel(x_ref,
                     w1_ref, b1_ref,
                     w2_ref, b2_ref,
                     w3_ref, b3_ref,
                     w4_ref, b4_ref,
                     o_ref):
    x = x_ref[...].astype(jnp.bfloat16)                                  # (TB, 128)

    h = jnp.dot(x, w1_ref[...], preferred_element_type=jnp.float32)     # (TB, 256)
    h = jnp.maximum(h + b1_ref[...], 0.0)                               # ReLU

    h = jnp.dot(h.astype(jnp.bfloat16), w2_ref[...],
                preferred_element_type=jnp.float32)                      # (TB, 512)
    h = jnp.maximum(h + b2_ref[...], 0.0)                               # ReLU

    h = jnp.dot(h.astype(jnp.bfloat16), w3_ref[...],
                preferred_element_type=jnp.float32)                      # (TB, 1024)
    h = jnp.maximum(h + b3_ref[...], 0.0)                               # ReLU

    h = jnp.dot(h.astype(jnp.bfloat16), w4_ref[...],
                preferred_element_type=jnp.float32)                      # (TB, 896)
    o_ref[...] = jnp.tanh(h + b4_ref[...])                              # Tanh


# ---------------------------------------------------------------------------
# Wrapper: pads batch / feature dims, runs the fused kernel, slices back.
# ---------------------------------------------------------------------------
def generator_forward(x, params, *, tile_b=TILE_B_DEFAULT):
    """x: (B, 100) float32. Returns (B, 784) float32."""
    (w1, b1), (w2, b2), (w3, b3), (w4, b4) = params
    B = x.shape[0]

    # Adapt the batch tile: keep it a multiple of 8 (sublane) and never larger
    # than the (padded) batch so small batches don't waste a 256-row tile.
    tile_b = _round_up(max(8, tile_b), 8)
    tile_b = min(tile_b, _round_up(B, 8))
    b_pad = _round_up(B, tile_b)

    f32, bf16 = jnp.float32, jnp.bfloat16

    # Zero-pad batch and K (100 -> 128); zero rows of w1 make padding exact.
    x_p = jnp.zeros((b_pad, D_IN_PAD), f32).at[:B, :D_IN].set(x.astype(f32))
    w1_p = jnp.zeros((D_IN_PAD, D_H1), bf16).at[:D_IN, :].set(w1.astype(bf16))
    w2_p = w2.astype(bf16)
    w3_p = w3.astype(bf16)
    # Zero-pad last layer 784 -> 896 (extra columns come out as tanh(0)=0).
    w4_p = jnp.zeros((D_H3, D_OUT_PAD), bf16).at[:, :D_OUT].set(w4.astype(bf16))
    b1_p = b1.astype(f32)
    b2_p = b2.astype(f32)
    b3_p = b3.astype(f32)
    b4_p = jnp.zeros((1, D_OUT_PAD), f32).at[:, :D_OUT].set(b4.astype(f32))

    full = lambda i: (0, 0)  # weights/biases: same full block every grid step

    flops = 2 * b_pad * (D_IN_PAD * D_H1 + D_H1 * D_H2 +
                         D_H2 * D_H3 + D_H3 * D_OUT_PAD)
    weight_bytes = 2 * (D_IN_PAD * D_H1 + D_H1 * D_H2 +
                        D_H2 * D_H3 + D_H3 * D_OUT_PAD)          # bf16
    bias_bytes = 4 * (D_H1 + D_H2 + D_H3 + D_OUT_PAD)
    io_bytes = 4 * b_pad * (D_IN_PAD + D_OUT_PAD)
    cost = pl.CostEstimate(flops=flops,
                           transcendentals=b_pad * D_OUT_PAD,
                           bytes_accessed=weight_bytes + bias_bytes + io_bytes)

    out = pl.pallas_call(
        generator_kernel,
        out_shape=jax.ShapeDtypeStruct((b_pad, D_OUT_PAD), f32),
        grid_spec=pltpu.PrefetchScalarGridSpec(
            num_scalar_prefetch=0,
            grid=(b_pad // tile_b,),
            in_specs=[
                pl.BlockSpec((tile_b, D_IN_PAD), lambda i: (i, 0)),  # x tile
                pl.BlockSpec((D_IN_PAD, D_H1), full),                # w1
                pl.BlockSpec((1, D_H1), full),                       # b1
                pl.BlockSpec((D_H1, D_H2), full),                    # w2
                pl.BlockSpec((1, D_H2), full),                       # b2
                pl.BlockSpec((D_H2, D_H3), full),                    # w3
                pl.BlockSpec((1, D_H3), full),                       # b3
                pl.BlockSpec((D_H3, D_OUT_PAD), full),               # w4
                pl.BlockSpec((1, D_OUT_PAD), full),                  # b4
            ],
            out_specs=pl.BlockSpec((tile_b, D_OUT_PAD), lambda i: (i, 0)),
        ),
        compiler_params=pltpu.CompilerParams(
            dimension_semantics=("parallel",),
            vmem_limit_bytes=32 * 1024 * 1024,
        ),
        cost_estimate=cost,
    )(x_p, w1_p, b1_p, w2_p, b2_p, w3_p, b3_p, w4_p, b4_p)

    return out[:B, :D_OUT]


# ---------------------------------------------------------------------------
# Deterministic parameter init (Xavier-uniform weights, zero biases),
# matching nn.init.xavier_uniform_ / nn.init.constant_(bias, 0).
# ---------------------------------------------------------------------------
def init_params(key):
    dims = [D_IN, D_H1, D_H2, D_H3, D_OUT]
    params = []
    for i in range(4):
        fan_in, fan_out = dims[i], dims[i + 1]
        key, wk = jax.random.split(key)
        limit = (6.0 / (fan_in + fan_out)) ** 0.5
        w = jax.random.uniform(wk, (fan_in, fan_out), jnp.float32,
                               minval=-limit, maxval=limit)
        b = jnp.zeros((1, fan_out), jnp.float32)  # kept 2-D for TPU layout
        params.append((w, b))
    return params


# Pure-JAX fp32 reference for a sanity check.
def generator_ref(x, params):
    h = x
    for i, (w, b) in enumerate(params):
        h = h @ w + b
        h = jnp.maximum(h, 0.0) if i < 3 else jnp.tanh(h)
    return h


if __name__ == "__main__":
    key = jax.random.PRNGKey(0)
    pkey, xkey = jax.random.split(key)

    params = init_params(pkey)
    batch = 16
    x = jax.random.normal(xkey, (batch, D_IN), jnp.float32)  # latent noise z

    out = generator_forward(x, params)
    out = jax.block_until_ready(out)

    ref = generator_ref(x, params)
    assert out.shape == (batch, D_OUT)
    # bf16 weights/activations in the matmuls (fp32 accumulation) -> loosened
    # tolerance vs the pure-fp32 reference; output is tanh-bounded in [-1, 1].
    assert jnp.allclose(out, ref, atol=5e-2, rtol=5e-2), float(
        jnp.max(jnp.abs(out - ref)))
    assert bool(jnp.all(jnp.isfinite(out)))

    print("KERNEL_OK")
</pallas_src>

<mosaic_0001>
module attributes {stable_mosaic.version = 11 : i64} {
  func.func @generator_kernel(%arg0: i32, %arg1: memref<16x128xf32, #tpu.memory_space<vmem>>, %arg2: memref<128x256xbf16, #tpu.memory_space<vmem>>, %arg3: memref<1x256xf32, #tpu.memory_space<vmem>>, %arg4: memref<256x512xbf16, #tpu.memory_space<vmem>>, %arg5: memref<1x512xf32, #tpu.memory_space<vmem>>, %arg6: memref<512x1024xbf16, #tpu.memory_space<vmem>>, %arg7: memref<1x1024xf32, #tpu.memory_space<vmem>>, %arg8: memref<1024x896xbf16, #tpu.memory_space<vmem>>, %arg9: memref<1x896xf32, #tpu.memory_space<vmem>>, %arg10: memref<16x896xf32, #tpu.memory_space<vmem>>) attributes {dimension_semantics = [#tpu.dimension_semantics<parallel>], iteration_bounds = array<i64: 1>, scalar_prefetch = 0 : i64, scratch_operands = 0 : i64, tpu.core_type = #tpu.core_type<tc>, window_params = [{transform_indices = @transform_0, window_bounds = array<i64: 16, 128>}, {pipeline_mode = #tpu.pipeline_mode<synchronous>, transform_indices = @transform_1, window_bounds = array<i64: 128, 256>}, {pipeline_mode = #tpu.pipeline_mode<synchronous>, transform_indices = @transform_2, window_bounds = array<i64: 1, 256>}, {pipeline_mode = #tpu.pipeline_mode<synchronous>, transform_indices = @transform_3, window_bounds = array<i64: 256, 512>}, {pipeline_mode = #tpu.pipeline_mode<synchronous>, transform_indices = @transform_4, window_bounds = array<i64: 1, 512>}, {pipeline_mode = #tpu.pipeline_mode<synchronous>, transform_indices = @transform_5, window_bounds = array<i64: 512, 1024>}, {pipeline_mode = #tpu.pipeline_mode<synchronous>, transform_indices = @transform_6, window_bounds = array<i64: 1, 1024>}, {pipeline_mode = #tpu.pipeline_mode<synchronous>, transform_indices = @transform_7, window_bounds = array<i64: 1024, 896>}, {pipeline_mode = #tpu.pipeline_mode<synchronous>, transform_indices = @transform_8, window_bounds = array<i64: 1, 896>}, {transform_indices = @transform_9, window_bounds = array<i64: 16, 896>}]} {
    %c0 = arith.constant 0 : index
    %c0_0 = arith.constant 0 : index
    %0 = vector.load %arg1[%c0, %c0_0] : memref<16x128xf32, #tpu.memory_space<vmem>>, vector<16x128xf32>
    %1 = arith.truncf %0 : vector<16x128xf32> to vector<16x128xbf16>
    %c0_1 = arith.constant 0 : index
    %c0_2 = arith.constant 0 : index
    %2 = vector.load %arg2[%c0_1, %c0_2] : memref<128x256xbf16, #tpu.memory_space<vmem>>, vector<128x256xbf16>
    %cst = arith.constant dense<0.000000e+00> : vector<16x256xf32>
    %3 = tpu.matmul %1, %2, %cst {dimension_numbers = #tpu.dot_dimension_numbers<[1], [0], [0], [1], [0, 0, 1, 1], [], []>} : vector<16x128xbf16>, vector<128x256xbf16>, vector<16x256xf32> -> vector<16x256xf32>
    %c0_3 = arith.constant 0 : index
    %c0_4 = arith.constant 0 : index
    %4 = vector.load %arg3[%c0_3, %c0_4] : memref<1x256xf32, #tpu.memory_space<vmem>>, vector<1x256xf32>
    %5 = vector.broadcast %4 : vector<1x256xf32> to vector<16x256xf32>
    %6 = arith.addf %3, %5 : vector<16x256xf32>
    %cst_5 = arith.constant 0.000000e+00 : f32
    %7 = vector.broadcast %cst_5 : f32 to vector<16x256xf32>
    %8 = arith.maximumf %6, %7 : vector<16x256xf32>
    %9 = arith.truncf %8 : vector<16x256xf32> to vector<16x256xbf16>
    %c0_6 = arith.constant 0 : index
    %c0_7 = arith.constant 0 : index
    %10 = vector.load %arg4[%c0_6, %c0_7] : memref<256x512xbf16, #tpu.memory_space<vmem>>, vector<256x512xbf16>
    %cst_8 = arith.constant dense<0.000000e+00> : vector<16x512xf32>
    %11 = tpu.matmul %9, %10, %cst_8 {dimension_numbers = #tpu.dot_dimension_numbers<[1], [0], [0], [1], [0, 0, 1, 1], [], []>} : vector<16x256xbf16>, vector<256x512xbf16>, vector<16x512xf32> -> vector<16x512xf32>
    %c0_9 = arith.constant 0 : index
    %c0_10 = arith.constant 0 : index
    %12 = vector.load %arg5[%c0_9, %c0_10] : memref<1x512xf32, #tpu.memory_space<vmem>>, vector<1x512xf32>
    %13 = vector.broadcast %12 : vector<1x512xf32> to vector<16x512xf32>
    %14 = arith.addf %11, %13 : vector<16x512xf32>
    %cst_11 = arith.constant 0.000000e+00 : f32
    %15 = vector.broadcast %cst_11 : f32 to vector<16x512xf32>
    %16 = arith.maximumf %14, %15 : vector<16x512xf32>
    %17 = arith.truncf %16 : vector<16x512xf32> to vector<16x512xbf16>
    %c0_12 = arith.constant 0 : index
    %c0_13 = arith.constant 0 : index
    %18 = vector.load %arg6[%c0_12, %c0_13] : memref<512x1024xbf16, #tpu.memory_space<vmem>>, vector<512x1024xbf16>
    %cst_14 = arith.constant dense<0.000000e+00> : vector<16x1024xf32>
    %19 = tpu.matmul %17, %18, %cst_14 {dimension_numbers = #tpu.dot_dimension_numbers<[1], [0], [0], [1], [0, 0, 1, 1], [], []>} : vector<16x512xbf16>, vector<512x1024xbf16>, vector<16x1024xf32> -> vector<16x1024xf32>
    %c0_15 = arith.constant 0 : index
    %c0_16 = arith.constant 0 : index
    %20 = vector.load %arg7[%c0_15, %c0_16] : memref<1x1024xf32, #tpu.memory_space<vmem>>, vector<1x1024xf32>
    %21 = vector.broadcast %20 : vector<1x1024xf32> to vector<16x1024xf32>
    %22 = arith.addf %19, %21 : vector<16x1024xf32>
    %cst_17 = arith.constant 0.000000e+00 : f32
    %23 = vector.broadcast %cst_17 : f32 to vector<16x1024xf32>
    %24 = arith.maximumf %22, %23 : vector<16x1024xf32>
    %25 = arith.truncf %24 : vector<16x1024xf32> to vector<16x1024xbf16>
    %c0_18 = arith.constant 0 : index
    %c0_19 = arith.constant 0 : index
    %26 = vector.load %arg8[%c0_18, %c0_19] : memref<1024x896xbf16, #tpu.memory_space<vmem>>, vector<1024x896xbf16>
    %cst_20 = arith.constant dense<0.000000e+00> : vector<16x896xf32>
    %27 = tpu.matmul %25, %26, %cst_20 {dimension_numbers = #tpu.dot_dimension_numbers<[1], [0], [0], [1], [0, 0, 1, 1], [], []>} : vector<16x1024xbf16>, vector<1024x896xbf16>, vector<16x896xf32> -> vector<16x896xf32>
    %c0_21 = arith.constant 0 : index
    %c0_22 = arith.constant 0 : index
    %28 = vector.load %arg9[%c0_21, %c0_22] : memref<1x896xf32, #tpu.memory_space<vmem>>, vector<1x896xf32>
    %29 = vector.broadcast %28 : vector<1x896xf32> to vector<16x896xf32>
    %30 = arith.addf %27, %29 : vector<16x896xf32>
    %31 = math.tanh %30 : vector<16x896xf32>
    %c0_23 = arith.constant 0 : index
    %c0_24 = arith.constant 0 : index
    %32 = vector.load %arg10[%c0_23, %c0_24] : memref<16x896xf32, #tpu.memory_space<vmem>>, vector<16x896xf32>
    tpu.vector_store %arg10[%c0_23, %c0_24], %31 {strides = array<i32>} : memref<16x896xf32, #tpu.memory_space<vmem>>, vector<16x896xf32>,
    return
  }
  func.func @transform_0(%arg0: i32) -> (i32, i32) {
    %c0_i32 = arith.constant 0 : i32
    %c0_i32_0 = arith.constant 0 : i32
    return %arg0, %c0_i32 : i32, i32
  }
  func.func @transform_1(%arg0: i32) -> (i32, i32) {
    %c0_i32 = arith.constant 0 : i32
    %c0_i32_0 = arith.constant 0 : i32
    %c0_i32_1 = arith.constant 0 : i32
    return %c0_i32, %c0_i32_0 : i32, i32
  }
  func.func @transform_2(%arg0: i32) -> (i32, i32) {
    %c0_i32 = arith.constant 0 : i32
    %c0_i32_0 = arith.constant 0 : i32
    %c0_i32_1 = arith.constant 0 : i32
    return %c0_i32, %c0_i32_0 : i32, i32
  }
  func.func @transform_3(%arg0: i32) -> (i32, i32) {
    %c0_i32 = arith.constant 0 : i32
    %c0_i32_0 = arith.constant 0 : i32
    %c0_i32_1 = arith.constant 0 : i32
    return %c0_i32, %c0_i32_0 : i32, i32
  }
  func.func @transform_4(%arg0: i32) -> (i32, i32) {
    %c0_i32 = arith.constant 0 : i32
    %c0_i32_0 = arith.constant 0 : i32
    %c0_i32_1 = arith.constant 0 : i32
    return %c0_i32, %c0_i32_0 : i32, i32
  }
  func.func @transform_5(%arg0: i32) -> (i32, i32) {
    %c0_i32 = arith.constant 0 : i32
    %c0_i32_0 = arith.constant 0 : i32
    %c0_i32_1 = arith.constant 0 : i32
    return %c0_i32, %c0_i32_0 : i32, i32
  }
  func.func @transform_6(%arg0: i32) -> (i32, i32) {
    %c0_i32 = arith.constant 0 : i32
    %c0_i32_0 = arith.constant 0 : i32
    %c0_i32_1 = arith.constant 0 : i32
    return %c0_i32, %c0_i32_0 : i32, i32
  }
  func.func @transform_7(%arg0: i32) -> (i32, i32) {
    %c0_i32 = arith.constant 0 : i32
    %c0_i32_0 = arith.constant 0 : i32
    %c0_i32_1 = arith.constant 0 : i32
    return %c0_i32, %c0_i32_0 : i32, i32
  }
  func.func @transform_8(%arg0: i32) -> (i32, i32) {
    %c0_i32 = arith.constant 0 : i32
    %c0_i32_0 = arith.constant 0 : i32
    %c0_i32_1 = arith.constant 0 : i32
    return %c0_i32, %c0_i32_0 : i32, i32
  }
  func.func @transform_9(%arg0: i32) -> (i32, i32) {
    %c0_i32 = arith.constant 0 : i32
    %c0_i32_0 = arith.constant 0 : i32
    return %arg0, %c0_i32 : i32, i32
  }
}

</mosaic_0001>

<bundles_post_ra>
// kernel: tpu_custom_call.1
= control target key start
LH: loop header
LB: loop body
LE: loop exit
PB: predicated region body
PF: predicated region fallthrough
CT: control target
= control target key end

     0   :  { %14 = vsyncpa [#allocation3], 0  ;;  %s8704_s0 = inlined_call_operand.hbm [shape: f32[16,128], index: 0, kind: input, shape index: {}]   ;;  %s8705_s1 = inlined_call_operand.hbm [shape: bf16[128,256], index: 1, kind: input, shape index: {}]   ;;  %s8706_s2 = inlined_call_operand.hbm [shape: f32[1,256], index: 2, kind: input, shape index: {}]   ;;  %s8707_s3 = inlined_call_operand.hbm [shape: bf16[256,512], index: 3, kind: input, shape index: {}]   ;;  %s8708_s4 = inlined_call_operand.hbm [shape: f32[1,512], index: 4, kind: input, shape index: {}]   ;;  %s8709_s5 = inlined_call_operand.hbm [shape: bf16[512,1024], index: 5, kind: input, shape index: {}]   ;;  %s8710_s6 = inlined_call_operand.hbm [shape: f32[1,1024], index: 6, kind: input, shape index: {}]   ;;  %s8711_s7 = inlined_call_operand.hbm [shape: bf16[1024,896], index: 7, kind: input, shape index: {}]   ;;  %s8712_s8 = inlined_call_operand.hbm [shape: f32[1,896], index: 8, kind: input, shape index: {}]   ;;  %s8713_s9 = inlined_call_operand.hbm [shape: f32[16,896], index: 9, kind: output, shape index: {}]  }
   0x1   :  { %15 = vsyncpa [#allocation6], 0 }
   0x2   :  { %16 = vsyncpa [#allocation9], 0 }
   0x3   :  { %17 = vsyncpa [#allocation12], 0 }
   0x4   :  { %18 = vsyncpa [#allocation15], 0 }
   0x5   :  { %19 = vsyncpa [#allocation4], 0  ;;  %s8333_s30 = smov [#allocation5]   ;;  %s8334_s11 = smov [#allocation8]  }
   0x6   :  { %s37_s10 = sshll.u32 %s8333_s30, 4  ;;  %s59_s12 = sshll.u32 %s8334_s11, 4  ;;  %s38_s10 = int_to_ptr.vmem [resolvable:$true] %s37_s10  ;;  %s8404_s12 = int_to_ptr.vmem [resolvable:$true] %s59_s12 }
   0x7   :  { %s8101_s15 = scalar_lea.hbm %s8705_s1, 2048 }
   0x8   :  { %p8102_p0 = scmp.ne.s32.totalorder %s8705_s1, %s8101_s15  ;;  %p8105_p1 = scmp.lt.u32.totalorder %s8101_s15, %s8705_s1 }
   0xa   :  { %p8107_p2 = pnand %p8105_p1, %p8102_p0 }
   0xc   :  { %8110 = shalt.err (!%p8107_p2)
}
   0xd   :  { %s8111_s20 = scalar_lea.vmem %s38_s10, 2048  ;;  %p8116_p4 = scmp.lt.s32.totalorder %s38_s10, %s38_s10 }
   0xe   :  { %p8112_p3 = scmp.ne.s32.totalorder %s38_s10, %s8111_s20  ;;  %p8117_p5 = scmp.lt.s32.totalorder %s8111_s20, %s8111_s20 }
  0x10   :  { %p8118_p6 = por %p8117_p5, %p8116_p4 }
  0x12   :  { %p8119_p7 = pnand %p8118_p6, %p8112_p3 }
  0x14   :  { %8122 = shalt.err (!%p8119_p7)
}
  0x15   :  { %s8335_s21 = smov 128   ;;  %s8336_s22 = smov 8  }
  0x16   :  { %43 = dma.hbm_to_vmem [thread:$0]  %s8705_s1, 2048, %s38_s10, [#allocation6], %s8335_s21, %s8335_s21, %s8336_s22  }
  0x17   :  { %s8123_s27 = scalar_lea.hbm %s8707_s3, 8192 }
  0x18   :  { %p8124_p8 = scmp.ne.s32.totalorder %s8707_s3, %s8123_s27  ;;  %p8127_p9 = scmp.lt.u32.totalorder %s8123_s27, %s8707_s3 }
  0x1a   :  { %p8129_p10 = pnand %p8127_p9, %p8124_p8 }
  0x1c   :  { %8132 = shalt.err (!%p8129_p10)
}
  0x1d   :  { %s8133_s13 = scalar_lea.vmem %s8404_s12, 8192  ;;  %p8138_p12 = scmp.lt.s32.totalorder %s8404_s12, %s8404_s12 }
  0x1e   :  { %p8134_p11 = scmp.ne.s32.totalorder %s8404_s12, %s8133_s13  ;;  %p8139_p13 = scmp.lt.s32.totalorder %s8133_s13, %s8133_s13 }
  0x20   :  { %p8140_p0 = por %p8139_p13, %p8138_p12 }
  0x22   :  { %p8141_p1 = pnand %p8140_p0, %p8134_p11 }
  0x24   :  { %8144 = shalt.err (!%p8141_p1)
}
  0x25   :  { %s8337_s1 = smov 256   ;;  %s8338_s10 = smov 16  }
  0x26   :  { %65 = dma.hbm_to_vmem [thread:$0]  %s8707_s3, 8192, %s8404_s12, [#allocation9], %s8337_s1, %s8337_s1, %s8338_s10  }
  0x27   :  { %s8339_s16 = smov [#allocation11]   ;;  %s8145_s20 = scalar_lea.hbm %s8709_s5, 32768 }
  0x28   :  { %s81_s17 = sshll.u32 %s8339_s16, 4  ;;  %p8146_p2 = scmp.ne.s32.totalorder %s8709_s5, %s8145_s20  ;;  %s82_s17 = int_to_ptr.vmem [resolvable:$true] %s81_s17 }
  0x29   :  { %p8149_p3 = scmp.lt.u32.totalorder %s8145_s20, %s8709_s5 }
  0x2b   :  { %p8151_p4 = pnand %p8149_p3, %p8146_p2 }
  0x2d   :  { %8154 = shalt.err (!%p8151_p4)
}
  0x2e   :  { %s8155_s27 = scalar_lea.vmem %s82_s17, 32768  ;;  %p8160_p6 = scmp.lt.s32.totalorder %s82_s17, %s82_s17 }
  0x2f   :  { %p8156_p5 = scmp.ne.s32.totalorder %s82_s17, %s8155_s27  ;;  %p8161_p7 = scmp.lt.s32.totalorder %s8155_s27, %s8155_s27 }
  0x31   :  { %p8162_p8 = por %p8161_p7, %p8160_p6 }
  0x33   :  { %p8163_p9 = pnand %p8162_p8, %p8156_p5 }
  0x35   :  { %8166 = shalt.err (!%p8163_p9)
}
  0x36   :  { %s8340_s3 = smov 512   ;;  %s8341_s12 = smov 32  }
  0x37   :  { %87 = dma.hbm_to_vmem [thread:$0]  %s8709_s5, 32768, %s82_s17, [#allocation12], %s8340_s3, %s8340_s3, %s8341_s12  }
  0x38   :  { %s8342_s30 = smov [#allocation14]   ;;  %s8167_s10 = scalar_lea.hbm %s8711_s7, 57344 }
  0x39   :  { %s103_s11 = sshll.u32 %s8342_s30, 4  ;;  %p8168_p10 = scmp.ne.s32.totalorder %s8711_s7, %s8167_s10  ;;  %s104_s11 = int_to_ptr.vmem [resolvable:$true] %s103_s11 }
  0x3a   :  { %p8171_p11 = scmp.lt.u32.totalorder %s8167_s10, %s8711_s7 }
  0x3c   :  { %p8173_p12 = pnand %p8171_p11, %p8168_p10 }
  0x3e   :  { %8176 = shalt.err (!%p8173_p12)
}
  0x3f   :  { %s8177_s19 = scalar_lea.vmem %s104_s11, 57344  ;;  %p8182_p0 = scmp.lt.s32.totalorder %s104_s11, %s104_s11 }
  0x40   :  { %p8178_p13 = scmp.ne.s32.totalorder %s104_s11, %s8177_s19  ;;  %p8183_p1 = scmp.lt.s32.totalorder %s8177_s19, %s8177_s19 }
  0x42   :  { %p8184_p2 = por %p8183_p1, %p8182_p0 }
  0x44   :  { %p8185_p3 = pnand %p8184_p2, %p8178_p13 }
  0x46   :  { %8188 = shalt.err (!%p8185_p3)
}
  0x47   :  { %s8343_s5 = smov 448   ;;  %s8344_s17 = smov 28  }
  0x48   :  { %109 = dma.hbm_to_vmem [thread:$0]  %s8711_s7, 57344, %s104_s11, [#allocation15], %s8343_s5, %s8343_s5, %s8344_s17  }
  0x49   :  { %s8345_s24 = smov [#allocation2]   ;;  %s8346_s26 = smov [#allocation7]  }
  0x4a   :  { %s25_s25 = sshll.u32 %s8345_s24, 4  ;;  %s50_s27 = sshll.u32 %s8346_s26, 4  ;;  %s26_s25 = int_to_ptr.vmem [resolvable:$true] %s25_s25  ;;  %s51_s27 = int_to_ptr.vmem [resolvable:$true] %s50_s27 }
  0x4b   :  { %s8189_s28 = scalar_lea.hbm %s8704_s0, 256 }
  0x4c   :  { %p8190_p4 = scmp.ne.s32.totalorder %s8704_s0, %s8189_s28  ;;  %p8193_p5 = scmp.lt.u32.totalorder %s8189_s28, %s8704_s0 }
  0x4e   :  { %p8195_p6 = pnand %p8193_p5, %p8190_p4 }
  0x50   :  { %8198 = shalt.err (!%p8195_p6)
}
  0x51   :  { %s8199_s7 = scalar_lea.vmem %s26_s25, 256  ;;  %p8204_p8 = scmp.lt.s32.totalorder %s26_s25, %s26_s25 }
  0x52   :  { %p8200_p7 = scmp.ne.s32.totalorder %s26_s25, %s8199_s7  ;;  %p8205_p9 = scmp.lt.s32.totalorder %s8199_s7, %s8199_s7 }
  0x54   :  { %p8206_p10 = por %p8205_p9, %p8204_p8 }
  0x56   :  { %p8207_p11 = pnand %p8206_p10, %p8200_p7 }
  0x58   :  { %8210 = shalt.err (!%p8207_p11)
}
  0x59   :  { %31 = dma.hbm_to_vmem [thread:$0]  %s8704_s0, 256, %s26_s25, [#allocation3], %s8335_s21, %s8335_s21, %s8336_s22  }
  0x5a   :  { %s8211_s16 = scalar_lea.hbm %s8706_s2, 32 }
  0x5b   :  { %p8212_p12 = scmp.ne.s32.totalorder %s8706_s2, %s8211_s16  ;;  %p8215_p13 = scmp.lt.u32.totalorder %s8211_s16, %s8706_s2 }
  0x5d   :  { %p8217_p0 = pnand %p8215_p13, %p8212_p12 }
  0x5f   :  { %8220 = shalt.err (!%p8217_p0)
}
  0x60   :  { %s8221_s20 = scalar_lea.vmem %s51_s27, 32  ;;  %p8226_p2 = scmp.lt.s32.totalorder %s51_s27, %s51_s27 }
  0x61   :  { %p8222_p1 = scmp.ne.s32.totalorder %s51_s27, %s8221_s20  ;;  %p8227_p3 = scmp.lt.s32.totalorder %s8221_s20, %s8221_s20 }
  0x63   :  { %p8228_p4 = por %p8227_p3, %p8226_p2 }
  0x65   :  { %p8229_p5 = pnand %p8228_p4, %p8222_p1 }
  0x67   :  { %8232 = shalt.err (!%p8229_p5)
}
  0x68   :  { %53 = dma.hbm_to_vmem [thread:$0]  %s8706_s2, 32, %s51_s27, [#allocation6]  }
  0x69   :  { %s8347_s22 = smov [#allocation10]   ;;  %s8348_s24 = smov [#allocation13]  }
  0x6a   :  { %s72_s23 = sshll.u32 %s8347_s22, 4  ;;  %s94_s25 = sshll.u32 %s8348_s24, 4  ;;  %s73_s23 = int_to_ptr.vmem [resolvable:$true] %s72_s23  ;;  %s95_s25 = int_to_ptr.vmem [resolvable:$true] %s94_s25 }
  0x6b   :  { %s8233_s12 = scalar_lea.hbm %s8708_s4, 64 }
  0x6c   :  { %p8234_p6 = scmp.ne.s32.totalorder %s8708_s4, %s8233_s12  ;;  %p8237_p7 = scmp.lt.u32.totalorder %s8233_s12, %s8708_s4 }
  0x6e   :  { %p8239_p8 = pnand %p8237_p7, %p8234_p6 }
  0x70   :  { %8242 = shalt.err (!%p8239_p8)
}
  0x71   :  { %s8243_s2 = scalar_lea.vmem %s73_s23, 64  ;;  %p8248_p10 = scmp.lt.s32.totalorder %s73_s23, %s73_s23 }
  0x72   :  { %p8244_p9 = scmp.ne.s32.totalorder %s73_s23, %s8243_s2  ;;  %p8249_p11 = scmp.lt.s32.totalorder %s8243_s2, %s8243_s2 }
  0x74   :  { %p8250_p12 = por %p8249_p11, %p8248_p10 }
  0x76   :  { %p8251_p13 = pnand %p8250_p12, %p8244_p9 }
  0x78   :  { %8254 = shalt.err (!%p8251_p13)
}
  0x79   :  { %75 = dma.hbm_to_vmem [thread:$0]  %s8708_s4, 64, %s73_s23, [#allocation9]  }
  0x7a   :  { %s8255_s10 = scalar_lea.hbm %s8710_s6, 128 }
  0x7b   :  { %p8256_p0 = scmp.ne.s32.totalorder %s8710_s6, %s8255_s10  ;;  %p8259_p1 = scmp.lt.u32.totalorder %s8255_s10, %s8710_s6 }
  0x7d   :  { %p8261_p2 = pnand %p8259_p1, %p8256_p0 }
  0x7f   :  { %8264 = shalt.err (!%p8261_p2)
}
  0x80   :  { %s8265_s19 = scalar_lea.vmem %s95_s25, 128  ;;  %p8270_p4 = scmp.lt.s32.totalorder %s95_s25, %s95_s25 }
  0x81   :  { %p8266_p3 = scmp.ne.s32.totalorder %s95_s25, %s8265_s19  ;;  %p8271_p5 = scmp.lt.s32.totalorder %s8265_s19, %s8265_s19 }
  0x83   :  { %p8272_p6 = por %p8271_p5, %p8270_p4 }
  0x85   :  { %p8273_p7 = pnand %p8272_p6, %p8266_p3 }
  0x87   :  { %8276 = shalt.err (!%p8273_p7)
}
  0x88   :  { %97 = dma.hbm_to_vmem [thread:$0]  %s8710_s6, 128, %s95_s25, [#allocation12]  }
  0x89   :  { %s8349_s17 = smov [#allocation16]   ;;  %s8277_s22 = scalar_lea.hbm %s8712_s8, 112 }
  0x8a   :  { %s116_s20 = sshll.u32 %s8349_s17, 4  ;;  %p8278_p8 = scmp.ne.s32.totalorder %s8712_s8, %s8277_s22  ;;  %s117_s20 = int_to_ptr.vmem [resolvable:$true] %s116_s20 }
  0x8b   :  { %p8281_p9 = scmp.lt.u32.totalorder %s8277_s22, %s8712_s8 }
  0x8d   :  { %p8283_p10 = pnand %p8281_p9, %p8278_p8 }
  0x8f   :  { %8286 = shalt.err (!%p8283_p10)
}
  0x90   :  { %s8287_s12 = scalar_lea.vmem %s117_s20, 112  ;;  %s8291_s6 = scalar_lea.vmem %s117_s20, 128 }
  0x91   :  { %p8288_p11 = scmp.ne.s32.totalorder %s117_s20, %s8287_s12  ;;  %p8292_p12 = scmp.lt.s32.totalorder %s117_s20, %s117_s20 }
  0x92   :  { %p8293_p13 = scmp.lt.s32.totalorder %s8291_s6, %s8287_s12 }
  0x94   :  { %p8294_p0 = por %p8293_p13, %p8292_p12 }
  0x96   :  { %p8295_p1 = pnand %p8294_p0, %p8288_p11 }
  0x98   :  { %8298 = shalt.err (!%p8295_p1)
}
  0x99   :  { %119 = dma.hbm_to_vmem [thread:$0]  %s8712_s8, 112, %s117_s20, [#allocation15]  }
  0x9a   :  { %8321 = dma.done.wait [#allocation3], 256  }
  0x9b   :  { %8322 = vsyncadd [#allocation3], 4294967040 }
  0x9c   :  { %8323 = dma.done.wait [#allocation6], 2080  }
  0x9d   :  { %8324 = vsyncadd [#allocation6], 4294965216 }
  0x9e   :  { %8325 = dma.done.wait [#allocation9], 8256  }
  0x9f   :  { %8326 = vsyncadd [#allocation9], 4294959040 }
  0xa0   :  { %8327 = dma.done.wait [#allocation12], 32896  }
  0xa1   :  { %8328 = vsyncadd [#allocation12], 4294934400 }
  0xa2   :  { %8329 = dma.done.wait [#allocation15], 57456  }
  0xa3   :  { %8330 = vsyncadd [#allocation15], 4294909840  ;;  %v8350_v0 = vmov 0   ;;  %v7313_v1 = vld [vmem:[#allocation5 + $0x4] ss:$8 sps:$4 sm:$0xff]   ;;  %v148_v17 = vld [vmem:[#allocation2] sm:$0xff] }
  0xa4   :  { %291 = vmatprep.mubr.bf16.mxu0 %v8350_v0  ;;  %v7315_v2 = vld [vmem:[#allocation5] ss:$8 sps:$4 sm:$0xff]   ;;  %259 = vmatprep.subr.bf16.mxu0 %v7313_v1  ;;  %v7316_v3 = vld [vmem:[#allocation5 + $0x14] ss:$8 sps:$4 sm:$0xff]   ;;  %v7318_v4 = vld [vmem:[#allocation5 + $0x10] ss:$8 sps:$4 sm:$0xff]  }
  0xa5   :  { %260 = vmatpush1.bf16.msra.mxu0 %v7315_v2  ;;  %v7319_v5 = vld [vmem:[#allocation5 + $0x24] ss:$8 sps:$4 sm:$0xff]   ;;  %v7321_v6 = vld [vmem:[#allocation5 + $0x20] ss:$8 sps:$4 sm:$0xff]   ;;  %v7322_v7 = vld [vmem:[#allocation5 + $0x34] ss:$8 sps:$4 sm:$0xff]  }
  0xa6   :  { %261 = vmatprep.subr.bf16.mxu0 %v7316_v3  ;;  %v7324_v8 = vld [vmem:[#allocation5 + $0x30] ss:$8 sps:$4 sm:$0xff]   ;;  %v7325_v9 = vld [vmem:[#allocation5 + $0x44] ss:$8 sps:$4 sm:$0xff]   ;;  %v7327_v10 = vld [vmem:[#allocation5 + $0x40] ss:$8 sps:$4 sm:$0xff]  }
  0xa7   :  { %v7328_v11 = vld [vmem:[#allocation5 + $0x54] ss:$8 sps:$4 sm:$0xff]   ;;  %v7330_v12 = vld [vmem:[#allocation5 + $0x50] ss:$8 sps:$4 sm:$0xff]   ;;  %v7331_v13 = vld [vmem:[#allocation5 + $0x64] ss:$8 sps:$4 sm:$0xff]  }
  0xa8   :  { %v7333_v14 = vld [vmem:[#allocation5 + $0x60] ss:$8 sps:$4 sm:$0xff]   ;;  %v7334_v15 = vld [vmem:[#allocation5 + $0x74] ss:$8 sps:$4 sm:$0xff]   ;;  %v7336_v16 = vld [vmem:[#allocation5 + $0x70] ss:$8 sps:$4 sm:$0xff]  }
  0xa9   :  { %262 = vmatpush1.bf16.msra.mxu0 %v7318_v4  ;;  %v149_v18 = vld [vmem:[#allocation2 + $0x8] sm:$0xff]  ;;  %v7337_v20 = vld [vmem:[#allocation8] ss:$16 sps:$4 sm:$0xff]   ;;  %v812_v53 = vld [vmem:[#allocation11] sm:$0xff]  ;;  %s8351_s8 = smov [#allocation17]  }
  0xaa   :  { %263 = vmatprep.subr.bf16.mxu0 %v7319_v5  ;;  %v7339_v19 = vld [vmem:[#allocation8 + $0x4] ss:$16 sps:$4 sm:$0xff]   ;;  %v150_v21 = vpack.c.bf16 %v149_v18, %v148_v17  ;;  %v7340_v23 = vld [vmem:[#allocation8 + $0x20] ss:$16 sps:$4 sm:$0xff]   ;;  %v7387_v52 = vld [vmem:[#allocation8 + $0xc] ss:$16 sps:$4 sm:$0xff]  }
  0xab   :  { %v7342_v22 = vld [vmem:[#allocation8 + $0x24] ss:$16 sps:$4 sm:$0xff]   ;;  %v7343_v25 = vld [vmem:[#allocation8 + $0x40] ss:$16 sps:$4 sm:$0xff]   ;;  %s6324_s29 = sshll.u32 %s8351_s8, 4  ;;  %s6325_s29 = int_to_ptr.vmem [resolvable:$true] %s6324_s29 }
  0xac   :  { %v7345_v24 = vld [vmem:[#allocation8 + $0x44] ss:$16 sps:$4 sm:$0xff]   ;;  %v7346_v27 = vld [vmem:[#allocation8 + $0x60] ss:$16 sps:$4 sm:$0xff]   ;;  %s8299_s30 = scalar_lea.vmem %s6325_s29, 1792  ;;  %p8304_p3 = scmp.lt.s32.totalorder %s6325_s29, %s6325_s29 }
  0xad   :  { %264 = vmatpush1.bf16.msra.mxu0 %v7321_v6  ;;  %v7348_v26 = vld [vmem:[#allocation8 + $0x64] ss:$16 sps:$4 sm:$0xff]   ;;  %v7349_v29 = vld [vmem:[#allocation8 + $0x80] ss:$16 sps:$4 sm:$0xff]   ;;  %p8300_p2 = scmp.ne.s32.totalorder %s6325_s29, %s8299_s30  ;;  %p8305_p4 = scmp.lt.s32.totalorder %s8299_s30, %s8299_s30 }
  0xae   :  { %265 = vmatprep.subr.bf16.mxu0 %v7322_v7  ;;  %v7351_v28 = vld [vmem:[#allocation8 + $0x84] ss:$16 sps:$4 sm:$0xff]   ;;  %v7352_v31 = vld [vmem:[#allocation8 + $0xa0] ss:$16 sps:$4 sm:$0xff]  }
  0xaf   :  { %v7354_v30 = vld [vmem:[#allocation8 + $0xa4] ss:$16 sps:$4 sm:$0xff]   ;;  %v7355_v33 = vld [vmem:[#allocation8 + $0xc0] ss:$16 sps:$4 sm:$0xff]   ;;  %p8306_p5 = por %p8305_p4, %p8304_p3 }
  0xb0   :  { %v7357_v32 = vld [vmem:[#allocation8 + $0xc4] ss:$16 sps:$4 sm:$0xff]   ;;  %v7358_v35 = vld [vmem:[#allocation8 + $0xe0] ss:$16 sps:$4 sm:$0xff]  }
  0xb1   :  { %266 = vmatpush1.bf16.msra.mxu0 %v7324_v8  ;;  %v7360_v34 = vld [vmem:[#allocation8 + $0xe4] ss:$16 sps:$4 sm:$0xff]   ;;  %v7361_v37 = vld [vmem:[#allocation8 + $0x100] ss:$16 sps:$4 sm:$0xff]   ;;  %p8307_p6 = pnand %p8306_p5, %p8300_p2 }
  0xb2   :  { %267 = vmatprep.subr.bf16.mxu0 %v7325_v9  ;;  %v7363_v36 = vld [vmem:[#allocation8 + $0x104] ss:$16 sps:$4 sm:$0xff]   ;;  %v7364_v39 = vld [vmem:[#allocation8 + $0x120] ss:$16 sps:$4 sm:$0xff]  }
  0xb3   :  { %v7366_v38 = vld [vmem:[#allocation8 + $0x124] ss:$16 sps:$4 sm:$0xff]   ;;  %v7367_v41 = vld [vmem:[#allocation8 + $0x140] ss:$16 sps:$4 sm:$0xff]  }
  0xb4   :  { %v7369_v40 = vld [vmem:[#allocation8 + $0x144] ss:$16 sps:$4 sm:$0xff]   ;;  %v7370_v43 = vld [vmem:[#allocation8 + $0x160] ss:$16 sps:$4 sm:$0xff]  }
  0xb5   :  { %268 = vmatpush1.bf16.msra.mxu0 %v7327_v10  ;;  %v7372_v42 = vld [vmem:[#allocation8 + $0x164] ss:$16 sps:$4 sm:$0xff]   ;;  %v7373_v45 = vld [vmem:[#allocation8 + $0x180] ss:$16 sps:$4 sm:$0xff]  }
  0xb6   :  { %269 = vmatprep.subr.bf16.mxu0 %v7328_v11  ;;  %v7375_v44 = vld [vmem:[#allocation8 + $0x184] ss:$16 sps:$4 sm:$0xff]   ;;  %v7376_v47 = vld [vmem:[#allocation8 + $0x1a0] ss:$16 sps:$4 sm:$0xff]  }
  0xb7   :  { %v7378_v46 = vld [vmem:[#allocation8 + $0x1a4] ss:$16 sps:$4 sm:$0xff]   ;;  %v7379_v49 = vld [vmem:[#allocation8 + $0x1c0] ss:$16 sps:$4 sm:$0xff]  }
  0xb8   :  { %v7381_v48 = vld [vmem:[#allocation8 + $0x1c4] ss:$16 sps:$4 sm:$0xff]   ;;  %v7382_v51 = vld [vmem:[#allocation8 + $0x1e0] ss:$16 sps:$4 sm:$0xff]  }
  0xb9   :  { %270 = vmatpush1.bf16.msra.mxu0 %v7330_v12  ;;  %v7384_v50 = vld [vmem:[#allocation8 + $0x1e4] ss:$16 sps:$4 sm:$0xff]  }
  0xba   :  { %271 = vmatprep.subr.bf16.mxu0 %v7331_v13  ;;  %v816_v54 = vld [vmem:[#allocation11 + $0x20] sm:$0xff] }
  0xbb   :  { %v6421_v55 = vcombine.high %v812_v53, %v816_v54  ;;  %v6420_v56 = vcombine.low %v812_v53, %v816_v54  ;;  %v820_v57 = vld [vmem:[#allocation11 + $0x40] sm:$0xff] }
  0xbc   :  { %v824_v58 = vld [vmem:[#allocation11 + $0x60] sm:$0xff] }
  0xbd   :  { %272 = vmatpush1.bf16.msra.mxu0 %v7333_v14  ;;  %v6429_v59 = vcombine.high %v820_v57, %v824_v58  ;;  %2390 = vmatprep.subr.bf16.mxu1 %v6421_v55  ;;  %v6428_v60 = vcombine.low %v820_v57, %v824_v58  ;;  %v828_v61 = vld [vmem:[#allocation11 + $0x80] sm:$0xff] }
  0xbe   :  { %273 = vmatprep.subr.bf16.mxu0 %v7334_v15  ;;  %2391 = vmatpush1.bf16.msra.mxu1 %v6420_v56  ;;  %v832_v62 = vld [vmem:[#allocation11 + $0xa0] sm:$0xff] }
  0xbf   :  { %2392 = vmatprep.subr.bf16.mxu1 %v6429_v59  ;;  %v6437_v63 = vcombine.high %v828_v61, %v832_v62  ;;  %v6436_v0 = vcombine.low %v828_v61, %v832_v62  ;;  %v836_v1 = vld [vmem:[#allocation11 + $0xc0] sm:$0xff] }
  0xc0   :  { %v840_v2 = vld [vmem:[#allocation11 + $0xe0] sm:$0xff] }
  0xc1   :  { %274 = vmatpush1.bf16.msra.mxu0 %v7336_v16  ;;  %v6445_v3 = vcombine.high %v836_v1, %v840_v2  ;;  %v6444_v4 = vcombine.low %v836_v1, %v840_v2  ;;  %v844_v5 = vld [vmem:[#allocation11 + $0x100] sm:$0xff] }
  0xc2   :  { %714 = vmatprep.subr.bf16.mxu0 %v7339_v19  ;;  %2393 = vmatpush1.bf16.msra.mxu1 %v6428_v60  ;;  %v848_v6 = vld [vmem:[#allocation11 + $0x120] sm:$0xff] }
  0xc3   :  { %2394 = vmatprep.subr.bf16.mxu1 %v6437_v63  ;;  %v6453_v7 = vcombine.high %v844_v5, %v848_v6  ;;  %v6452_v8 = vcombine.low %v844_v5, %v848_v6  ;;  %v852_v9 = vld [vmem:[#allocation11 + $0x140] sm:$0xff]  ;;  %v7393_v5 = vld [vmem:[#allocation8 + $0x4c] ss:$16 sps:$4 sm:$0xff]  }
  0xc4   :  { %292 = vmatmul.mubr.bf16.vlgmr.msra.gmra.mrb[0].mxu0 %v150_v21  ;;  %v856_v10 = vld [vmem:[#allocation11 + $0x160] sm:$0xff] }
  0xc5   :  { %715 = vmatpush1.bf16.msra.mxu0 %v7337_v20  ;;  %v6461_v11 = vcombine.high %v852_v9, %v856_v10  ;;  %v6460_v12 = vcombine.low %v852_v9, %v856_v10  ;;  %v860_v13 = vld [vmem:[#allocation11 + $0x180] sm:$0xff]  ;;  %v7399_v9 = vld [vmem:[#allocation8 + $0x8c] ss:$16 sps:$4 sm:$0xff]  }
  0xc6   :  { %716 = vmatprep.subr.bf16.mxu0 %v7342_v22  ;;  %2395 = vmatpush1.bf16.msra.mxu1 %v6436_v0  ;;  %v864_v14 = vld [vmem:[#allocation11 + $0x1a0] sm:$0xff] }
  0xc7   :  { %2396 = vmatprep.subr.bf16.mxu1 %v6445_v3  ;;  %v6469_v15 = vcombine.high %v860_v13, %v864_v14  ;;  %v6468_v16 = vcombine.low %v860_v13, %v864_v14  ;;  %v868_v17 = vld [vmem:[#allocation11 + $0x1c0] sm:$0xff]  ;;  %v7390_v3 = vld [vmem:[#allocation8 + $0x2c] ss:$16 sps:$4 sm:$0xff]  }
  0xc8   :  { %v872_v18 = vld [vmem:[#allocation11 + $0x1e0] sm:$0xff]  ;;  %v7405_v13 = vld [vmem:[#allocation8 + $0xcc] ss:$16 sps:$4 sm:$0xff]  }
  0xc9   :  { %717 = vmatpush1.bf16.msra.mxu0 %v7340_v23  ;;  %v6477_v19 = vcombine.high %v868_v17, %v872_v18  ;;  %v6476_v20 = vcombine.low %v868_v17, %v872_v18  ;;  %v876_v21 = vld [vmem:[#allocation11 + $0x200] sm:$0xff]  ;;  %v7411_v17 = vld [vmem:[#allocation8 + $0x10c] ss:$16 sps:$4 sm:$0xff]  }
  0xca   :  { %718 = vmatprep.subr.bf16.mxu0 %v7345_v24  ;;  %2397 = vmatpush1.bf16.msra.mxu1 %v6444_v4  ;;  %v880_v22 = vld [vmem:[#allocation11 + $0x220] sm:$0xff] }
  0xcb   :  { %2398 = vmatprep.subr.bf16.mxu1 %v6453_v7  ;;  %v6485_v23 = vcombine.high %v876_v21, %v880_v22  ;;  %v6484_v24 = vcombine.low %v876_v21, %v880_v22  ;;  %v7385_v2 = vld [vmem:[#allocation8 + $0x8] ss:$16 sps:$4 sm:$0xff]   ;;  %v7396_v7 = vld [vmem:[#allocation8 + $0x6c] ss:$16 sps:$4 sm:$0xff]  }
  0xcc   :  { %v7388_v4 = vld [vmem:[#allocation8 + $0x28] ss:$16 sps:$4 sm:$0xff]   ;;  %v7417_v21 = vld [vmem:[#allocation8 + $0x14c] ss:$16 sps:$4 sm:$0xff]  }
  0xcd   :  { %719 = vmatpush1.bf16.msra.mxu0 %v7343_v25  ;;  %v884_v25 = vld [vmem:[#allocation11 + $0x240] sm:$0xff] }
  0xce   :  { %720 = vmatprep.subr.bf16.mxu0 %v7348_v26  ;;  %2399 = vmatpush1.bf16.msra.mxu1 %v6452_v8  ;;  %v888_v26 = vld [vmem:[#allocation11 + $0x260] sm:$0xff] }
  0xcf   :  { %2400 = vmatprep.subr.bf16.mxu1 %v6461_v11  ;;  %v7391_v6 = vld [vmem:[#allocation8 + $0x48] ss:$16 sps:$4 sm:$0xff]   ;;  %v7402_v11 = vld [vmem:[#allocation8 + $0xac] ss:$16 sps:$4 sm:$0xff]  }
  0xd0   :  { %v7394_v8 = vld [vmem:[#allocation8 + $0x68] ss:$16 sps:$4 sm:$0xff]  }
  0xd1   :  { %721 = vmatpush1.bf16.msra.mxu0 %v7346_v27  ;;  %v6493_v27 = vcombine.high %v884_v25, %v888_v26  ;;  %v7397_v10 = vld [vmem:[#allocation8 + $0x88] ss:$16 sps:$4 sm:$0xff]  }
  0xd2   :  { %722 = vmatprep.subr.bf16.mxu0 %v7351_v28  ;;  %2401 = vmatpush1.bf16.msra.mxu1 %v6460_v12  ;;  %v6492_v28 = vcombine.low %v884_v25, %v888_v26  ;;  %v7400_v12 = vld [vmem:[#allocation8 + $0xa8] ss:$16 sps:$4 sm:$0xff]   ;;  %v7423_v25 = vld [vmem:[#allocation8 + $0x18c] ss:$16 sps:$4 sm:$0xff]  }
  0xd3   :  { %2402 = vmatprep.subr.bf16.mxu1 %v6469_v15  ;;  %v7403_v14 = vld [vmem:[#allocation8 + $0xc8] ss:$16 sps:$4 sm:$0xff]   ;;  %v7408_v15 = vld [vmem:[#allocation8 + $0xec] ss:$16 sps:$4 sm:$0xff]  }
  0xd4   :  { %v7409_v18 = vld [vmem:[#allocation8 + $0x108] ss:$16 sps:$4 sm:$0xff]  }
  0xd5   :  { %723 = vmatpush1.bf16.msra.mxu0 %v7349_v29  ;;  %v892_v29 = vld [vmem:[#allocation11 + $0x280] sm:$0xff] }
  0xd6   :  { %724 = vmatprep.subr.bf16.mxu0 %v7354_v30  ;;  %2403 = vmatpush1.bf16.msra.mxu1 %v6468_v16  ;;  %v896_v30 = vld [vmem:[#allocation11 + $0x2a0] sm:$0xff] }
  0xd7   :  { %2404 = vmatprep.subr.bf16.mxu1 %v6477_v19  ;;  %v7406_v16 = vld [vmem:[#allocation8 + $0xe8] ss:$16 sps:$4 sm:$0xff]   ;;  %v7414_v19 = vld [vmem:[#allocation8 + $0x12c] ss:$16 sps:$4 sm:$0xff]  }
  0xd8   :  { %v7415_v22 = vld [vmem:[#allocation8 + $0x148] ss:$16 sps:$4 sm:$0xff]  }
  0xd9   :  { %725 = vmatpush1.bf16.msra.mxu0 %v7352_v31  ;;  %v169_v31 = vlaneseq  ;;  %v7421_v26 = vld [vmem:[#allocation8 + $0x188] ss:$16 sps:$4 sm:$0xff]  }
  0xda   :  { %726 = vmatprep.subr.bf16.mxu0 %v7357_v32  ;;  %2405 = vmatpush1.bf16.msra.mxu1 %v6476_v20  ;;  %v6501_v32 = vcombine.high %v892_v29, %v896_v30  ;;  %v7412_v20 = vld [vmem:[#allocation8 + $0x128] ss:$16 sps:$4 sm:$0xff]  }
  0xdb   :  { %2406 = vmatprep.subr.bf16.mxu1 %v6485_v23  ;;  %v7420_v23 = vld [vmem:[#allocation8 + $0x16c] ss:$16 sps:$4 sm:$0xff]  }
  0xdd   :  { %727 = vmatpush1.bf16.msra.mxu0 %v7355_v33  ;;  %v6500_v33 = vcombine.low %v892_v29, %v896_v30  ;;  %v7429_v29 = vld [vmem:[#allocation8 + $0x1cc] ss:$16 sps:$4 sm:$0xff]   ;;  %v7427_v30 = vld [vmem:[#allocation8 + $0x1c8] ss:$16 sps:$4 sm:$0xff]  }
  0xde   :  { %728 = vmatprep.subr.bf16.mxu0 %v7360_v34  ;;  %2407 = vmatpush1.bf16.msra.mxu1 %v6484_v24  ;;  %v900_v34 = vld [vmem:[#allocation11 + $0x2c0] sm:$0xff] }
  0xdf   :  { %2408 = vmatprep.subr.bf16.mxu1 %v6493_v27  ;;  %v7418_v24 = vld [vmem:[#allocation8 + $0x168] ss:$16 sps:$4 sm:$0xff]   ;;  %v7426_v27 = vld [vmem:[#allocation8 + $0x1ac] ss:$16 sps:$4 sm:$0xff]  }
  0xe1   :  { %729 = vmatpush1.bf16.msra.mxu0 %v7358_v35  ;;  %v904_v35 = vld [vmem:[#allocation11 + $0x2e0] sm:$0xff] }
  0xe2   :  { %730 = vmatprep.subr.bf16.mxu0 %v7363_v36  ;;  %2409 = vmatpush1.bf16.msra.mxu1 %v6492_v28  ;;  %v8525_v36 = vshrl.u32 %v169_v31, 7  ;;  %v7424_v28 = vld [vmem:[#allocation8 + $0x1a8] ss:$16 sps:$4 sm:$0xff]   ;;  %v7432_v31 = vld [vmem:[#allocation8 + $0x1ec] ss:$16 sps:$4 sm:$0xff]  }
  0xe3   :  { %2410 = vmatprep.subr.bf16.mxu1 %v6501_v32  ;;  %v813_v32 = vld [vmem:[#allocation11 + $0x8] sm:$0xff] }
  0xe5   :  { %731 = vmatpush1.bf16.msra.mxu0 %v7361_v37  ;;  %v6509_v37 = vcombine.high %v900_v34, %v904_v35 }
  0xe6   :  { %732 = vmatprep.subr.bf16.mxu0 %v7366_v38  ;;  %2411 = vmatpush1.bf16.msra.mxu1 %v6500_v33  ;;  %v6508_v38 = vcombine.low %v900_v34, %v904_v35  ;;  %v817_v33 = vld [vmem:[#allocation11 + $0x28] sm:$0xff]  ;;  %v7430_v34 = vld [vmem:[#allocation8 + $0x1e8] ss:$16 sps:$4 sm:$0xff]  }
  0xe7   :  { %2412 = vmatprep.subr.bf16.mxu1 %v6509_v37  ;;  %v6423_v35 = vcombine.high %v813_v32, %v817_v33  ;;  %v821_v37 = vld [vmem:[#allocation11 + $0x48] sm:$0xff] }
  0xe9   :  { %733 = vmatpush1.bf16.msra.mxu0 %v7364_v39  ;;  %v908_v39 = vld [vmem:[#allocation11 + $0x300] sm:$0xff] }
  0xea   :  { %734 = vmatprep.subr.bf16.mxu0 %v7369_v40  ;;  %v912_v40 = vld [vmem:[#allocation11 + $0x320] sm:$0xff]  ;;  %2413 = vmatpush1.bf16.msra.mxu1 %v6508_v38  ;;  %v825_v38 = vld [vmem:[#allocation11 + $0x68] sm:$0xff] }
  0xed   :  { %735 = vmatpush1.bf16.msra.mxu0 %v7367_v41  ;;  %v167_v41 = vld [vmem:[#allocation7] sm:$0x3] }
  0xee   :  { %736 = vmatprep.subr.bf16.mxu0 %v7372_v42  ;;  %v8528_v42 = vsub.s32 0, %v8525_v36 }
  0xf1   :  { %737 = vmatpush1.bf16.msra.mxu0 %v7370_v43  ;;  %v6517_v43 = vcombine.high %v908_v39, %v912_v40 }
  0xf2   :  { %738 = vmatprep.subr.bf16.mxu0 %v7375_v44  ;;  %v8531_v44 = vsub.s32 1, %v8525_v36 }
  0xf3   :  { %2414 = vmatprep.subr.bf16.mxu1 %v6517_v43  ;;  %v833_v43 = vld [vmem:[#allocation11 + $0xa8] sm:$0xff] }
  0xf5   :  { %739 = vmatpush1.bf16.msra.mxu0 %v7373_v45  ;;  %v6516_v45 = vcombine.low %v908_v39, %v912_v40  ;;  %v6422_v39 = vcombine.low %v813_v32, %v817_v33  ;;  %v6431_v40 = vcombine.high %v821_v37, %v825_v38 }
  0xf6   :  { %740 = vmatprep.subr.bf16.mxu0 %v7378_v46  ;;  %v916_v46 = vld [vmem:[#allocation11 + $0x340] sm:$0xff] }
  0xf7   :  { %2415 = vmatpush1.bf16.msra.mxu1 %v6516_v45  ;;  %v6430_v45 = vcombine.low %v821_v37, %v825_v38 }
  0xf9   :  { %741 = vmatpush1.bf16.msra.mxu0 %v7376_v47  ;;  %v920_v47 = vld [vmem:[#allocation11 + $0x360] sm:$0xff] }
  0xfa   :  { %742 = vmatprep.subr.bf16.mxu0 %v7381_v48  ;;  %v172_v48 = vrot.slane %v167_v41, %v8528_v42 }
  0xfd   :  { %743 = vmatpush1.bf16.msra.mxu0 %v7379_v49  ;;  %v6525_v49 = vcombine.high %v916_v46, %v920_v47 }
  0xfe   :  { %744 = vmatprep.subr.bf16.mxu0 %v7384_v50  ;;  %v176_v50 = vrot.slane %v167_v41, %v8531_v44  ;;  %v829_v41 = vld [vmem:[#allocation11 + $0x88] sm:$0xff] }
  0xff   :  { %2416 = vmatprep.subr.bf16.mxu1 %v6525_v49  ;;  %v6438_v49 = vcombine.low %v829_v41, %v833_v43 }
 0x101   :  { %745 = vmatpush1.bf16.msra.mxu0 %v7382_v51  ;;  %v6524_v51 = vcombine.low %v916_v46, %v920_v47  ;;  %v6439_v46 = vcombine.high %v829_v41, %v833_v43  ;;  %v837_v47 = vld [vmem:[#allocation11 + $0xc8] sm:$0xff] }
 0x102   :  { %757 = vmatprep.subr.bf16.mxu0 %v7387_v52 }
 0x103   :  { %2417 = vmatpush1.bf16.msra.mxu1 %v6524_v51  ;;  %v845_v51 = vld [vmem:[#allocation11 + $0x108] sm:$0xff] }
 0x197   :  { %v293_v52 = vpop.f32.mrb[0].mxu0 }
 0x198   :  { %v294_v53 = vadd.f32 %v293_v52, %v172_v48  ;;  %v295_v54 = vpop.f32.mrb[1].mxu0  ;;  %v849_v52 = vld [vmem:[#allocation11 + $0x128] sm:$0xff] }
 0x199   :  { %v296_v55 = vadd.f32 %v295_v54, %v176_v50  ;;  %v297_v56 = vpop.f32.mrb[2].mxu0  ;;  %v6455_v54 = vcombine.high %v845_v51, %v849_v52 }
 0x19a   :  { %v298_v57 = vadd.f32 %v297_v56, %v172_v48  ;;  %v299_v58 = vpop.f32.mrb[3].mxu0  ;;  %v302_v60 = vmax.f32 %v294_v53, 0.0  ;;  %v841_v48 = vld [vmem:[#allocation11 + $0xe8] sm:$0xff] }
 0x19b   :  { %v300_v59 = vadd.f32 %v299_v58, %v176_v50  ;;  %v303_v62 = vmax.f32 %v296_v55, 0.0  ;;  %v6447_v50 = vcombine.high %v837_v47, %v841_v48  ;;  %v6446_v53 = vcombine.low %v837_v47, %v841_v48  ;;  %v853_v55 = vld [vmem:[#allocation11 + $0x148] sm:$0xff] }
 0x19c   :  { %v304_v61 = vmax.f32 %v298_v57, 0.0  ;;  %v857_v56 = vld [vmem:[#allocation11 + $0x168] sm:$0xff]  ;;  %v6454_v57 = vcombine.low %v845_v51, %v849_v52 }
 0x19d   :  { %v305_v63 = vmax.f32 %v300_v59, 0.0  ;;  %v6463_v58 = vcombine.high %v853_v55, %v857_v56  ;;  %v861_v59 = vld [vmem:[#allocation11 + $0x188] sm:$0xff] }
 0x19e   :  { %v8535_v0 = vpack.c.bf16 %v304_v61, %v302_v60  ;;  %v865_v60 = vld [vmem:[#allocation11 + $0x1a8] sm:$0xff]  ;;  %v6462_v61 = vcombine.low %v853_v55, %v857_v56  ;;  %v8555_v55 = vld [vmem:[#allocation10] sm:$0xf] }
 0x19f   :  { %v307_v1 = vpack.c.bf16 %v305_v63, %v303_v62  ;;  %v6471_v62 = vcombine.high %v861_v59, %v865_v60  ;;  %v869_v63 = vld [vmem:[#allocation11 + $0x1c8] sm:$0xff]  ;;  %v377_v56 = vrot.slane %v8555_v55, %v8528_v42 }
 0x1a1   :  { %746 = vmatprep.mubr.bf16.mxu0 %v307_v1 }
 0x1a2   :  { %747 = vmatmul.mubr.bf16.vlgmr.msra.gmra.mrb[4].mxu0 %v8535_v0 }
 0x1a3   :  { %758 = vmatpush1.bf16.msra.mxu0 %v7385_v2  ;;  %789 = vmatprep.mubr.bf16.mxu0 %v307_v1  ;;  %v924_v1 = vld [vmem:[#allocation11 + $0x380] sm:$0xff] }
 0x1a4   :  { %759 = vmatprep.subr.bf16.mxu0 %v7390_v3  ;;  %v928_v2 = vld [vmem:[#allocation11 + $0x3a0] sm:$0xff] }
 0x1a5   :  { %v6533_v3 = vcombine.high %v924_v1, %v928_v2 }
 0x1a7   :  { %760 = vmatpush1.bf16.msra.mxu0 %v7388_v4  ;;  %v6470_v4 = vcombine.low %v861_v59, %v865_v60  ;;  %2418 = vmatprep.subr.bf16.mxu1 %v6533_v3 }
 0x1a8   :  { %761 = vmatprep.subr.bf16.mxu0 %v7393_v5  ;;  %v6532_v5 = vcombine.low %v924_v1, %v928_v2 }
 0x1aa   :  { %2419 = vmatpush1.bf16.msra.mxu1 %v6532_v5 }
 0x1ab   :  { %762 = vmatpush1.bf16.msra.mxu0 %v7391_v6 }
 0x1ac   :  { %763 = vmatprep.subr.bf16.mxu0 %v7396_v7  ;;  %v877_v7 = vld [vmem:[#allocation11 + $0x208] sm:$0xff] }
 0x1af   :  { %764 = vmatpush1.bf16.msra.mxu0 %v7394_v8  ;;  %v881_v8 = vld [vmem:[#allocation11 + $0x228] sm:$0xff] }
 0x1b0   :  { %765 = vmatprep.subr.bf16.mxu0 %v7399_v9  ;;  %v932_v9 = vld [vmem:[#allocation11 + $0x3c0] sm:$0xff] }
 0x1b3   :  { %766 = vmatpush1.bf16.msra.mxu0 %v7397_v10  ;;  %v936_v10 = vld [vmem:[#allocation11 + $0x3e0] sm:$0xff] }
 0x1b4   :  { %767 = vmatprep.subr.bf16.mxu0 %v7402_v11  ;;  %v6541_v11 = vcombine.high %v932_v9, %v936_v10 }
 0x1b6   :  { %2420 = vmatprep.subr.bf16.mxu1 %v6541_v11 }
 0x1b7   :  { %768 = vmatpush1.bf16.msra.mxu0 %v7400_v12 }
 0x1b8   :  { %769 = vmatprep.subr.bf16.mxu0 %v7405_v13  ;;  %v6540_v13 = vcombine.low %v932_v9, %v936_v10  ;;  %v953_v9 = vld [vmem:[#allocation11 + $0x468] sm:$0xff] }
 0x1ba   :  { %2421 = vmatpush1.bf16.msra.mxu1 %v6540_v13 }
 0x1bb   :  { %770 = vmatpush1.bf16.msra.mxu0 %v7403_v14  ;;  %v6487_v14 = vcombine.high %v877_v7, %v881_v8 }
 0x1bc   :  { %771 = vmatprep.subr.bf16.mxu0 %v7408_v15  ;;  %v885_v15 = vld [vmem:[#allocation11 + $0x248] sm:$0xff] }
 0x1bf   :  { %772 = vmatpush1.bf16.msra.mxu0 %v7406_v16  ;;  %v889_v16 = vld [vmem:[#allocation11 + $0x268] sm:$0xff] }
 0x1c0   :  { %773 = vmatprep.subr.bf16.mxu0 %v7411_v17  ;;  %v8539_v17 = vld [vmem:[#allocation11 + $0x400] sm:$0xff] }
 0x1c3   :  { %774 = vmatpush1.bf16.msra.mxu0 %v7409_v18  ;;  %v8541_v18 = vld [vmem:[#allocation11 + $0x420] sm:$0xff] }
 0x1c4   :  { %775 = vmatprep.subr.bf16.mxu0 %v7414_v19  ;;  %v8543_v19 = vld [vmem:[#allocation11 + $0x408] sm:$0xff] }
 0x1c7   :  { %776 = vmatpush1.bf16.msra.mxu0 %v7412_v20  ;;  %v6549_v20 = vcombine.high %v8539_v17, %v8541_v18 }
 0x1c8   :  { %777 = vmatprep.subr.bf16.mxu0 %v7417_v21  ;;  %v8547_v21 = vld [vmem:[#allocation11 + $0x428] sm:$0xff] }
 0x1c9   :  { %2433 = vmatprep.subr.bf16.mxu1 %v6549_v20  ;;  %v961_v20 = vld [vmem:[#allocation11 + $0x4a8] sm:$0xff] }
 0x1cb   :  { %778 = vmatpush1.bf16.msra.mxu0 %v7415_v22  ;;  %v6486_v22 = vcombine.low %v877_v7, %v881_v8  ;;  %v952_v7 = vld [vmem:[#allocation11 + $0x460] sm:$0xff]  ;;  %v949_v8 = vld [vmem:[#allocation11 + $0x448] sm:$0xff] }
 0x1cc   :  { %779 = vmatprep.subr.bf16.mxu0 %v7420_v23  ;;  %v6548_v23 = vcombine.low %v8539_v17, %v8541_v18  ;;  %v6559_v13 = vcombine.high %v949_v8, %v953_v9 }
 0x1cf   :  { %780 = vmatpush1.bf16.msra.mxu0 %v7418_v24  ;;  %v6550_v24 = vcombine.low %v8543_v19, %v8547_v21 }
 0x1d0   :  { %781 = vmatprep.subr.bf16.mxu0 %v7423_v25  ;;  %v6495_v25 = vcombine.high %v885_v15, %v889_v16 }
 0x1d3   :  { %782 = vmatpush1.bf16.msra.mxu0 %v7421_v26  ;;  %v893_v26 = vld [vmem:[#allocation11 + $0x288] sm:$0xff] }
 0x1d4   :  { %783 = vmatprep.subr.bf16.mxu0 %v7426_v27  ;;  %v897_v27 = vld [vmem:[#allocation11 + $0x2a8] sm:$0xff] }
 0x1d5   :  { %v6502_v32 = vcombine.low %v893_v26, %v897_v27 }
 0x1d7   :  { %784 = vmatpush1.bf16.msra.mxu0 %v7424_v28  ;;  %v6494_v28 = vcombine.low %v885_v15, %v889_v16  ;;  %v960_v15 = vld [vmem:[#allocation11 + $0x4a0] sm:$0xff]  ;;  %v957_v16 = vld [vmem:[#allocation11 + $0x488] sm:$0xff] }
 0x1d8   :  { %785 = vmatprep.subr.bf16.mxu0 %v7429_v29  ;;  %v6503_v29 = vcombine.high %v893_v26, %v897_v27  ;;  %v6567_v27 = vcombine.high %v957_v16, %v961_v20 }
 0x1db   :  { %786 = vmatpush1.bf16.msra.mxu0 %v7427_v30  ;;  %v901_v30 = vld [vmem:[#allocation11 + $0x2c8] sm:$0xff] }
 0x1dc   :  { %787 = vmatprep.subr.bf16.mxu0 %v7432_v31  ;;  %v905_v31 = vld [vmem:[#allocation11 + $0x2e8] sm:$0xff] }
 0x1dd   :  { %v6511_v33 = vcombine.high %v901_v30, %v905_v31  ;;  %v6510_v37 = vcombine.low %v901_v30, %v905_v31  ;;  %v965_v30 = vld [vmem:[#allocation11 + $0x4c8] sm:$0xff] }
 0x1de   :  { %v969_v31 = vld [vmem:[#allocation11 + $0x4e8] sm:$0xff] }
 0x1df   :  { %788 = vmatpush1.bf16.msra.mxu0 %v7430_v34  ;;  %v909_v34 = vld [vmem:[#allocation11 + $0x308] sm:$0xff]  ;;  %v6575_v18 = vcombine.high %v965_v30, %v969_v31 }
 0x1e0   :  { %2476 = vmatprep.subr.bf16.mxu0 %v6423_v35  ;;  %v913_v35 = vld [vmem:[#allocation11 + $0x328] sm:$0xff] }
 0x1e1   :  { %v6519_v38 = vcombine.high %v909_v34, %v913_v35  ;;  %v6518_v41 = vcombine.low %v909_v34, %v913_v35  ;;  %v6574_v35 = vcombine.low %v965_v30, %v969_v31 }
 0x1e2   :  { %790 = vmatmul.mubr.bf16.vlgmr.msra.gmra.mrb[8].mxu0 %v8535_v0  ;;  %v873_v0 = vld [vmem:[#allocation11 + $0x1e8] sm:$0xff] }
 0x1e3   :  { %2477 = vmatpush1.bf16.msra.mxu0 %v6422_v39  ;;  %v6479_v6 = vcombine.high %v869_v63, %v873_v0  ;;  %v6478_v12 = vcombine.low %v869_v63, %v873_v0  ;;  %v917_v39 = vld [vmem:[#allocation11 + $0x348] sm:$0xff] }
 0x1e4   :  { %2478 = vmatprep.subr.bf16.mxu0 %v6431_v40  ;;  %v921_v40 = vld [vmem:[#allocation11 + $0x368] sm:$0xff] }
 0x1e5   :  { %v6527_v43 = vcombine.high %v917_v39, %v921_v40  ;;  %v6526_v47 = vcombine.low %v917_v39, %v921_v40  ;;  %v980_v39 = vld [vmem:[#allocation11 + $0x540] sm:$0xff] }
 0x1e6   :  { %v984_v40 = vld [vmem:[#allocation11 + $0x560] sm:$0xff] }
 0x1e7   :  { %2479 = vmatpush1.bf16.msra.mxu0 %v6430_v45  ;;  %v925_v45 = vld [vmem:[#allocation11 + $0x388] sm:$0xff] }
 0x1e8   :  { %2480 = vmatprep.subr.bf16.mxu0 %v6439_v46  ;;  %v929_v46 = vld [vmem:[#allocation11 + $0x3a8] sm:$0xff] }
 0x1e9   :  { %v6535_v48 = vcombine.high %v925_v45, %v929_v46  ;;  %v6534_v51 = vcombine.low %v925_v45, %v929_v46 }
 0x1eb   :  { %2481 = vmatpush1.bf16.msra.mxu0 %v6438_v49  ;;  %v933_v49 = vld [vmem:[#allocation11 + $0x3c8] sm:$0xff] }
 0x1ec   :  { %2482 = vmatprep.subr.bf16.mxu0 %v6447_v50  ;;  %v937_v50 = vld [vmem:[#allocation11 + $0x3e8] sm:$0xff] }
 0x1ed   :  { %v6543_v52 = vcombine.high %v933_v49, %v937_v50 }
 0x1ef   :  { %2483 = vmatpush1.bf16.msra.mxu0 %v6446_v53  ;;  %v6542_v53 = vcombine.low %v933_v49, %v937_v50  ;;  %v988_v49 = vld [vmem:[#allocation11 + $0x580] sm:$0xff] }
 0x1f0   :  { %2484 = vmatprep.subr.bf16.mxu0 %v6455_v54  ;;  %v6551_v54 = vcombine.high %v8543_v19, %v8547_v21  ;;  %v972_v19 = vld [vmem:[#allocation11 + $0x500] sm:$0xff] }
 0x1f1   :  { %v976_v21 = vld [vmem:[#allocation11 + $0x520] sm:$0xff] }
 0x1f2   :  { %v6580_v45 = vcombine.low %v972_v19, %v976_v21  ;;  %v992_v50 = vld [vmem:[#allocation11 + $0x5a0] sm:$0xff] }
 0x1f3   :  { %2485 = vmatpush1.bf16.msra.mxu0 %v6454_v57  ;;  %v381_v57 = vrot.slane %v8555_v55, %v8531_v44 }
 0x1f4   :  { %2486 = vmatprep.subr.bf16.mxu0 %v6463_v58 }
 0x1f7   :  { %2487 = vmatpush1.bf16.msra.mxu0 %v6462_v61 }
 0x1f8   :  { %2488 = vmatprep.subr.bf16.mxu0 %v6471_v62 }
 0x1fb   :  { %2489 = vmatpush1.bf16.msra.mxu0 %v6470_v4  ;;  %v948_v4 = vld [vmem:[#allocation11 + $0x440] sm:$0xff] }
 0x1fc   :  { %2490 = vmatprep.subr.bf16.mxu0 %v6479_v6 }
 0x1ff   :  { %2491 = vmatpush1.bf16.msra.mxu0 %v6478_v12  ;;  %v6557_v12 = vcombine.high %v948_v4, %v952_v7 }
 0x200   :  { %2492 = vmatprep.subr.bf16.mxu0 %v6487_v14  ;;  %v956_v14 = vld [vmem:[#allocation11 + $0x480] sm:$0xff] }
 0x201   :  { %v6565_v26 = vcombine.high %v956_v14, %v960_v15 }
 0x203   :  { %2493 = vmatpush1.bf16.msra.mxu0 %v6486_v22  ;;  %v6556_v22 = vcombine.low %v948_v4, %v952_v7  ;;  %v1005_v4 = vld [vmem:[#allocation11 + $0x608] sm:$0xff] }
 0x204   :  { %2494 = vmatprep.subr.bf16.mxu0 %v6495_v25  ;;  %v6558_v25 = vcombine.low %v949_v8, %v953_v9 }
 0x207   :  { %2495 = vmatpush1.bf16.msra.mxu0 %v6494_v28  ;;  %v964_v28 = vld [vmem:[#allocation11 + $0x4c0] sm:$0xff] }
 0x208   :  { %2496 = vmatprep.subr.bf16.mxu0 %v6503_v29  ;;  %v968_v29 = vld [vmem:[#allocation11 + $0x4e0] sm:$0xff] }
 0x209   :  { %v6573_v17 = vcombine.high %v964_v28, %v968_v29  ;;  %v6572_v34 = vcombine.low %v964_v28, %v968_v29  ;;  %v1021_v28 = vld [vmem:[#allocation11 + $0x688] sm:$0xff] }
 0x20a   :  { %v1025_v29 = vld [vmem:[#allocation11 + $0x6a8] sm:$0xff] }
 0x20b   :  { %2497 = vmatpush1.bf16.msra.mxu0 %v6502_v32  ;;  %v6564_v32 = vcombine.low %v956_v14, %v960_v15  ;;  %v1013_v14 = vld [vmem:[#allocation11 + $0x648] sm:$0xff] }
 0x20c   :  { %2498 = vmatprep.subr.bf16.mxu0 %v6511_v33  ;;  %v6566_v33 = vcombine.low %v957_v16, %v961_v20  ;;  %v1017_v15 = vld [vmem:[#allocation11 + $0x668] sm:$0xff] }
 0x20d   :  { %v6622_v31 = vcombine.low %v1013_v14, %v1017_v15 }
 0x20f   :  { %2499 = vmatpush1.bf16.msra.mxu0 %v6510_v37  ;;  %v6581_v37 = vcombine.high %v972_v19, %v976_v21  ;;  %v1029_v19 = vld [vmem:[#allocation11 + $0x6c8] sm:$0xff] }
 0x210   :  { %2500 = vmatprep.subr.bf16.mxu0 %v6519_v38  ;;  %v1033_v21 = vld [vmem:[#allocation11 + $0x6e8] sm:$0xff] }
 0x213   :  { %2501 = vmatpush1.bf16.msra.mxu0 %v6518_v41  ;;  %v981_v41 = vld [vmem:[#allocation11 + $0x548] sm:$0xff] }
 0x214   :  { %2502 = vmatprep.subr.bf16.mxu0 %v6527_v43  ;;  %v985_v43 = vld [vmem:[#allocation11 + $0x568] sm:$0xff] }
 0x217   :  { %2503 = vmatpush1.bf16.msra.mxu0 %v6526_v47  ;;  %v6589_v47 = vcombine.high %v980_v39, %v984_v40 }
 0x218   :  { %2504 = vmatprep.subr.bf16.mxu0 %v6535_v48  ;;  %v6591_v48 = vcombine.high %v981_v41, %v985_v43 }
 0x21b   :  { %2505 = vmatpush1.bf16.msra.mxu0 %v6534_v51  ;;  %v989_v51 = vld [vmem:[#allocation11 + $0x588] sm:$0xff] }
 0x21c   :  { %2506 = vmatprep.subr.bf16.mxu0 %v6543_v52  ;;  %v993_v52 = vld [vmem:[#allocation11 + $0x5a8] sm:$0xff] }
 0x21f   :  { %2507 = vmatpush1.bf16.msra.mxu0 %v6542_v53  ;;  %v6588_v53 = vcombine.low %v980_v39, %v984_v40  ;;  %v1037_v39 = vld [vmem:[#allocation11 + $0x708] sm:$0xff] }
 0x220   :  { %2519 = vmatprep.subr.bf16.mxu0 %v6551_v54  ;;  %v6590_v54 = vcombine.low %v981_v41, %v985_v43  ;;  %v1041_v40 = vld [vmem:[#allocation11 + $0x728] sm:$0xff]  ;;  %v6638_v43 = vcombine.low %v1029_v19, %v1033_v21 }
 0x275   :  { %v748_v58 = vpop.f32.mrb[4].mxu0 }
 0x276   :  { %v749_v59 = vadd.f32 %v748_v58, %v377_v56  ;;  %v750_v60 = vpop.f32.mrb[5].mxu0  ;;  %v996_v58 = vld [vmem:[#allocation11 + $0x5c0] sm:$0xff] }
 0x277   :  { %v751_v61 = vadd.f32 %v750_v60, %v381_v57  ;;  %v752_v62 = vpop.f32.mrb[6].mxu0  ;;  %v997_v60 = vld [vmem:[#allocation11 + $0x5c8] sm:$0xff] }
 0x278   :  { %v753_v63 = vadd.f32 %v752_v62, %v377_v56  ;;  %v754_v0 = vpop.f32.mrb[7].mxu0  ;;  %v800_v2 = vmax.f32 %v749_v59, 0.0  ;;  %v6597_v56 = vcombine.high %v988_v49, %v992_v50  ;;  %v1000_v59 = vld [vmem:[#allocation11 + $0x5e0] sm:$0xff]  ;;  %v6596_v62 = vcombine.low %v988_v49, %v992_v50  ;;  %v1045_v49 = vld [vmem:[#allocation11 + $0x748] sm:$0xff] }
 0x279   :  { %v755_v1 = vadd.f32 %v754_v0, %v381_v57  ;;  %v801_v5 = vmax.f32 %v751_v61, 0.0  ;;  %v6599_v57 = vcombine.high %v989_v51, %v993_v52  ;;  %v1001_v61 = vld [vmem:[#allocation11 + $0x5e8] sm:$0xff]  ;;  %v6605_v0 = vcombine.high %v996_v58, %v1000_v59 }
 0x27a   :  { %v804_v3 = vmax.f32 %v753_v63, 0.0  ;;  %v6598_v63 = vcombine.low %v989_v51, %v993_v52  ;;  %v6606_v7 = vcombine.low %v997_v60, %v1001_v61  ;;  %v1049_v50 = vld [vmem:[#allocation11 + $0x768] sm:$0xff]  ;;  %v6646_v52 = vcombine.low %v1037_v39, %v1041_v40 }
 0x27b   :  { %v805_v6 = vmax.f32 %v755_v1, 0.0  ;;  %v6607_v1 = vcombine.high %v997_v60, %v1001_v61  ;;  %v1053_v60 = vld [vmem:[#allocation11 + $0x788] sm:$0xff] }
 0x27c   :  { %v8561_v10 = vpack.c.bf16 %v804_v3, %v800_v2  ;;  %v1004_v2 = vld [vmem:[#allocation11 + $0x600] sm:$0xff]  ;;  %v1057_v61 = vld [vmem:[#allocation11 + $0x7a8] sm:$0xff] }
 0x27d   :  { %v8563_v11 = vpack.c.bf16 %v805_v6, %v801_v5  ;;  %v1008_v3 = vld [vmem:[#allocation11 + $0x620] sm:$0xff]  ;;  %v1009_v5 = vld [vmem:[#allocation11 + $0x628] sm:$0xff]  ;;  %v6604_v6 = vcombine.low %v996_v58, %v1000_v59  ;;  %v8579_v58 = vsub.s32 3, %v8525_v36 }
 0x27e   :  { %v6613_v8 = vcombine.high %v1004_v2, %v1008_v3  ;;  %v6615_v9 = vcombine.high %v1005_v4, %v1009_v5  ;;  %v6612_v16 = vcombine.low %v1004_v2, %v1008_v3  ;;  %v6614_v20 = vcombine.low %v1005_v4, %v1009_v5  ;;  %v1056_v59 = vld [vmem:[#allocation11 + $0x7a0] sm:$0xff] }
 0x27f   :  { %2422 = vmatprep.mubr.bf16.mxu1 %v8563_v11  ;;  %2508 = vmatprep.mubr.bf16.mxu0 %v8563_v11  ;;  %v6663_v2 = vcombine.high %v1053_v60, %v1057_v61  ;;  %v1060_v3 = vld [vmem:[#allocation11 + $0x7c0] sm:$0xff]  ;;  %v389_v4 = vrot.slane %v8555_v55, %v8579_v58 }
 0x280   :  { %2423 = vmatmul.mubr.bf16.vlgmr.msra.gmra.mrb[0].mxu1 %v8561_v10  ;;  %2509 = vmatmul.mubr.bf16.vlgmr.msra.gmra.mrb[12].mxu0 %v8561_v10  ;;  %v1064_v5 = vld [vmem:[#allocation11 + $0x7e0] sm:$0xff] }
 0x281   :  { %2434 = vmatpush1.bf16.msra.mxu1 %v6548_v23  ;;  %2520 = vmatpush1.bf16.msra.mxu0 %v6550_v24  ;;  %v973_v23 = vld [vmem:[#allocation11 + $0x508] sm:$0xff] }
 0x282   :  { %2435 = vmatprep.subr.bf16.mxu1 %v6557_v12  ;;  %2521 = vmatprep.subr.bf16.mxu0 %v6559_v13  ;;  %v977_v24 = vld [vmem:[#allocation11 + $0x528] sm:$0xff]  ;;  %v1012_v12 = vld [vmem:[#allocation11 + $0x640] sm:$0xff] }
 0x283   :  { %v6583_v38 = vcombine.high %v973_v23, %v977_v24  ;;  %v6582_v46 = vcombine.low %v973_v23, %v977_v24  ;;  %v1016_v13 = vld [vmem:[#allocation11 + $0x660] sm:$0xff]  ;;  %v6630_v24 = vcombine.low %v1021_v28, %v1025_v29 }
 0x284   :  { %v6620_v30 = vcombine.low %v1012_v12, %v1016_v13 }
 0x285   :  { %2436 = vmatpush1.bf16.msra.mxu1 %v6556_v22  ;;  %2522 = vmatpush1.bf16.msra.mxu0 %v6558_v25  ;;  %v6621_v22 = vcombine.high %v1012_v12, %v1016_v13  ;;  %v6623_v25 = vcombine.high %v1013_v14, %v1017_v15  ;;  %v6662_v12 = vcombine.low %v1053_v60, %v1057_v61  ;;  %v843_v60 = vld [vmem:[#allocation11 + $0xf8] sm:$0xff] }
 0x286   :  { %2437 = vmatprep.subr.bf16.mxu1 %v6565_v26  ;;  %2523 = vmatprep.subr.bf16.mxu0 %v6567_v27  ;;  %v1020_v26 = vld [vmem:[#allocation11 + $0x680] sm:$0xff]  ;;  %v6669_v15 = vcombine.high %v1060_v3, %v1064_v5 }
 0x287   :  { %v1024_v27 = vld [vmem:[#allocation11 + $0x6a0] sm:$0xff] }
 0x288   :  { %v6628_v23 = vcombine.low %v1020_v26, %v1024_v27 }
 0x289   :  { %2438 = vmatpush1.bf16.msra.mxu1 %v6564_v32  ;;  %2524 = vmatpush1.bf16.msra.mxu0 %v6566_v33  ;;  %v6629_v32 = vcombine.high %v1020_v26, %v1024_v27  ;;  %v6631_v33 = vcombine.high %v1021_v28, %v1025_v29  ;;  %v818_v26 = vld [vmem:[#allocation11 + $0x30] sm:$0xff]  ;;  %v815_v27 = vld [vmem:[#allocation11 + $0x18] sm:$0xff] }
 0x28a   :  { %2439 = vmatprep.subr.bf16.mxu1 %v6573_v17  ;;  %2525 = vmatprep.subr.bf16.mxu0 %v6575_v18  ;;  %v1028_v17 = vld [vmem:[#allocation11 + $0x6c0] sm:$0xff] }
 0x28b   :  { %v1032_v18 = vld [vmem:[#allocation11 + $0x6e0] sm:$0xff] }
 0x28c   :  { %v6636_v41 = vcombine.low %v1028_v17, %v1032_v18 }
 0x28d   :  { %2440 = vmatpush1.bf16.msra.mxu1 %v6572_v34  ;;  %2526 = vmatpush1.bf16.msra.mxu0 %v6574_v35  ;;  %v6637_v34 = vcombine.high %v1028_v17, %v1032_v18  ;;  %v6639_v35 = vcombine.high %v1029_v19, %v1033_v21 }
 0x28e   :  { %2441 = vmatprep.subr.bf16.mxu1 %v6581_v37  ;;  %2527 = vmatprep.subr.bf16.mxu0 %v6583_v38  ;;  %v1036_v37 = vld [vmem:[#allocation11 + $0x700] sm:$0xff] }
 0x28f   :  { %v1040_v38 = vld [vmem:[#allocation11 + $0x720] sm:$0xff] }
 0x290   :  { %v6644_v51 = vcombine.low %v1036_v37, %v1040_v38 }
 0x291   :  { %2442 = vmatpush1.bf16.msra.mxu1 %v6580_v45  ;;  %2528 = vmatpush1.bf16.msra.mxu0 %v6582_v46  ;;  %v6645_v45 = vcombine.high %v1036_v37, %v1040_v38  ;;  %v6647_v46 = vcombine.high %v1037_v39, %v1041_v40  ;;  %v823_v37 = vld [vmem:[#allocation11 + $0x58] sm:$0xff] }
 0x292   :  { %2443 = vmatprep.subr.bf16.mxu1 %v6589_v47  ;;  %2529 = vmatprep.subr.bf16.mxu0 %v6591_v48  ;;  %v1044_v47 = vld [vmem:[#allocation11 + $0x740] sm:$0xff]  ;;  %v827_v38 = vld [vmem:[#allocation11 + $0x78] sm:$0xff] }
 0x293   :  { %v1048_v48 = vld [vmem:[#allocation11 + $0x760] sm:$0xff] }
 0x295   :  { %2444 = vmatpush1.bf16.msra.mxu1 %v6588_v53  ;;  %2530 = vmatpush1.bf16.msra.mxu0 %v6590_v54  ;;  %v6653_v53 = vcombine.high %v1044_v47, %v1048_v48  ;;  %v6655_v54 = vcombine.high %v1045_v49, %v1049_v50 }
 0x296   :  { %2445 = vmatprep.subr.bf16.mxu1 %v6597_v56  ;;  %2531 = vmatprep.subr.bf16.mxu0 %v6599_v57  ;;  %v8576_v56 = vsub.s32 2, %v8525_v36  ;;  %v1052_v57 = vld [vmem:[#allocation11 + $0x780] sm:$0xff] }
 0x299   :  { %2446 = vmatpush1.bf16.msra.mxu1 %v6596_v62  ;;  %2532 = vmatpush1.bf16.msra.mxu0 %v6598_v63  ;;  %v6652_v62 = vcombine.low %v1044_v47, %v1048_v48  ;;  %v6654_v63 = vcombine.low %v1045_v49, %v1049_v50  ;;  %v834_v47 = vld [vmem:[#allocation11 + $0xb0] sm:$0xff]  ;;  %v831_v48 = vld [vmem:[#allocation11 + $0x98] sm:$0xff] }
 0x29a   :  { %2447 = vmatprep.subr.bf16.mxu1 %v6605_v0  ;;  %2533 = vmatprep.subr.bf16.mxu0 %v6607_v1  ;;  %v385_v0 = vrot.slane %v8555_v55, %v8576_v56  ;;  %v6661_v1 = vcombine.high %v1052_v57, %v1056_v59  ;;  %v819_v55 = vld [vmem:[#allocation11 + $0x38] sm:$0xff] }
 0x29b   :  { %v6427_v19 = vcombine.high %v815_v27, %v819_v55  ;;  %v835_v49 = vld [vmem:[#allocation11 + $0xb8] sm:$0xff] }
 0x29d   :  { %2448 = vmatpush1.bf16.msra.mxu1 %v6604_v6  ;;  %2534 = vmatpush1.bf16.msra.mxu0 %v6606_v7  ;;  %v1061_v6 = vld [vmem:[#allocation11 + $0x7c8] sm:$0xff] }
 0x29e   :  { %2449 = vmatprep.subr.bf16.mxu1 %v6613_v8  ;;  %2535 = vmatprep.subr.bf16.mxu0 %v6615_v9  ;;  %v1065_v7 = vld [vmem:[#allocation11 + $0x7e8] sm:$0xff]  ;;  %v6660_v9 = vcombine.low %v1052_v57, %v1056_v59  ;;  %v842_v57 = vld [vmem:[#allocation11 + $0xf0] sm:$0xff]  ;;  %v839_v59 = vld [vmem:[#allocation11 + $0xd8] sm:$0xff] }
 0x2a1   :  { %2450 = vmatpush1.bf16.msra.mxu1 %v6612_v16  ;;  %2536 = vmatpush1.bf16.msra.mxu0 %v6614_v20  ;;  %v6671_v16 = vcombine.high %v1061_v6, %v1065_v7  ;;  %v814_v20 = vld [vmem:[#allocation11 + $0x10] sm:$0xff] }
 0x2a2   :  { %2451 = vmatprep.subr.bf16.mxu1 %v6621_v22  ;;  %2537 = vmatprep.subr.bf16.mxu0 %v6623_v25  ;;  %v6425_v18 = vcombine.high %v814_v20, %v818_v26  ;;  %v6424_v40 = vcombine.low %v814_v20, %v818_v26  ;;  %v863_v26 = vld [vmem:[#allocation11 + $0x198] sm:$0xff] }
 0x2a5   :  { %2452 = vmatpush1.bf16.msra.mxu1 %v6620_v30  ;;  %2538 = vmatpush1.bf16.msra.mxu0 %v6622_v31  ;;  %v6668_v31 = vcombine.low %v1060_v3, %v1064_v5  ;;  %v851_v3 = vld [vmem:[#allocation11 + $0x138] sm:$0xff]  ;;  %v6450_v5 = vcombine.low %v839_v59, %v843_v60 }
 0x2a6   :  { %2453 = vmatprep.subr.bf16.mxu1 %v6629_v32  ;;  %2539 = vmatprep.subr.bf16.mxu0 %v6631_v33  ;;  %v6670_v32 = vcombine.low %v1061_v6, %v1065_v7 }
 0x2a9   :  { %2454 = vmatpush1.bf16.msra.mxu1 %v6628_v23  ;;  %2540 = vmatpush1.bf16.msra.mxu0 %v6630_v24  ;;  %v822_v24 = vld [vmem:[#allocation11 + $0x50] sm:$0xff] }
 0x2aa   :  { %2455 = vmatprep.subr.bf16.mxu1 %v6637_v34  ;;  %2541 = vmatprep.subr.bf16.mxu0 %v6639_v35  ;;  %v826_v35 = vld [vmem:[#allocation11 + $0x70] sm:$0xff] }
 0x2ab   :  { %v6432_v50 = vcombine.low %v822_v24, %v826_v35 }
 0x2ad   :  { %2456 = vmatpush1.bf16.msra.mxu1 %v6636_v41  ;;  %2542 = vmatpush1.bf16.msra.mxu0 %v6638_v43  ;;  %v6426_v41 = vcombine.low %v815_v27, %v819_v55  ;;  %v6433_v43 = vcombine.high %v822_v24, %v826_v35  ;;  %v867_v27 = vld [vmem:[#allocation11 + $0x1b8] sm:$0xff]  ;;  %v878_v24 = vld [vmem:[#allocation11 + $0x210] sm:$0xff] }
 0x2ae   :  { %2457 = vmatprep.subr.bf16.mxu1 %v6645_v45  ;;  %2543 = vmatprep.subr.bf16.mxu0 %v6647_v46  ;;  %v6435_v45 = vcombine.high %v823_v37, %v827_v38  ;;  %v830_v46 = vld [vmem:[#allocation11 + $0x90] sm:$0xff] }
 0x2af   :  { %v6440_v61 = vcombine.low %v830_v46, %v834_v47  ;;  %v882_v35 = vld [vmem:[#allocation11 + $0x230] sm:$0xff] }
 0x2b1   :  { %2458 = vmatpush1.bf16.msra.mxu1 %v6644_v51  ;;  %2544 = vmatpush1.bf16.msra.mxu0 %v6646_v52  ;;  %v6434_v51 = vcombine.low %v823_v37, %v827_v38  ;;  %v6441_v52 = vcombine.high %v830_v46, %v834_v47  ;;  %v879_v37 = vld [vmem:[#allocation11 + $0x218] sm:$0xff]  ;;  %v886_v46 = vld [vmem:[#allocation11 + $0x250] sm:$0xff] }
 0x2b2   :  { %2459 = vmatprep.subr.bf16.mxu1 %v6653_v53  ;;  %2545 = vmatprep.subr.bf16.mxu0 %v6655_v54  ;;  %v6443_v53 = vcombine.high %v831_v48, %v835_v49  ;;  %v838_v54 = vld [vmem:[#allocation11 + $0xd0] sm:$0xff]  ;;  %v883_v38 = vld [vmem:[#allocation11 + $0x238] sm:$0xff] }
 0x2b3   :  { %v890_v47 = vld [vmem:[#allocation11 + $0x270] sm:$0xff] }
 0x2b5   :  { %v791_v8 = vpop.f32.mrb[8].mxu0  ;;  %2460 = vmatpush1.bf16.msra.mxu1 %v6652_v62  ;;  %2546 = vmatpush1.bf16.msra.mxu0 %v6654_v63  ;;  %v6442_v62 = vcombine.low %v831_v48, %v835_v49  ;;  %v6449_v63 = vcombine.high %v838_v54, %v842_v57  ;;  %v887_v48 = vld [vmem:[#allocation11 + $0x258] sm:$0xff] }
 0x2b6   :  { %v792_v13 = vadd.f32 %v791_v8, %v385_v0  ;;  %v793_v14 = vpop.f32.mrb[9].mxu0  ;;  %2461 = vmatprep.subr.bf16.mxu1 %v6661_v1  ;;  %2547 = vmatprep.subr.bf16.mxu0 %v6663_v2  ;;  %v846_v1 = vld [vmem:[#allocation11 + $0x110] sm:$0xff]  ;;  %v891_v49 = vld [vmem:[#allocation11 + $0x278] sm:$0xff] }
 0x2b7   :  { %v794_v22 = vadd.f32 %v793_v14, %v389_v4  ;;  %v795_v25 = vpop.f32.mrb[10].mxu0  ;;  %v850_v2 = vld [vmem:[#allocation11 + $0x130] sm:$0xff] }
 0x2b8   :  { %v796_v28 = vadd.f32 %v795_v25, %v385_v0  ;;  %v797_v29 = vpop.f32.mrb[11].mxu0  ;;  %v802_v33 = vmax.f32 %v792_v13, 0.0  ;;  %v6451_v0 = vcombine.high %v839_v59, %v843_v60  ;;  %v6457_v6 = vcombine.high %v846_v1, %v850_v2  ;;  %v854_v8 = vld [vmem:[#allocation11 + $0x150] sm:$0xff]  ;;  %v859_v13 = vld [vmem:[#allocation11 + $0x178] sm:$0xff] }
 0x2b9   :  { %v798_v30 = vadd.f32 %v797_v29, %v389_v4  ;;  %2462 = vmatpush1.bf16.msra.mxu1 %v6660_v9  ;;  %2548 = vmatpush1.bf16.msra.mxu0 %v6662_v12  ;;  %v803_v21 = vmax.f32 %v794_v22, 0.0  ;;  %v6448_v4 = vcombine.low %v838_v54, %v842_v57  ;;  %v858_v9 = vld [vmem:[#allocation11 + $0x170] sm:$0xff]  ;;  %v855_v12 = vld [vmem:[#allocation11 + $0x158] sm:$0xff]  ;;  %v6456_v14 = vcombine.low %v846_v1, %v850_v2 }
 0x2ba   :  { %v806_v17 = vmax.f32 %v796_v28, 0.0  ;;  %2463 = vmatprep.subr.bf16.mxu1 %v6669_v15  ;;  %2549 = vmatprep.subr.bf16.mxu0 %v6671_v16  ;;  %v6465_v16 = vcombine.high %v854_v8, %v858_v9  ;;  %v6467_v20 = vcombine.high %v855_v12, %v859_v13  ;;  %v862_v22 = vld [vmem:[#allocation11 + $0x190] sm:$0xff]  ;;  %v6464_v55 = vcombine.low %v854_v8, %v858_v9  ;;  %v895_v59 = vld [vmem:[#allocation11 + $0x298] sm:$0xff] }
 0x2bb   :  { %v807_v23 = vmax.f32 %v798_v30, 0.0  ;;  %v866_v25 = vld [vmem:[#allocation11 + $0x1b0] sm:$0xff]  ;;  %v6466_v28 = vcombine.low %v855_v12, %v859_v13  ;;  %v6475_v30 = vcombine.high %v863_v26, %v867_v27  ;;  %v899_v60 = vld [vmem:[#allocation11 + $0x2b8] sm:$0xff] }
 0x2bc   :  { %v8585_v34 = vpack.c.bf16 %v806_v17, %v802_v33  ;;  %v6473_v29 = vcombine.high %v862_v22, %v866_v25  ;;  %v871_v33 = vld [vmem:[#allocation11 + $0x1d8] sm:$0xff]  ;;  %v894_v54 = vld [vmem:[#allocation11 + $0x290] sm:$0xff] }
 0x2bd   :  { %v8587_v39 = vpack.c.bf16 %v807_v23, %v803_v21  ;;  %2464 = vmatpush1.bf16.msra.mxu1 %v6668_v31  ;;  %2550 = vmatpush1.bf16.msra.mxu0 %v6670_v32  ;;  %v870_v31 = vld [vmem:[#allocation11 + $0x1d0] sm:$0xff]  ;;  %v875_v17 = vld [vmem:[#allocation11 + $0x1f8] sm:$0xff] }
 0x2be   :  { %2562 = vmatprep.subr.bf16.mxu1 %v6425_v18  ;;  %2648 = vmatprep.subr.bf16.mxu0 %v6427_v19  ;;  %v874_v32 = vld [vmem:[#allocation11 + $0x1f0] sm:$0xff]  ;;  %v6472_v18 = vcombine.low %v862_v22, %v866_v25  ;;  %v6474_v19 = vcombine.low %v863_v26, %v867_v27  ;;  %v6483_v23 = vcombine.high %v871_v33, %v875_v17  ;;  %v911_v12 = vld [vmem:[#allocation11 + $0x318] sm:$0xff] }
 0x2bf   :  { %2465 = vmatprep.mubr.bf16.mxu1 %v8587_v39  ;;  %2551 = vmatprep.mubr.bf16.mxu0 %v8587_v39  ;;  %v6481_v21 = vcombine.high %v870_v31, %v874_v32  ;;  %v898_v57 = vld [vmem:[#allocation11 + $0x2b0] sm:$0xff]  ;;  %v915_v13 = vld [vmem:[#allocation11 + $0x338] sm:$0xff] }
 0x2c0   :  { %2466 = vmatmul.mubr.bf16.vlgmr.msra.gmra.mrb[0].mxu1 %v8585_v34  ;;  %2552 = vmatmul.mubr.bf16.vlgmr.msra.gmra.mrb[12].mxu0 %v8585_v34  ;;  %v902_v1 = vld [vmem:[#allocation11 + $0x2d0] sm:$0xff]  ;;  %v919_v26 = vld [vmem:[#allocation11 + $0x358] sm:$0xff] }
 0x2c1   :  { %2563 = vmatpush1.bf16.msra.mxu1 %v6424_v40  ;;  %2594 = vmatprep.mubr.bf16.mxu1 %v8563_v11  ;;  %v6480_v40 = vcombine.low %v870_v31, %v874_v32  ;;  %v906_v2 = vld [vmem:[#allocation11 + $0x2f0] sm:$0xff]  ;;  %v923_v27 = vld [vmem:[#allocation11 + $0x378] sm:$0xff] }
 0x2c2   :  { %2649 = vmatpush1.bf16.msra.mxu0 %v6426_v41  ;;  %2680 = vmatprep.mubr.bf16.mxu0 %v8563_v11  ;;  %v847_v11 = vld [vmem:[#allocation11 + $0x118] sm:$0xff]  ;;  %v6482_v41 = vcombine.low %v871_v33, %v875_v17  ;;  %v910_v8 = vld [vmem:[#allocation11 + $0x310] sm:$0xff] }
 0x2c3   :  { %2564 = vmatprep.subr.bf16.mxu1 %v6433_v43  ;;  %2650 = vmatprep.subr.bf16.mxu0 %v6435_v45  ;;  %v6459_v7 = vcombine.high %v847_v11, %v851_v3  ;;  %v6458_v15 = vcombine.low %v847_v11, %v851_v3  ;;  %v6489_v43 = vcombine.high %v878_v24, %v882_v35  ;;  %v903_v11 = vld [vmem:[#allocation11 + $0x2d8] sm:$0xff]  ;;  %v914_v9 = vld [vmem:[#allocation11 + $0x330] sm:$0xff] }
 0x2c4   :  { %v6491_v45 = vcombine.high %v879_v37, %v883_v38  ;;  %v907_v3 = vld [vmem:[#allocation11 + $0x2f8] sm:$0xff]  ;;  %v918_v22 = vld [vmem:[#allocation11 + $0x350] sm:$0xff] }
 0x2c5   :  { %2565 = vmatpush1.bf16.msra.mxu1 %v6432_v50  ;;  %v6488_v50 = vcombine.low %v878_v24, %v882_v35  ;;  %v922_v25 = vld [vmem:[#allocation11 + $0x370] sm:$0xff]  ;;  %v927_v33 = vld [vmem:[#allocation11 + $0x398] sm:$0xff] }
 0x2c6   :  { %2651 = vmatpush1.bf16.msra.mxu0 %v6434_v51  ;;  %2566 = vmatprep.subr.bf16.mxu1 %v6441_v52  ;;  %v6490_v51 = vcombine.low %v879_v37, %v883_v38  ;;  %v6497_v52 = vcombine.high %v886_v46, %v890_v47  ;;  %v926_v31 = vld [vmem:[#allocation11 + $0x390] sm:$0xff]  ;;  %v931_v17 = vld [vmem:[#allocation11 + $0x3b8] sm:$0xff] }
 0x2c7   :  { %2652 = vmatprep.subr.bf16.mxu0 %v6443_v53  ;;  %v6499_v53 = vcombine.high %v887_v48, %v891_v49  ;;  %v930_v32 = vld [vmem:[#allocation11 + $0x3b0] sm:$0xff]  ;;  %v935_v37 = vld [vmem:[#allocation11 + $0x3d8] sm:$0xff] }
 0x2c8   :  { %v934_v24 = vld [vmem:[#allocation11 + $0x3d0] sm:$0xff]  ;;  %v939_v38 = vld [vmem:[#allocation11 + $0x3f8] sm:$0xff] }
 0x2c9   :  { %2567 = vmatpush1.bf16.msra.mxu1 %v6440_v61  ;;  %v6496_v61 = vcombine.low %v886_v46, %v890_v47  ;;  %v938_v35 = vld [vmem:[#allocation11 + $0x3f0] sm:$0xff] }
 0x2ca   :  { %2653 = vmatpush1.bf16.msra.mxu0 %v6442_v62  ;;  %2568 = vmatprep.subr.bf16.mxu1 %v6449_v63  ;;  %v6498_v62 = vcombine.low %v887_v48, %v891_v49  ;;  %v6505_v63 = vcombine.high %v894_v54, %v898_v57  ;;  %v942_v46 = vld [vmem:[#allocation11 + $0x410] sm:$0xff]  ;;  %v943_v48 = vld [vmem:[#allocation11 + $0x418] sm:$0xff] }
 0x2cb   :  { %2654 = vmatprep.subr.bf16.mxu0 %v6451_v0  ;;  %v6507_v0 = vcombine.high %v895_v59, %v899_v60  ;;  %v946_v47 = vld [vmem:[#allocation11 + $0x430] sm:$0xff]  ;;  %v947_v49 = vld [vmem:[#allocation11 + $0x438] sm:$0xff] }
 0x2cd   :  { %2569 = vmatpush1.bf16.msra.mxu1 %v6448_v4  ;;  %v6504_v4 = vcombine.low %v894_v54, %v898_v57  ;;  %v950_v54 = vld [vmem:[#allocation11 + $0x450] sm:$0xff] }
 0x2ce   :  { %2655 = vmatpush1.bf16.msra.mxu0 %v6450_v5  ;;  %2570 = vmatprep.subr.bf16.mxu1 %v6457_v6  ;;  %v6506_v5 = vcombine.low %v895_v59, %v899_v60  ;;  %v6513_v6 = vcombine.high %v902_v1, %v906_v2  ;;  %v954_v57 = vld [vmem:[#allocation11 + $0x470] sm:$0xff]  ;;  %v6552_v59 = vcombine.low %v942_v46, %v946_v47  ;;  %v951_v60 = vld [vmem:[#allocation11 + $0x458] sm:$0xff] }
 0x2cf   :  { %2656 = vmatprep.subr.bf16.mxu0 %v6459_v7  ;;  %v6515_v7 = vcombine.high %v903_v11, %v907_v3 }
 0x2d1   :  { %2571 = vmatpush1.bf16.msra.mxu1 %v6456_v14  ;;  %v6512_v14 = vcombine.low %v902_v1, %v906_v2  ;;  %v962_v1 = vld [vmem:[#allocation11 + $0x4b0] sm:$0xff] }
 0x2d2   :  { %2657 = vmatpush1.bf16.msra.mxu0 %v6458_v15  ;;  %2572 = vmatprep.subr.bf16.mxu1 %v6465_v16  ;;  %v6514_v15 = vcombine.low %v903_v11, %v907_v3  ;;  %v6521_v16 = vcombine.high %v910_v8, %v914_v9  ;;  %v959_v11 = vld [vmem:[#allocation11 + $0x498] sm:$0xff] }
 0x2d3   :  { %2658 = vmatprep.subr.bf16.mxu0 %v6467_v20  ;;  %v6523_v20 = vcombine.high %v911_v12, %v915_v13  ;;  %v963_v3 = vld [vmem:[#allocation11 + $0x4b8] sm:$0xff] }
 0x2d5   :  { %2573 = vmatpush1.bf16.msra.mxu1 %v6464_v55  ;;  %v6520_v55 = vcombine.low %v910_v8, %v914_v9  ;;  %v966_v8 = vld [vmem:[#allocation11 + $0x4d0] sm:$0xff] }
 0x2d6   :  { %2659 = vmatpush1.bf16.msra.mxu0 %v6466_v28  ;;  %2574 = vmatprep.subr.bf16.mxu1 %v6473_v29  ;;  %v6522_v28 = vcombine.low %v911_v12, %v915_v13  ;;  %v6529_v29 = vcombine.high %v918_v22, %v922_v25  ;;  %v970_v9 = vld [vmem:[#allocation11 + $0x4f0] sm:$0xff]  ;;  %v967_v12 = vld [vmem:[#allocation11 + $0x4d8] sm:$0xff] }
 0x2d7   :  { %2660 = vmatprep.subr.bf16.mxu0 %v6475_v30  ;;  %v6531_v30 = vcombine.high %v919_v26, %v923_v27  ;;  %v971_v13 = vld [vmem:[#allocation11 + $0x4f8] sm:$0xff] }
 0x2d9   :  { %2575 = vmatpush1.bf16.msra.mxu1 %v6472_v18  ;;  %v6528_v18 = vcombine.low %v918_v22, %v922_v25  ;;  %v978_v22 = vld [vmem:[#allocation11 + $0x530] sm:$0xff]  ;;  %v975_v25 = vld [vmem:[#allocation11 + $0x518] sm:$0xff] }
 0x2da   :  { %2661 = vmatpush1.bf16.msra.mxu0 %v6474_v19  ;;  %2576 = vmatprep.subr.bf16.mxu1 %v6481_v21  ;;  %v6530_v19 = vcombine.low %v919_v26, %v923_v27  ;;  %v6537_v21 = vcombine.high %v926_v31, %v930_v32  ;;  %v979_v26 = vld [vmem:[#allocation11 + $0x538] sm:$0xff]  ;;  %v6578_v27 = vcombine.low %v967_v12, %v971_v13 }
 0x2db   :  { %2662 = vmatprep.subr.bf16.mxu0 %v6483_v23  ;;  %v6539_v23 = vcombine.high %v927_v33, %v931_v17 }
 0x2dd   :  { %2577 = vmatpush1.bf16.msra.mxu1 %v6480_v40  ;;  %v6536_v40 = vcombine.low %v926_v31, %v930_v32  ;;  %v983_v31 = vld [vmem:[#allocation11 + $0x558] sm:$0xff] }
 0x2de   :  { %2663 = vmatpush1.bf16.msra.mxu0 %v6482_v41  ;;  %2578 = vmatprep.subr.bf16.mxu1 %v6489_v43  ;;  %v6538_v41 = vcombine.low %v927_v33, %v931_v17  ;;  %v6545_v43 = vcombine.high %v934_v24, %v938_v35  ;;  %v987_v32 = vld [vmem:[#allocation11 + $0x578] sm:$0xff]  ;;  %v6586_v17 = vcombine.low %v975_v25, %v979_v26 }
 0x2df   :  { %2664 = vmatprep.subr.bf16.mxu0 %v6491_v45  ;;  %v6547_v45 = vcombine.high %v935_v37, %v939_v38 }
 0x2e1   :  { %2579 = vmatpush1.bf16.msra.mxu1 %v6488_v50  ;;  %v6544_v50 = vcombine.low %v934_v24, %v938_v35  ;;  %v991_v24 = vld [vmem:[#allocation11 + $0x598] sm:$0xff] }
 0x2e2   :  { %2665 = vmatpush1.bf16.msra.mxu0 %v6490_v51  ;;  %2580 = vmatprep.subr.bf16.mxu1 %v6497_v52  ;;  %v6546_v51 = vcombine.low %v935_v37, %v939_v38  ;;  %v6553_v52 = vcombine.high %v942_v46, %v946_v47  ;;  %v995_v35 = vld [vmem:[#allocation11 + $0x5b8] sm:$0xff]  ;;  %v6594_v38 = vcombine.low %v983_v31, %v987_v32 }
 0x2e3   :  { %2666 = vmatprep.subr.bf16.mxu0 %v6499_v53  ;;  %v6555_v53 = vcombine.high %v943_v48, %v947_v49  ;;  %v999_v46 = vld [vmem:[#allocation11 + $0x5d8] sm:$0xff] }
 0x2e4   :  { %v1003_v47 = vld [vmem:[#allocation11 + $0x5f8] sm:$0xff] }
 0x2e5   :  { %2581 = vmatpush1.bf16.msra.mxu1 %v6496_v61  ;;  %v955_v61 = vld [vmem:[#allocation11 + $0x478] sm:$0xff] }
 0x2e6   :  { %2667 = vmatpush1.bf16.msra.mxu0 %v6498_v62  ;;  %2582 = vmatprep.subr.bf16.mxu1 %v6505_v63  ;;  %v6554_v62 = vcombine.low %v943_v48, %v947_v49  ;;  %v6561_v63 = vcombine.high %v950_v54, %v954_v57  ;;  %v6563_v2 = vcombine.high %v951_v60, %v955_v61 }
 0x2e7   :  { %2668 = vmatprep.subr.bf16.mxu0 %v6507_v0  ;;  %v958_v0 = vld [vmem:[#allocation11 + $0x490] sm:$0xff]  ;;  %v6602_v49 = vcombine.low %v991_v24, %v995_v35 }
 0x2e9   :  { %2583 = vmatpush1.bf16.msra.mxu1 %v6504_v4  ;;  %v6560_v4 = vcombine.low %v950_v54, %v954_v57  ;;  %v1007_v54 = vld [vmem:[#allocation11 + $0x618] sm:$0xff] }
 0x2ea   :  { %2669 = vmatpush1.bf16.msra.mxu0 %v6506_v5  ;;  %2584 = vmatprep.subr.bf16.mxu1 %v6513_v6  ;;  %v6562_v5 = vcombine.low %v951_v60, %v955_v61  ;;  %v6569_v6 = vcombine.high %v958_v0, %v962_v1  ;;  %v1011_v57 = vld [vmem:[#allocation11 + $0x638] sm:$0xff]  ;;  %v6610_v60 = vcombine.low %v999_v46, %v1003_v47 }
 0x2eb   :  { %2670 = vmatprep.subr.bf16.mxu0 %v6515_v7  ;;  %v6571_v7 = vcombine.high %v959_v11, %v963_v3 }
 0x2ed   :  { %2585 = vmatpush1.bf16.msra.mxu1 %v6512_v14  ;;  %v6568_v14 = vcombine.low %v958_v0, %v962_v1  ;;  %v1018_v0 = vld [vmem:[#allocation11 + $0x670] sm:$0xff]  ;;  %v1015_v1 = vld [vmem:[#allocation11 + $0x658] sm:$0xff] }
 0x2ee   :  { %2671 = vmatpush1.bf16.msra.mxu0 %v6514_v15  ;;  %2586 = vmatprep.subr.bf16.mxu1 %v6521_v16  ;;  %v6577_v15 = vcombine.high %v966_v8, %v970_v9  ;;  %v6579_v16 = vcombine.high %v967_v12, %v971_v13 }
 0x2ef   :  { %2672 = vmatprep.subr.bf16.mxu0 %v6523_v20  ;;  %v974_v20 = vld [vmem:[#allocation11 + $0x510] sm:$0xff] }
 0x2f0   :  { %v6584_v33 = vcombine.low %v974_v20, %v978_v22 }
 0x2f1   :  { %2587 = vmatpush1.bf16.msra.mxu1 %v6520_v55  ;;  %v6585_v55 = vcombine.high %v974_v20, %v978_v22  ;;  %v1031_v20 = vld [vmem:[#allocation11 + $0x6d8] sm:$0xff] }
 0x2f2   :  { %2673 = vmatpush1.bf16.msra.mxu0 %v6522_v28  ;;  %2588 = vmatprep.subr.bf16.mxu1 %v6529_v29  ;;  %v6587_v28 = vcombine.high %v975_v25, %v979_v26  ;;  %v982_v29 = vld [vmem:[#allocation11 + $0x550] sm:$0xff]  ;;  %v1035_v22 = vld [vmem:[#allocation11 + $0x6f8] sm:$0xff] }
 0x2f3   :  { %2674 = vmatprep.subr.bf16.mxu0 %v6531_v30  ;;  %v986_v30 = vld [vmem:[#allocation11 + $0x570] sm:$0xff] }
 0x2f4   :  { %v6592_v37 = vcombine.low %v982_v29, %v986_v30 }
 0x2f5   :  { %2589 = vmatpush1.bf16.msra.mxu1 %v6528_v18  ;;  %v6593_v18 = vcombine.high %v982_v29, %v986_v30  ;;  %v1039_v29 = vld [vmem:[#allocation11 + $0x718] sm:$0xff] }
 0x2f6   :  { %2675 = vmatpush1.bf16.msra.mxu0 %v6530_v19  ;;  %2590 = vmatprep.subr.bf16.mxu1 %v6537_v21  ;;  %v6595_v19 = vcombine.high %v983_v31, %v987_v32  ;;  %v990_v21 = vld [vmem:[#allocation11 + $0x590] sm:$0xff]  ;;  %v1043_v30 = vld [vmem:[#allocation11 + $0x738] sm:$0xff]  ;;  %v6642_v32 = vcombine.low %v1031_v20, %v1035_v22 }
 0x2f7   :  { %2676 = vmatprep.subr.bf16.mxu0 %v6539_v23  ;;  %v994_v23 = vld [vmem:[#allocation11 + $0x5b0] sm:$0xff] }
 0x2f8   :  { %v6600_v48 = vcombine.low %v990_v21, %v994_v23 }
 0x2f9   :  { %2591 = vmatpush1.bf16.msra.mxu1 %v6536_v40  ;;  %v6601_v40 = vcombine.high %v990_v21, %v994_v23  ;;  %v1047_v21 = vld [vmem:[#allocation11 + $0x758] sm:$0xff] }
 0x2fa   :  { %2677 = vmatpush1.bf16.msra.mxu0 %v6538_v41  ;;  %2592 = vmatprep.subr.bf16.mxu1 %v6545_v43  ;;  %v6603_v41 = vcombine.high %v991_v24, %v995_v35  ;;  %v998_v43 = vld [vmem:[#allocation11 + $0x5d0] sm:$0xff]  ;;  %v1051_v23 = vld [vmem:[#allocation11 + $0x778] sm:$0xff]  ;;  %v6650_v35 = vcombine.low %v1039_v29, %v1043_v30 }
 0x2fb   :  { %2678 = vmatprep.subr.bf16.mxu0 %v6547_v45  ;;  %v1002_v45 = vld [vmem:[#allocation11 + $0x5f0] sm:$0xff] }
 0x2fd   :  { %2593 = vmatpush1.bf16.msra.mxu1 %v6544_v50  ;;  %v6609_v50 = vcombine.high %v998_v43, %v1002_v45 }
 0x2fe   :  { %2679 = vmatpush1.bf16.msra.mxu0 %v6546_v51  ;;  %2605 = vmatprep.subr.bf16.mxu1 %v6553_v52  ;;  %v6611_v51 = vcombine.high %v999_v46, %v1003_v47  ;;  %v1006_v52 = vld [vmem:[#allocation11 + $0x610] sm:$0xff]  ;;  %v6658_v47 = vcombine.low %v1047_v21, %v1051_v23 }
 0x2ff   :  { %2691 = vmatprep.subr.bf16.mxu0 %v6555_v53  ;;  %v1010_v53 = vld [vmem:[#allocation11 + $0x630] sm:$0xff] }
 0x300   :  { %2595 = vmatmul.mubr.bf16.vlgmr.msra.gmra.mrb[4].mxu1 %v8561_v10  ;;  %v6617_v61 = vcombine.high %v1006_v52, %v1010_v53 }
 0x301   :  { %2681 = vmatmul.mubr.bf16.vlgmr.msra.gmra.mrb[16].mxu0 %v8561_v10  ;;  %2606 = vmatpush1.bf16.msra.mxu1 %v6552_v59  ;;  %v6570_v10 = vcombine.low %v959_v11, %v963_v3  ;;  %v6608_v59 = vcombine.low %v998_v43, %v1002_v45  ;;  %v6616_v11 = vcombine.low %v1006_v52, %v1010_v53  ;;  %v1055_v43 = vld [vmem:[#allocation11 + $0x798] sm:$0xff] }
 0x302   :  { %2637 = vmatprep.mubr.bf16.mxu1 %v8587_v39  ;;  %2692 = vmatpush1.bf16.msra.mxu0 %v6554_v62  ;;  %v6619_v62 = vcombine.high %v1007_v54, %v1011_v57  ;;  %v6618_v3 = vcombine.low %v1007_v54, %v1011_v57  ;;  %v1059_v45 = vld [vmem:[#allocation11 + $0x7b8] sm:$0xff] }
 0x303   :  { %2723 = vmatprep.mubr.bf16.mxu0 %v8587_v39  ;;  %2607 = vmatprep.subr.bf16.mxu1 %v6561_v63  ;;  %v6576_v39 = vcombine.low %v966_v8, %v970_v9  ;;  %v1014_v63 = vld [vmem:[#allocation11 + $0x650] sm:$0xff]  ;;  %v1023_v8 = vld [vmem:[#allocation11 + $0x698] sm:$0xff]  ;;  %v6666_v57 = vcombine.low %v1055_v43, %v1059_v45 }
 0x304   :  { %2693 = vmatprep.subr.bf16.mxu0 %v6563_v2  ;;  %v1019_v2 = vld [vmem:[#allocation11 + $0x678] sm:$0xff]  ;;  %v6624_v12 = vcombine.low %v1014_v63, %v1018_v0 }
 0x305   :  { %2608 = vmatpush1.bf16.msra.mxu1 %v6560_v4  ;;  %v6625_v4 = vcombine.high %v1014_v63, %v1018_v0  ;;  %v1027_v9 = vld [vmem:[#allocation11 + $0x6b8] sm:$0xff]  ;;  %v6626_v13 = vcombine.low %v1015_v1, %v1019_v2  ;;  %v7435_v63 = vld [vmem:[#allocation14 + $0x4] ss:$28 sps:$4 sm:$0xff]   ;;  %v7438_v0 = vld [vmem:[#allocation14 + $0xc] ss:$28 sps:$4 sm:$0xff]  }
 0x306   :  { %2694 = vmatpush1.bf16.msra.mxu0 %v6562_v5  ;;  %2609 = vmatprep.subr.bf16.mxu1 %v6569_v6  ;;  %v6627_v5 = vcombine.high %v1015_v1, %v1019_v2  ;;  %v1022_v6 = vld [vmem:[#allocation11 + $0x690] sm:$0xff]  ;;  %v6634_v26 = vcombine.low %v1023_v8, %v1027_v9  ;;  %v1063_v52 = vld [vmem:[#allocation11 + $0x7d8] sm:$0xff]  ;;  %v7433_v1 = vld [vmem:[#allocation14] ss:$28 sps:$4 sm:$0xff]  }
 0x307   :  { %2695 = vmatprep.subr.bf16.mxu0 %v6571_v7  ;;  %v1026_v7 = vld [vmem:[#allocation11 + $0x6b0] sm:$0xff]  ;;  %v1067_v53 = vld [vmem:[#allocation11 + $0x7f8] sm:$0xff] }
 0x308   :  { %v6632_v25 = vcombine.low %v1022_v6, %v1026_v7  ;;  %v7436_v2 = vld [vmem:[#allocation14 + $0x8] ss:$28 sps:$4 sm:$0xff]  }
 0x309   :  { %2610 = vmatpush1.bf16.msra.mxu1 %v6568_v14  ;;  %v6633_v14 = vcombine.high %v1022_v6, %v1026_v7  ;;  %v7447_v6 = vld [vmem:[#allocation14 + $0x74] ss:$28 sps:$4 sm:$0xff]   ;;  %v7450_v7 = vld [vmem:[#allocation14 + $0x7c] ss:$28 sps:$4 sm:$0xff]  }
 0x30a   :  { %2696 = vmatpush1.bf16.msra.mxu0 %v6570_v10  ;;  %2611 = vmatprep.subr.bf16.mxu1 %v6577_v15  ;;  %v6635_v10 = vcombine.high %v1023_v8, %v1027_v9  ;;  %v1030_v15 = vld [vmem:[#allocation11 + $0x6d0] sm:$0xff]  ;;  %v7448_v9 = vld [vmem:[#allocation14 + $0x78] ss:$28 sps:$4 sm:$0xff]  }
 0x30b   :  { %2697 = vmatprep.subr.bf16.mxu0 %v6579_v16  ;;  %v1034_v16 = vld [vmem:[#allocation11 + $0x6f0] sm:$0xff] }
 0x30c   :  { %v6640_v31 = vcombine.low %v1030_v15, %v1034_v16  ;;  %v7445_v8 = vld [vmem:[#allocation14 + $0x70] ss:$28 sps:$4 sm:$0xff]  }
 0x30d   :  { %2612 = vmatpush1.bf16.msra.mxu1 %v6576_v39  ;;  %v6641_v39 = vcombine.high %v1030_v15, %v1034_v16  ;;  %v7462_v15 = vld [vmem:[#allocation14 + $0xec] ss:$28 sps:$4 sm:$0xff]   ;;  %v7457_v16 = vld [vmem:[#allocation14 + $0xe0] ss:$28 sps:$4 sm:$0xff]  }
 0x30e   :  { %2698 = vmatpush1.bf16.msra.mxu0 %v6578_v27  ;;  %2613 = vmatprep.subr.bf16.mxu1 %v6585_v55  ;;  %v6643_v27 = vcombine.high %v1031_v20, %v1035_v22  ;;  %v1038_v55 = vld [vmem:[#allocation11 + $0x710] sm:$0xff]  ;;  %v7465_v22 = vld [vmem:[#allocation14 + $0x11c] ss:$28 sps:$4 sm:$0xff]  }
 0x30f   :  { %2699 = vmatprep.subr.bf16.mxu0 %v6587_v28  ;;  %v1042_v28 = vld [vmem:[#allocation11 + $0x730] sm:$0xff] }
 0x310   :  { %v6648_v24 = vcombine.low %v1038_v55, %v1042_v28  ;;  %v7460_v20 = vld [vmem:[#allocation14 + $0xe8] ss:$28 sps:$4 sm:$0xff]  }
 0x311   :  { %2614 = vmatpush1.bf16.msra.mxu1 %v6584_v33  ;;  %v6649_v33 = vcombine.high %v1038_v55, %v1042_v28  ;;  %v7474_v55 = vld [vmem:[#allocation14 + $0x15c] ss:$28 sps:$4 sm:$0xff]   ;;  %v7469_v28 = vld [vmem:[#allocation14 + $0x150] ss:$28 sps:$4 sm:$0xff]  }
 0x312   :  { %2700 = vmatpush1.bf16.msra.mxu0 %v6586_v17  ;;  %2615 = vmatprep.subr.bf16.mxu1 %v6593_v18  ;;  %v6651_v17 = vcombine.high %v1039_v29, %v1043_v30  ;;  %v1046_v18 = vld [vmem:[#allocation11 + $0x750] sm:$0xff]  ;;  %v7472_v29 = vld [vmem:[#allocation14 + $0x158] ss:$28 sps:$4 sm:$0xff]  }
 0x313   :  { %2701 = vmatprep.subr.bf16.mxu0 %v6595_v19  ;;  %v1050_v19 = vld [vmem:[#allocation11 + $0x770] sm:$0xff] }
 0x314   :  { %v6656_v46 = vcombine.low %v1046_v18, %v1050_v19  ;;  %v7477_v30 = vld [vmem:[#allocation14 + $0x18c] ss:$28 sps:$4 sm:$0xff]  }
 0x315   :  { %2616 = vmatpush1.bf16.msra.mxu1 %v6592_v37  ;;  %v6657_v37 = vcombine.high %v1046_v18, %v1050_v19  ;;  %v7486_v18 = vld [vmem:[#allocation14 + $0x1cc] ss:$28 sps:$4 sm:$0xff]   ;;  %v7481_v19 = vld [vmem:[#allocation14 + $0x1c0] ss:$28 sps:$4 sm:$0xff]  }
 0x316   :  { %2702 = vmatpush1.bf16.msra.mxu0 %v6594_v38  ;;  %2617 = vmatprep.subr.bf16.mxu1 %v6601_v40  ;;  %v6659_v38 = vcombine.high %v1047_v21, %v1051_v23  ;;  %v1054_v40 = vld [vmem:[#allocation11 + $0x790] sm:$0xff]  ;;  %v7489_v23 = vld [vmem:[#allocation14 + $0x1fc] ss:$28 sps:$4 sm:$0xff]  }
 0x317   :  { %2703 = vmatprep.subr.bf16.mxu0 %v6603_v41  ;;  %v1058_v41 = vld [vmem:[#allocation11 + $0x7b0] sm:$0xff] }
 0x318   :  { %v6664_v54 = vcombine.low %v1054_v40, %v1058_v41  ;;  %v7484_v21 = vld [vmem:[#allocation14 + $0x1c8] ss:$28 sps:$4 sm:$0xff]  }
 0x319   :  { %2618 = vmatpush1.bf16.msra.mxu1 %v6600_v48  ;;  %v6665_v48 = vcombine.high %v1054_v40, %v1058_v41  ;;  %v7498_v40 = vld [vmem:[#allocation14 + $0x23c] ss:$28 sps:$4 sm:$0xff]   ;;  %v7493_v41 = vld [vmem:[#allocation14 + $0x230] ss:$28 sps:$4 sm:$0xff]  }
 0x31a   :  { %2704 = vmatpush1.bf16.msra.mxu0 %v6602_v49  ;;  %2619 = vmatprep.subr.bf16.mxu1 %v6609_v50  ;;  %v6667_v49 = vcombine.high %v1055_v43, %v1059_v45  ;;  %v1062_v50 = vld [vmem:[#allocation11 + $0x7d0] sm:$0xff]  ;;  %v7496_v43 = vld [vmem:[#allocation14 + $0x238] ss:$28 sps:$4 sm:$0xff]  }
 0x31b   :  { %2705 = vmatprep.subr.bf16.mxu0 %v6611_v51  ;;  %v1066_v51 = vld [vmem:[#allocation11 + $0x7f0] sm:$0xff] }
 0x31c   :  { %v7501_v45 = vld [vmem:[#allocation14 + $0x26c] ss:$28 sps:$4 sm:$0xff]  }
 0x31d   :  { %2620 = vmatpush1.bf16.msra.mxu1 %v6608_v59  ;;  %v6673_v59 = vcombine.high %v1062_v50, %v1066_v51 }
 0x31e   :  { %2706 = vmatpush1.bf16.msra.mxu0 %v6610_v60  ;;  %2621 = vmatprep.subr.bf16.mxu1 %v6617_v61  ;;  %v6675_v60 = vcombine.high %v1063_v52, %v1067_v53  ;;  %v6672_v61 = vcombine.low %v1062_v50, %v1066_v51  ;;  %v7510_v50 = vld [vmem:[#allocation14 + $0x2ac] ss:$28 sps:$4 sm:$0xff]   ;;  %v7505_v51 = vld [vmem:[#allocation14 + $0x2a0] ss:$28 sps:$4 sm:$0xff]  }
 0x31f   :  { %2707 = vmatprep.subr.bf16.mxu0 %v6619_v62  ;;  %v6674_v62 = vcombine.low %v1063_v52, %v1067_v53  ;;  %v7508_v52 = vld [vmem:[#allocation14 + $0x2a8] ss:$28 sps:$4 sm:$0xff]   ;;  %v7513_v53 = vld [vmem:[#allocation14 + $0x2dc] ss:$28 sps:$4 sm:$0xff]  }
 0x321   :  { %2622 = vmatpush1.bf16.msra.mxu1 %v6616_v11  ;;  %v7441_v11 = vld [vmem:[#allocation14 + $0x3c] ss:$28 sps:$4 sm:$0xff]  }
 0x322   :  { %2708 = vmatpush1.bf16.msra.mxu0 %v6618_v3  ;;  %2623 = vmatprep.subr.bf16.mxu1 %v6625_v4  ;;  %v7444_v3 = vld [vmem:[#allocation14 + $0x44] ss:$28 sps:$4 sm:$0xff]   ;;  %v7439_v4 = vld [vmem:[#allocation14 + $0x38] ss:$28 sps:$4 sm:$0xff]  }
 0x323   :  { %2709 = vmatprep.subr.bf16.mxu0 %v6627_v5  ;;  %v7442_v5 = vld [vmem:[#allocation14 + $0x40] ss:$28 sps:$4 sm:$0xff]  }
 0x325   :  { %2624 = vmatpush1.bf16.msra.mxu1 %v6624_v12  ;;  %v7453_v12 = vld [vmem:[#allocation14 + $0xac] ss:$28 sps:$4 sm:$0xff]  }
 0x326   :  { %2710 = vmatpush1.bf16.msra.mxu0 %v6626_v13  ;;  %2625 = vmatprep.subr.bf16.mxu1 %v6633_v14  ;;  %v7456_v13 = vld [vmem:[#allocation14 + $0xb4] ss:$28 sps:$4 sm:$0xff]   ;;  %v7451_v14 = vld [vmem:[#allocation14 + $0xa8] ss:$28 sps:$4 sm:$0xff]  }
 0x327   :  { %2711 = vmatprep.subr.bf16.mxu0 %v6635_v10  ;;  %v7459_v10 = vld [vmem:[#allocation14 + $0xe4] ss:$28 sps:$4 sm:$0xff]  }
 0x329   :  { %2626 = vmatpush1.bf16.msra.mxu1 %v6632_v25  ;;  %v7468_v25 = vld [vmem:[#allocation14 + $0x124] ss:$28 sps:$4 sm:$0xff]  }
 0x32a   :  { %2712 = vmatpush1.bf16.msra.mxu0 %v6634_v26  ;;  %2627 = vmatprep.subr.bf16.mxu1 %v6641_v39  ;;  %v7463_v26 = vld [vmem:[#allocation14 + $0x118] ss:$28 sps:$4 sm:$0xff]   ;;  %v7466_v39 = vld [vmem:[#allocation14 + $0x120] ss:$28 sps:$4 sm:$0xff]  }
 0x32b   :  { %2713 = vmatprep.subr.bf16.mxu0 %v6643_v27  ;;  %v7471_v27 = vld [vmem:[#allocation14 + $0x154] ss:$28 sps:$4 sm:$0xff]  }
 0x32d   :  { %2628 = vmatpush1.bf16.msra.mxu1 %v6640_v31  ;;  %v7480_v31 = vld [vmem:[#allocation14 + $0x194] ss:$28 sps:$4 sm:$0xff]  }
 0x32e   :  { %2714 = vmatpush1.bf16.msra.mxu0 %v6642_v32  ;;  %2629 = vmatprep.subr.bf16.mxu1 %v6649_v33  ;;  %v7475_v32 = vld [vmem:[#allocation14 + $0x188] ss:$28 sps:$4 sm:$0xff]   ;;  %v7478_v33 = vld [vmem:[#allocation14 + $0x190] ss:$28 sps:$4 sm:$0xff]  }
 0x32f   :  { %2715 = vmatprep.subr.bf16.mxu0 %v6651_v17  ;;  %v7483_v17 = vld [vmem:[#allocation14 + $0x1c4] ss:$28 sps:$4 sm:$0xff]  }
 0x331   :  { %2630 = vmatpush1.bf16.msra.mxu1 %v6648_v24  ;;  %v7492_v24 = vld [vmem:[#allocation14 + $0x204] ss:$28 sps:$4 sm:$0xff]  }
 0x332   :  { %2716 = vmatpush1.bf16.msra.mxu0 %v6650_v35  ;;  %2631 = vmatprep.subr.bf16.mxu1 %v6657_v37  ;;  %v7487_v35 = vld [vmem:[#allocation14 + $0x1f8] ss:$28 sps:$4 sm:$0xff]   ;;  %v7490_v37 = vld [vmem:[#allocation14 + $0x200] ss:$28 sps:$4 sm:$0xff]  }
 0x333   :  { %2717 = vmatprep.subr.bf16.mxu0 %v6659_v38  ;;  %v7495_v38 = vld [vmem:[#allocation14 + $0x234] ss:$28 sps:$4 sm:$0xff]  }
 0x335   :  { %2632 = vmatpush1.bf16.msra.mxu1 %v6656_v46  ;;  %v7504_v46 = vld [vmem:[#allocation14 + $0x274] ss:$28 sps:$4 sm:$0xff]  }
 0x336   :  { %2718 = vmatpush1.bf16.msra.mxu0 %v6658_v47  ;;  %2633 = vmatprep.subr.bf16.mxu1 %v6665_v48  ;;  %v7499_v47 = vld [vmem:[#allocation14 + $0x268] ss:$28 sps:$4 sm:$0xff]   ;;  %v7502_v48 = vld [vmem:[#allocation14 + $0x270] ss:$28 sps:$4 sm:$0xff]  }
 0x337   :  { %2719 = vmatprep.subr.bf16.mxu0 %v6667_v49  ;;  %v7507_v49 = vld [vmem:[#allocation14 + $0x2a4] ss:$28 sps:$4 sm:$0xff]  }
 0x339   :  { %2634 = vmatpush1.bf16.msra.mxu1 %v6664_v54  ;;  %v7516_v54 = vld [vmem:[#allocation14 + $0x2e4] ss:$28 sps:$4 sm:$0xff]  }
 0x33a   :  { %2720 = vmatpush1.bf16.msra.mxu0 %v6666_v57  ;;  %2635 = vmatprep.subr.bf16.mxu1 %v6673_v59  ;;  %v7511_v57 = vld [vmem:[#allocation14 + $0x2d8] ss:$28 sps:$4 sm:$0xff]   ;;  %v7514_v59 = vld [vmem:[#allocation14 + $0x2e0] ss:$28 sps:$4 sm:$0xff]  }
 0x33b   :  { %2721 = vmatprep.subr.bf16.mxu0 %v6675_v60  ;;  %v7519_v60 = vld [vmem:[#allocation14 + $0x314] ss:$28 sps:$4 sm:$0xff]  }
 0x33d   :  { %2636 = vmatpush1.bf16.msra.mxu1 %v6672_v61  ;;  %v7522_v61 = vld [vmem:[#allocation14 + $0x31c] ss:$28 sps:$4 sm:$0xff]  }
 0x33e   :  { %2722 = vmatpush1.bf16.msra.mxu0 %v6674_v62  ;;  %5611 = vmatprep.subr.bf16.mxu1 %v7435_v63  ;;  %v7517_v62 = vld [vmem:[#allocation14 + $0x310] ss:$28 sps:$4 sm:$0xff]   ;;  %v7520_v63 = vld [vmem:[#allocation14 + $0x318] ss:$28 sps:$4 sm:$0xff]  }
 0x33f   :  { %5783 = vmatprep.subr.bf16.mxu0 %v7438_v0  ;;  %v7525_v0 = vld [vmem:[#allocation14 + $0x34c] ss:$28 sps:$4 sm:$0xff]  }
 0x340   :  { %2638 = vmatmul.mubr.bf16.vlgmr.msra.gmra.mrb[4].mxu1 %v8585_v34 }
 0x341   :  { %2724 = vmatmul.mubr.bf16.vlgmr.msra.gmra.mrb[16].mxu0 %v8585_v34  ;;  %5612 = vmatpush1.bf16.msra.mxu1 %v7433_v1  ;;  %v7454_v34 = vld [vmem:[#allocation14 + $0xb0] ss:$28 sps:$4 sm:$0xff]  }
 0x342   :  { %5784 = vmatpush1.bf16.msra.mxu0 %v7436_v2  ;;  %5613 = vmatprep.subr.bf16.mxu1 %v7441_v11  ;;  %v7528_v1 = vld [vmem:[#allocation14 + $0x354] ss:$28 sps:$4 sm:$0xff]   ;;  %v7523_v2 = vld [vmem:[#allocation14 + $0x348] ss:$28 sps:$4 sm:$0xff]  }
 0x343   :  { %5785 = vmatprep.subr.bf16.mxu0 %v7444_v3  ;;  %v7526_v11 = vld [vmem:[#allocation14 + $0x350] ss:$28 sps:$4 sm:$0xff]   ;;  %v7531_v3 = vld [vmem:[#allocation14 + $0x384] ss:$28 sps:$4 sm:$0xff]  }
 0x345   :  { %5614 = vmatpush1.bf16.msra.mxu1 %v7439_v4  ;;  %v7534_v4 = vld [vmem:[#allocation14 + $0x38c] ss:$28 sps:$4 sm:$0xff]  }
 0x346   :  { %5786 = vmatpush1.bf16.msra.mxu0 %v7442_v5  ;;  %5615 = vmatprep.subr.bf16.mxu1 %v7447_v6  ;;  %v8601_v5 = vld [vmem:[#allocation13] sm:$0xff] }
 0x347   :  { %5787 = vmatprep.subr.bf16.mxu0 %v7450_v7  ;;  %v1073_v6 = vrot.slane %v8601_v5, %v8528_v42  ;;  %v1081_v7 = vrot.slane %v8601_v5, %v8576_v56 }
 0x349   :  { %5616 = vmatpush1.bf16.msra.mxu1 %v7445_v8  ;;  %v1077_v8 = vrot.slane %v8601_v5, %v8531_v44 }
 0x34a   :  { %5788 = vmatpush1.bf16.msra.mxu0 %v7448_v9  ;;  %5617 = vmatprep.subr.bf16.mxu1 %v7453_v12  ;;  %v1085_v9 = vrot.slane %v8601_v5, %v8579_v58 }
 0x34b   :  { %5789 = vmatprep.subr.bf16.mxu0 %v7456_v13 }
 0x34d   :  { %5618 = vmatpush1.bf16.msra.mxu1 %v7451_v14 }
 0x34e   :  { %5790 = vmatpush1.bf16.msra.mxu0 %v7454_v34  ;;  %5619 = vmatprep.subr.bf16.mxu1 %v7459_v10 }
 0x34f   :  { %5791 = vmatprep.subr.bf16.mxu0 %v7462_v15 }
 0x351   :  { %5620 = vmatpush1.bf16.msra.mxu1 %v7457_v16 }
 0x352   :  { %5792 = vmatpush1.bf16.msra.mxu0 %v7460_v20  ;;  %5621 = vmatprep.subr.bf16.mxu1 %v7465_v22 }
 0x353   :  { %5793 = vmatprep.subr.bf16.mxu0 %v7468_v25 }
 0x355   :  { %5622 = vmatpush1.bf16.msra.mxu1 %v7463_v26 }
 0x356   :  { %5794 = vmatpush1.bf16.msra.mxu0 %v7466_v39  ;;  %5623 = vmatprep.subr.bf16.mxu1 %v7471_v27 }
 0x357   :  { %5795 = vmatprep.subr.bf16.mxu0 %v7474_v55 }
 0x359   :  { %5624 = vmatpush1.bf16.msra.mxu1 %v7469_v28 }
 0x35a   :  { %5796 = vmatpush1.bf16.msra.mxu0 %v7472_v29  ;;  %5625 = vmatprep.subr.bf16.mxu1 %v7477_v30 }
 0x35b   :  { %5797 = vmatprep.subr.bf16.mxu0 %v7480_v31 }
 0x35d   :  { %5626 = vmatpush1.bf16.msra.mxu1 %v7475_v32 }
 0x35e   :  { %5798 = vmatpush1.bf16.msra.mxu0 %v7478_v33  ;;  %5627 = vmatprep.subr.bf16.mxu1 %v7483_v17 }
 0x35f   :  { %5799 = vmatprep.subr.bf16.mxu0 %v7486_v18 }
 0x361   :  { %5628 = vmatpush1.bf16.msra.mxu1 %v7481_v19 }
 0x362   :  { %5800 = vmatpush1.bf16.msra.mxu0 %v7484_v21  ;;  %5629 = vmatprep.subr.bf16.mxu1 %v7489_v23 }
 0x363   :  { %5801 = vmatprep.subr.bf16.mxu0 %v7492_v24 }
 0x365   :  { %5630 = vmatpush1.bf16.msra.mxu1 %v7487_v35 }
 0x366   :  { %5802 = vmatpush1.bf16.msra.mxu0 %v7490_v37  ;;  %5631 = vmatprep.subr.bf16.mxu1 %v7495_v38  ;;  %v7529_v38 = vld [vmem:[#allocation14 + $0x380] ss:$28 sps:$4 sm:$0xff]  }
 0x367   :  { %5803 = vmatprep.subr.bf16.mxu0 %v7498_v40  ;;  %v7532_v40 = vld [vmem:[#allocation14 + $0x388] ss:$28 sps:$4 sm:$0xff]  }
 0x369   :  { %5632 = vmatpush1.bf16.msra.mxu1 %v7493_v41  ;;  %v7537_v41 = vld [vmem:[#allocation14 + $0x3bc] ss:$28 sps:$4 sm:$0xff]  }
 0x36a   :  { %5804 = vmatpush1.bf16.msra.mxu0 %v7496_v43  ;;  %5633 = vmatprep.subr.bf16.mxu1 %v7501_v45  ;;  %v7540_v43 = vld [vmem:[#allocation14 + $0x3c4] ss:$28 sps:$4 sm:$0xff]   ;;  %v7535_v45 = vld [vmem:[#allocation14 + $0x3b8] ss:$28 sps:$4 sm:$0xff]  }
 0x36b   :  { %5805 = vmatprep.subr.bf16.mxu0 %v7504_v46  ;;  %v7538_v46 = vld [vmem:[#allocation14 + $0x3c0] ss:$28 sps:$4 sm:$0xff]  }
 0x36d   :  { %5634 = vmatpush1.bf16.msra.mxu1 %v7499_v47  ;;  %v7543_v47 = vld [vmem:[#allocation14 + $0x3f4] ss:$28 sps:$4 sm:$0xff]  }
 0x36e   :  { %5806 = vmatpush1.bf16.msra.mxu0 %v7502_v48  ;;  %5635 = vmatprep.subr.bf16.mxu1 %v7507_v49  ;;  %v7546_v48 = vld [vmem:[#allocation14 + $0x3fc] ss:$28 sps:$4 sm:$0xff]   ;;  %v7541_v49 = vld [vmem:[#allocation14 + $0x3f0] ss:$28 sps:$4 sm:$0xff]  }
 0x36f   :  { %5807 = vmatprep.subr.bf16.mxu0 %v7510_v50  ;;  %v7544_v50 = vld [vmem:[#allocation14 + $0x3f8] ss:$28 sps:$4 sm:$0xff]  }
 0x371   :  { %5636 = vmatpush1.bf16.msra.mxu1 %v7505_v51  ;;  %v7549_v51 = vld [vmem:[#allocation14 + $0x42c] ss:$28 sps:$4 sm:$0xff]  }
 0x372   :  { %5808 = vmatpush1.bf16.msra.mxu0 %v7508_v52  ;;  %5637 = vmatprep.subr.bf16.mxu1 %v7513_v53  ;;  %v7552_v52 = vld [vmem:[#allocation14 + $0x434] ss:$28 sps:$4 sm:$0xff]   ;;  %v7547_v53 = vld [vmem:[#allocation14 + $0x428] ss:$28 sps:$4 sm:$0xff]  }
 0x373   :  { %5809 = vmatprep.subr.bf16.mxu0 %v7516_v54  ;;  %v7550_v54 = vld [vmem:[#allocation14 + $0x430] ss:$28 sps:$4 sm:$0xff]  }
 0x375   :  { %5638 = vmatpush1.bf16.msra.mxu1 %v7511_v57  ;;  %v7555_v57 = vld [vmem:[#allocation14 + $0x464] ss:$28 sps:$4 sm:$0xff]  }
 0x376   :  { %5810 = vmatpush1.bf16.msra.mxu0 %v7514_v59  ;;  %5639 = vmatprep.subr.bf16.mxu1 %v7519_v60  ;;  %v7558_v59 = vld [vmem:[#allocation14 + $0x46c] ss:$28 sps:$4 sm:$0xff]   ;;  %v7553_v60 = vld [vmem:[#allocation14 + $0x460] ss:$28 sps:$4 sm:$0xff]  }
 0x377   :  { %5811 = vmatprep.subr.bf16.mxu0 %v7522_v61  ;;  %v7556_v61 = vld [vmem:[#allocation14 + $0x468] ss:$28 sps:$4 sm:$0xff]  }
 0x379   :  { %5640 = vmatpush1.bf16.msra.mxu1 %v7517_v62  ;;  %v7561_v62 = vld [vmem:[#allocation14 + $0x49c] ss:$28 sps:$4 sm:$0xff]  }
 0x37a   :  { %5812 = vmatpush1.bf16.msra.mxu0 %v7520_v63  ;;  %5641 = vmatprep.subr.bf16.mxu1 %v7525_v0  ;;  %v7564_v63 = vld [vmem:[#allocation14 + $0x4a4] ss:$28 sps:$4 sm:$0xff]   ;;  %v7559_v0 = vld [vmem:[#allocation14 + $0x498] ss:$28 sps:$4 sm:$0xff]  }
 0x37b   :  { %5813 = vmatprep.subr.bf16.mxu0 %v7528_v1  ;;  %v7562_v1 = vld [vmem:[#allocation14 + $0x4a0] ss:$28 sps:$4 sm:$0xff]  }
 0x37d   :  { %5642 = vmatpush1.bf16.msra.mxu1 %v7523_v2  ;;  %v7567_v2 = vld [vmem:[#allocation14 + $0x4d4] ss:$28 sps:$4 sm:$0xff]  }
 0x37e   :  { %5814 = vmatpush1.bf16.msra.mxu0 %v7526_v11  ;;  %5654 = vmatprep.subr.bf16.mxu1 %v7531_v3  ;;  %v7570_v11 = vld [vmem:[#allocation14 + $0x4dc] ss:$28 sps:$4 sm:$0xff]   ;;  %v7565_v3 = vld [vmem:[#allocation14 + $0x4d0] ss:$28 sps:$4 sm:$0xff]  }
 0x37f   :  { %5826 = vmatprep.subr.bf16.mxu0 %v7534_v4  ;;  %v7568_v4 = vld [vmem:[#allocation14 + $0x4d8] ss:$28 sps:$4 sm:$0xff]  }
 0x393   :  { %v2467_v12 = vpop.f32.mrb[0].mxu1  ;;  %v2553_v13 = vpop.f32.mrb[12].mxu0 }
 0x394   :  { %v7212_v14 = vadd.f32 %v2467_v12, %v1073_v6  ;;  %v7216_v34 = vadd.f32 %v2553_v13, %v1081_v7  ;;  %v2469_v10 = vpop.f32.mrb[1].mxu1  ;;  %v2555_v15 = vpop.f32.mrb[13].mxu0  ;;  %v7579_v12 = vld [vmem:[#allocation14 + $0x544] ss:$28 sps:$4 sm:$0xff]   ;;  %v7582_v13 = vld [vmem:[#allocation14 + $0x54c] ss:$28 sps:$4 sm:$0xff]  }
 0x395   :  { %v7213_v16 = vadd.f32 %v2469_v10, %v1077_v8  ;;  %v7217_v20 = vadd.f32 %v2555_v15, %v1085_v9  ;;  %v2471_v22 = vpop.f32.mrb[2].mxu1  ;;  %v2557_v25 = vpop.f32.mrb[14].mxu0  ;;  %v7585_v10 = vld [vmem:[#allocation14 + $0x57c] ss:$28 sps:$4 sm:$0xff]   ;;  %v7588_v15 = vld [vmem:[#allocation14 + $0x584] ss:$28 sps:$4 sm:$0xff]  }
 0x396   :  { %v7214_v26 = vadd.f32 %v2471_v22, %v1073_v6  ;;  %v7218_v39 = vadd.f32 %v2557_v25, %v1081_v7  ;;  %v2473_v27 = vpop.f32.mrb[3].mxu1  ;;  %v2559_v55 = vpop.f32.mrb[15].mxu0  ;;  %v2734_v30 = vmax.f32 %v7212_v14, 0.0  ;;  %v2736_v31 = vmax.f32 %v7216_v34, 0.0  ;;  %v7573_v6 = vld [vmem:[#allocation14 + $0x50c] ss:$28 sps:$4 sm:$0xff]  }
 0x397   :  { %v7215_v28 = vadd.f32 %v2473_v27, %v1077_v8  ;;  %v7219_v29 = vadd.f32 %v2559_v55, %v1085_v9  ;;  %v2735_v17 = vmax.f32 %v7213_v16, 0.0  ;;  %v2737_v18 = vmax.f32 %v7217_v20, 0.0  ;;  %v7576_v7 = vld [vmem:[#allocation14 + $0x514] ss:$28 sps:$4 sm:$0xff]   ;;  %v7571_v8 = vld [vmem:[#allocation14 + $0x508] ss:$28 sps:$4 sm:$0xff]  }
 0x398   :  { %v2742_v32 = vmax.f32 %v7214_v26, 0.0  ;;  %v2744_v33 = vmax.f32 %v7218_v39, 0.0  ;;  %v7574_v9 = vld [vmem:[#allocation14 + $0x510] ss:$28 sps:$4 sm:$0xff]   ;;  %v7577_v14 = vld [vmem:[#allocation14 + $0x540] ss:$28 sps:$4 sm:$0xff]  }
 0x399   :  { %v2743_v19 = vmax.f32 %v7215_v28, 0.0  ;;  %v2745_v21 = vmax.f32 %v7219_v29, 0.0  ;;  %v7580_v34 = vld [vmem:[#allocation14 + $0x548] ss:$28 sps:$4 sm:$0xff]   ;;  %v7583_v16 = vld [vmem:[#allocation14 + $0x578] ss:$28 sps:$4 sm:$0xff]  }
 0x39a   :  { %v8611_v23 = vpack.c.bf16 %v2742_v32, %v2734_v30  ;;  %v8613_v24 = vpack.c.bf16 %v2744_v33, %v2736_v31  ;;  %v7586_v20 = vld [vmem:[#allocation14 + $0x580] ss:$28 sps:$4 sm:$0xff]   ;;  %v7591_v22 = vld [vmem:[#allocation14 + $0x5b4] ss:$28 sps:$4 sm:$0xff]   ;;  %v7597_v27 = vld [vmem:[#allocation14 + $0x5ec] ss:$28 sps:$4 sm:$0xff]  }
 0x39b   :  { %v8615_v35 = vpack.c.bf16 %v2743_v19, %v2735_v17  ;;  %v8617_v37 = vpack.c.bf16 %v2745_v21, %v2737_v18  ;;  %v7594_v25 = vld [vmem:[#allocation14 + $0x5bc] ss:$28 sps:$4 sm:$0xff]   ;;  %v7589_v26 = vld [vmem:[#allocation14 + $0x5b0] ss:$28 sps:$4 sm:$0xff]   ;;  %v7595_v28 = vld [vmem:[#allocation14 + $0x5e8] ss:$28 sps:$4 sm:$0xff]  }
 0x39c   :  { %v7592_v39 = vld [vmem:[#allocation14 + $0x5b8] ss:$28 sps:$4 sm:$0xff]   ;;  %v7598_v29 = vld [vmem:[#allocation14 + $0x5f0] ss:$28 sps:$4 sm:$0xff]   ;;  %v7603_v30 = vld [vmem:[#allocation14 + $0x624] ss:$28 sps:$4 sm:$0xff]  }
 0x39d   :  { %5643 = vmatprep.mubr.bf16.mxu1 %v8615_v35  ;;  %5815 = vmatprep.mubr.bf16.mxu0 %v8615_v35  ;;  %v7600_v55 = vld [vmem:[#allocation14 + $0x5f4] ss:$28 sps:$4 sm:$0xff]   ;;  %v7606_v31 = vld [vmem:[#allocation14 + $0x62c] ss:$28 sps:$4 sm:$0xff]   ;;  %v7601_v32 = vld [vmem:[#allocation14 + $0x620] ss:$28 sps:$4 sm:$0xff]  }
 0x39e   :  { %5644 = vmatmul.mubr.bf16.vlgmr.msra.gmra.mrb[8].mxu1 %v8611_v23  ;;  %5816 = vmatmul.mubr.bf16.vlgmr.msra.gmra.mrb[20].mxu0 %v8611_v23  ;;  %v7604_v33 = vld [vmem:[#allocation14 + $0x628] ss:$28 sps:$4 sm:$0xff]   ;;  %v7609_v17 = vld [vmem:[#allocation14 + $0x65c] ss:$28 sps:$4 sm:$0xff]  }
 0x39f   :  { %5655 = vmatpush1.bf16.msra.mxu1 %v7529_v38  ;;  %5827 = vmatpush1.bf16.msra.mxu0 %v7532_v40  ;;  %v7612_v18 = vld [vmem:[#allocation14 + $0x664] ss:$28 sps:$4 sm:$0xff]   ;;  %v7607_v19 = vld [vmem:[#allocation14 + $0x658] ss:$28 sps:$4 sm:$0xff]  }
 0x3a0   :  { %5686 = vmatprep.mubr.bf16.mxu1 %v8617_v37  ;;  %5858 = vmatprep.mubr.bf16.mxu0 %v8617_v37  ;;  %v7610_v21 = vld [vmem:[#allocation14 + $0x660] ss:$28 sps:$4 sm:$0xff]   ;;  %v7615_v38 = vld [vmem:[#allocation14 + $0x694] ss:$28 sps:$4 sm:$0xff]  }
 0x3a1   :  { %5656 = vmatprep.subr.bf16.mxu1 %v7537_v41  ;;  %5828 = vmatprep.subr.bf16.mxu0 %v7540_v43  ;;  %v7618_v40 = vld [vmem:[#allocation14 + $0x69c] ss:$28 sps:$4 sm:$0xff]   ;;  %v7613_v41 = vld [vmem:[#allocation14 + $0x690] ss:$28 sps:$4 sm:$0xff]  }
 0x3a2   :  { %v7616_v43 = vld [vmem:[#allocation14 + $0x698] ss:$28 sps:$4 sm:$0xff]  }
 0x3a3   :  { %5657 = vmatpush1.bf16.msra.mxu1 %v7535_v45  ;;  %5829 = vmatpush1.bf16.msra.mxu0 %v7538_v46  ;;  %v7621_v45 = vld [vmem:[#allocation14 + $0x6cc] ss:$28 sps:$4 sm:$0xff]   ;;  %v7624_v46 = vld [vmem:[#allocation14 + $0x6d4] ss:$28 sps:$4 sm:$0xff]  }
 0x3a4   :  { %5658 = vmatprep.subr.bf16.mxu1 %v7543_v47  ;;  %5830 = vmatprep.subr.bf16.mxu0 %v7546_v48  ;;  %v7619_v47 = vld [vmem:[#allocation14 + $0x6c8] ss:$28 sps:$4 sm:$0xff]   ;;  %v7622_v48 = vld [vmem:[#allocation14 + $0x6d0] ss:$28 sps:$4 sm:$0xff]  }
 0x3a7   :  { %5659 = vmatpush1.bf16.msra.mxu1 %v7541_v49  ;;  %5831 = vmatpush1.bf16.msra.mxu0 %v7544_v50  ;;  %v7627_v49 = vld [vmem:[#allocation14 + $0x704] ss:$28 sps:$4 sm:$0xff]   ;;  %v7630_v50 = vld [vmem:[#allocation14 + $0x70c] ss:$28 sps:$4 sm:$0xff]  }
 0x3a8   :  { %5660 = vmatprep.subr.bf16.mxu1 %v7549_v51  ;;  %5832 = vmatprep.subr.bf16.mxu0 %v7552_v52  ;;  %v7625_v51 = vld [vmem:[#allocation14 + $0x700] ss:$28 sps:$4 sm:$0xff]   ;;  %v7628_v52 = vld [vmem:[#allocation14 + $0x708] ss:$28 sps:$4 sm:$0xff]  }
 0x3ab   :  { %5661 = vmatpush1.bf16.msra.mxu1 %v7547_v53  ;;  %5833 = vmatpush1.bf16.msra.mxu0 %v7550_v54  ;;  %v7633_v53 = vld [vmem:[#allocation14 + $0x73c] ss:$28 sps:$4 sm:$0xff]   ;;  %v7636_v54 = vld [vmem:[#allocation14 + $0x744] ss:$28 sps:$4 sm:$0xff]  }
 0x3ac   :  { %5662 = vmatprep.subr.bf16.mxu1 %v7555_v57  ;;  %5834 = vmatprep.subr.bf16.mxu0 %v7558_v59  ;;  %v7631_v57 = vld [vmem:[#allocation14 + $0x738] ss:$28 sps:$4 sm:$0xff]   ;;  %v7634_v59 = vld [vmem:[#allocation14 + $0x740] ss:$28 sps:$4 sm:$0xff]  }
 0x3af   :  { %5663 = vmatpush1.bf16.msra.mxu1 %v7553_v60  ;;  %5835 = vmatpush1.bf16.msra.mxu0 %v7556_v61  ;;  %v7639_v60 = vld [vmem:[#allocation14 + $0x774] ss:$28 sps:$4 sm:$0xff]   ;;  %v7642_v61 = vld [vmem:[#allocation14 + $0x77c] ss:$28 sps:$4 sm:$0xff]  }
 0x3b0   :  { %5664 = vmatprep.subr.bf16.mxu1 %v7561_v62  ;;  %5836 = vmatprep.subr.bf16.mxu0 %v7564_v63  ;;  %v7637_v62 = vld [vmem:[#allocation14 + $0x770] ss:$28 sps:$4 sm:$0xff]   ;;  %v7640_v63 = vld [vmem:[#allocation14 + $0x778] ss:$28 sps:$4 sm:$0xff]  }
 0x3b3   :  { %5665 = vmatpush1.bf16.msra.mxu1 %v7559_v0  ;;  %5837 = vmatpush1.bf16.msra.mxu0 %v7562_v1  ;;  %v7645_v0 = vld [vmem:[#allocation14 + $0x7ac] ss:$28 sps:$4 sm:$0xff]   ;;  %v7648_v1 = vld [vmem:[#allocation14 + $0x7b4] ss:$28 sps:$4 sm:$0xff]  }
 0x3b4   :  { %5666 = vmatprep.subr.bf16.mxu1 %v7567_v2  ;;  %5838 = vmatprep.subr.bf16.mxu0 %v7570_v11  ;;  %v7643_v2 = vld [vmem:[#allocation14 + $0x7a8] ss:$28 sps:$4 sm:$0xff]   ;;  %v7646_v11 = vld [vmem:[#allocation14 + $0x7b0] ss:$28 sps:$4 sm:$0xff]  }
 0x3b7   :  { %5667 = vmatpush1.bf16.msra.mxu1 %v7565_v3  ;;  %5839 = vmatpush1.bf16.msra.mxu0 %v7568_v4  ;;  %v7651_v3 = vld [vmem:[#allocation14 + $0x7e4] ss:$28 sps:$4 sm:$0xff]   ;;  %v7654_v4 = vld [vmem:[#allocation14 + $0x7ec] ss:$28 sps:$4 sm:$0xff]  }
 0x3b8   :  { %5668 = vmatprep.subr.bf16.mxu1 %v7573_v6  ;;  %5840 = vmatprep.subr.bf16.mxu0 %v7576_v7  ;;  %v7649_v6 = vld [vmem:[#allocation14 + $0x7e0] ss:$28 sps:$4 sm:$0xff]   ;;  %v7652_v7 = vld [vmem:[#allocation14 + $0x7e8] ss:$28 sps:$4 sm:$0xff]  }
 0x3bb   :  { %5669 = vmatpush1.bf16.msra.mxu1 %v7571_v8  ;;  %5841 = vmatpush1.bf16.msra.mxu0 %v7574_v9  ;;  %v7657_v8 = vld [vmem:[#allocation14 + $0x81c] ss:$28 sps:$4 sm:$0xff]   ;;  %v7660_v9 = vld [vmem:[#allocation14 + $0x824] ss:$28 sps:$4 sm:$0xff]  }
 0x3bc   :  { %5670 = vmatprep.subr.bf16.mxu1 %v7579_v12  ;;  %5842 = vmatprep.subr.bf16.mxu0 %v7582_v13  ;;  %v7655_v12 = vld [vmem:[#allocation14 + $0x818] ss:$28 sps:$4 sm:$0xff]   ;;  %v7658_v13 = vld [vmem:[#allocation14 + $0x820] ss:$28 sps:$4 sm:$0xff]  }
 0x3bf   :  { %5671 = vmatpush1.bf16.msra.mxu1 %v7577_v14  ;;  %5843 = vmatpush1.bf16.msra.mxu0 %v7580_v34  ;;  %v7663_v14 = vld [vmem:[#allocation14 + $0x854] ss:$28 sps:$4 sm:$0xff]   ;;  %v7666_v34 = vld [vmem:[#allocation14 + $0x85c] ss:$28 sps:$4 sm:$0xff]  }
 0x3c0   :  { %5672 = vmatprep.subr.bf16.mxu1 %v7585_v10  ;;  %5844 = vmatprep.subr.bf16.mxu0 %v7588_v15  ;;  %v7661_v10 = vld [vmem:[#allocation14 + $0x850] ss:$28 sps:$4 sm:$0xff]   ;;  %v7664_v15 = vld [vmem:[#allocation14 + $0x858] ss:$28 sps:$4 sm:$0xff]  }
 0x3c3   :  { %5673 = vmatpush1.bf16.msra.mxu1 %v7583_v16  ;;  %5845 = vmatpush1.bf16.msra.mxu0 %v7586_v20  ;;  %v7669_v16 = vld [vmem:[#allocation14 + $0x88c] ss:$28 sps:$4 sm:$0xff]   ;;  %v7672_v20 = vld [vmem:[#allocation14 + $0x894] ss:$28 sps:$4 sm:$0xff]  }
 0x3c4   :  { %5674 = vmatprep.subr.bf16.mxu1 %v7591_v22  ;;  %5846 = vmatprep.subr.bf16.mxu0 %v7594_v25  ;;  %v7667_v22 = vld [vmem:[#allocation14 + $0x888] ss:$28 sps:$4 sm:$0xff]   ;;  %v7670_v25 = vld [vmem:[#allocation14 + $0x890] ss:$28 sps:$4 sm:$0xff]  }
 0x3c7   :  { %5675 = vmatpush1.bf16.msra.mxu1 %v7589_v26  ;;  %5847 = vmatpush1.bf16.msra.mxu0 %v7592_v39  ;;  %v7675_v26 = vld [vmem:[#allocation14 + $0x8c4] ss:$28 sps:$4 sm:$0xff]   ;;  %v7678_v39 = vld [vmem:[#allocation14 + $0x8cc] ss:$28 sps:$4 sm:$0xff]  }
 0x3c8   :  { %5676 = vmatprep.subr.bf16.mxu1 %v7597_v27  ;;  %5848 = vmatprep.subr.bf16.mxu0 %v7600_v55  ;;  %v7673_v27 = vld [vmem:[#allocation14 + $0x8c0] ss:$28 sps:$4 sm:$0xff]   ;;  %v7676_v55 = vld [vmem:[#allocation14 + $0x8c8] ss:$28 sps:$4 sm:$0xff]  }
 0x3cb   :  { %5677 = vmatpush1.bf16.msra.mxu1 %v7595_v28  ;;  %5849 = vmatpush1.bf16.msra.mxu0 %v7598_v29  ;;  %v7681_v28 = vld [vmem:[#allocation14 + $0x8fc] ss:$28 sps:$4 sm:$0xff]   ;;  %v7684_v29 = vld [vmem:[#allocation14 + $0x904] ss:$28 sps:$4 sm:$0xff]  }
 0x3cc   :  { %5678 = vmatprep.subr.bf16.mxu1 %v7603_v30  ;;  %5850 = vmatprep.subr.bf16.mxu0 %v7606_v31  ;;  %v7679_v30 = vld [vmem:[#allocation14 + $0x8f8] ss:$28 sps:$4 sm:$0xff]   ;;  %v7682_v31 = vld [vmem:[#allocation14 + $0x900] ss:$28 sps:$4 sm:$0xff]  }
 0x3cf   :  { %5679 = vmatpush1.bf16.msra.mxu1 %v7601_v32  ;;  %5851 = vmatpush1.bf16.msra.mxu0 %v7604_v33  ;;  %v7687_v32 = vld [vmem:[#allocation14 + $0x934] ss:$28 sps:$4 sm:$0xff]   ;;  %v7690_v33 = vld [vmem:[#allocation14 + $0x93c] ss:$28 sps:$4 sm:$0xff]  }
 0x3d0   :  { %5680 = vmatprep.subr.bf16.mxu1 %v7609_v17  ;;  %5852 = vmatprep.subr.bf16.mxu0 %v7612_v18  ;;  %v7685_v17 = vld [vmem:[#allocation14 + $0x930] ss:$28 sps:$4 sm:$0xff]   ;;  %v7688_v18 = vld [vmem:[#allocation14 + $0x938] ss:$28 sps:$4 sm:$0xff]  }
 0x3d3   :  { %5681 = vmatpush1.bf16.msra.mxu1 %v7607_v19  ;;  %5853 = vmatpush1.bf16.msra.mxu0 %v7610_v21  ;;  %v7693_v19 = vld [vmem:[#allocation14 + $0x96c] ss:$28 sps:$4 sm:$0xff]   ;;  %v7696_v21 = vld [vmem:[#allocation14 + $0x974] ss:$28 sps:$4 sm:$0xff]  }
 0x3d4   :  { %5682 = vmatprep.subr.bf16.mxu1 %v7615_v38  ;;  %5854 = vmatprep.subr.bf16.mxu0 %v7618_v40  ;;  %v7691_v38 = vld [vmem:[#allocation14 + $0x968] ss:$28 sps:$4 sm:$0xff]   ;;  %v7694_v40 = vld [vmem:[#allocation14 + $0x970] ss:$28 sps:$4 sm:$0xff]  }
 0x3d7   :  { %5683 = vmatpush1.bf16.msra.mxu1 %v7613_v41  ;;  %5855 = vmatpush1.bf16.msra.mxu0 %v7616_v43  ;;  %v7699_v41 = vld [vmem:[#allocation14 + $0x9a4] ss:$28 sps:$4 sm:$0xff]   ;;  %v7702_v43 = vld [vmem:[#allocation14 + $0x9ac] ss:$28 sps:$4 sm:$0xff]  }
 0x3d8   :  { %5684 = vmatprep.subr.bf16.mxu1 %v7621_v45  ;;  %5856 = vmatprep.subr.bf16.mxu0 %v7624_v46  ;;  %v7697_v45 = vld [vmem:[#allocation14 + $0x9a0] ss:$28 sps:$4 sm:$0xff]   ;;  %v7700_v46 = vld [vmem:[#allocation14 + $0x9a8] ss:$28 sps:$4 sm:$0xff]  }
 0x3db   :  { %5685 = vmatpush1.bf16.msra.mxu1 %v7619_v47  ;;  %5857 = vmatpush1.bf16.msra.mxu0 %v7622_v48  ;;  %v7705_v47 = vld [vmem:[#allocation14 + $0x9dc] ss:$28 sps:$4 sm:$0xff]   ;;  %v7708_v48 = vld [vmem:[#allocation14 + $0x9e4] ss:$28 sps:$4 sm:$0xff]  }
 0x3dc   :  { %5697 = vmatprep.subr.bf16.mxu1 %v7627_v49  ;;  %5869 = vmatprep.subr.bf16.mxu0 %v7630_v50  ;;  %v1088_v49 = vsub.s32 4, %v8525_v36  ;;  %v1096_v50 = vsub.s32 6, %v8525_v36 }
 0x3de   :  { %5687 = vmatmul.mubr.bf16.vlgmr.msra.gmra.mrb[8].mxu1 %v8613_v24  ;;  %5859 = vmatmul.mubr.bf16.vlgmr.msra.gmra.mrb[20].mxu0 %v8613_v24 }
 0x3df   :  { %5698 = vmatpush1.bf16.msra.mxu1 %v7625_v51  ;;  %5870 = vmatpush1.bf16.msra.mxu0 %v7628_v52  ;;  %v1092_v51 = vsub.s32 5, %v8525_v36  ;;  %v1100_v52 = vsub.s32 7, %v8525_v36 }
 0x3e0   :  { %5699 = vmatprep.subr.bf16.mxu1 %v7633_v53  ;;  %5871 = vmatprep.subr.bf16.mxu0 %v7636_v54  ;;  %v7703_v53 = vld [vmem:[#allocation14 + $0x9d8] ss:$28 sps:$4 sm:$0xff]   ;;  %v7706_v54 = vld [vmem:[#allocation14 + $0x9e0] ss:$28 sps:$4 sm:$0xff]  }
 0x3e3   :  { %5700 = vmatpush1.bf16.msra.mxu1 %v7631_v57  ;;  %5872 = vmatpush1.bf16.msra.mxu0 %v7634_v59  ;;  %v1089_v57 = vrot.slane %v8601_v5, %v1088_v49  ;;  %v7711_v59 = vld [vmem:[#allocation14 + $0xa14] ss:$28 sps:$4 sm:$0xff]  }
 0x3e4   :  { %5701 = vmatprep.subr.bf16.mxu1 %v7639_v60  ;;  %5873 = vmatprep.subr.bf16.mxu0 %v7642_v61  ;;  %v7714_v60 = vld [vmem:[#allocation14 + $0xa1c] ss:$28 sps:$4 sm:$0xff]   ;;  %v1097_v61 = vrot.slane %v8601_v5, %v1096_v50 }
 0x3e7   :  { %5702 = vmatpush1.bf16.msra.mxu1 %v7637_v62  ;;  %5874 = vmatpush1.bf16.msra.mxu0 %v7640_v63  ;;  %v1093_v62 = vrot.slane %v8601_v5, %v1092_v51  ;;  %v1101_v63 = vrot.slane %v8601_v5, %v1100_v52  ;;  %v7738_v52 = vld [vmem:[#allocation14 + $0xafc] ss:$28 sps:$4 sm:$0xff]  }
 0x3e8   :  { %5703 = vmatprep.subr.bf16.mxu1 %v7645_v0  ;;  %5875 = vmatprep.subr.bf16.mxu0 %v7648_v1  ;;  %v7709_v1 = vld [vmem:[#allocation14 + $0xa10] ss:$28 sps:$4 sm:$0xff]  }
 0x3eb   :  { %5704 = vmatpush1.bf16.msra.mxu1 %v7643_v2  ;;  %5876 = vmatpush1.bf16.msra.mxu0 %v7646_v11  ;;  %v7712_v2 = vld [vmem:[#allocation14 + $0xa18] ss:$28 sps:$4 sm:$0xff]  }
 0x3ec   :  { %5705 = vmatprep.subr.bf16.mxu1 %v7651_v3  ;;  %5877 = vmatprep.subr.bf16.mxu0 %v7654_v4 }
 0x3ef   :  { %5706 = vmatpush1.bf16.msra.mxu1 %v7649_v6  ;;  %5878 = vmatpush1.bf16.msra.mxu0 %v7652_v7  ;;  %v7717_v6 = vld [vmem:[#allocation14 + $0xa4c] ss:$28 sps:$4 sm:$0xff]   ;;  %v7720_v7 = vld [vmem:[#allocation14 + $0xa54] ss:$28 sps:$4 sm:$0xff]  }
 0x3f0   :  { %5707 = vmatprep.subr.bf16.mxu1 %v7657_v8  ;;  %5879 = vmatprep.subr.bf16.mxu0 %v7660_v9 }
 0x3f3   :  { %5708 = vmatpush1.bf16.msra.mxu1 %v7655_v12  ;;  %5880 = vmatpush1.bf16.msra.mxu0 %v7658_v13 }
 0x3f4   :  { %5709 = vmatprep.subr.bf16.mxu1 %v7663_v14  ;;  %5881 = vmatprep.subr.bf16.mxu0 %v7666_v34 }
 0x3f7   :  { %5710 = vmatpush1.bf16.msra.mxu1 %v7661_v10  ;;  %5882 = vmatpush1.bf16.msra.mxu0 %v7664_v15 }
 0x3f8   :  { %5711 = vmatprep.subr.bf16.mxu1 %v7669_v16  ;;  %5883 = vmatprep.subr.bf16.mxu0 %v7672_v20 }
 0x3fb   :  { %5712 = vmatpush1.bf16.msra.mxu1 %v7667_v22  ;;  %5884 = vmatpush1.bf16.msra.mxu0 %v7670_v25  ;;  %v7715_v22 = vld [vmem:[#allocation14 + $0xa48] ss:$28 sps:$4 sm:$0xff]   ;;  %v7718_v25 = vld [vmem:[#allocation14 + $0xa50] ss:$28 sps:$4 sm:$0xff]  }
 0x3fc   :  { %5713 = vmatprep.subr.bf16.mxu1 %v7675_v26  ;;  %5885 = vmatprep.subr.bf16.mxu0 %v7678_v39 }
 0x3ff   :  { %5714 = vmatpush1.bf16.msra.mxu1 %v7673_v27  ;;  %5886 = vmatpush1.bf16.msra.mxu0 %v7676_v55  ;;  %v7723_v55 = vld [vmem:[#allocation14 + $0xa84] ss:$28 sps:$4 sm:$0xff]  }
 0x400   :  { %5715 = vmatprep.subr.bf16.mxu1 %v7681_v28  ;;  %5887 = vmatprep.subr.bf16.mxu0 %v7684_v29  ;;  %v7726_v28 = vld [vmem:[#allocation14 + $0xa8c] ss:$28 sps:$4 sm:$0xff]  }
 0x403   :  { %5716 = vmatpush1.bf16.msra.mxu1 %v7679_v30  ;;  %5888 = vmatpush1.bf16.msra.mxu0 %v7682_v31 }
 0x404   :  { %5717 = vmatprep.subr.bf16.mxu1 %v7687_v32  ;;  %5889 = vmatprep.subr.bf16.mxu0 %v7690_v33 }
 0x407   :  { %5718 = vmatpush1.bf16.msra.mxu1 %v7685_v17  ;;  %5890 = vmatpush1.bf16.msra.mxu0 %v7688_v18 }
 0x408   :  { %5719 = vmatprep.subr.bf16.mxu1 %v7693_v19  ;;  %5891 = vmatprep.subr.bf16.mxu0 %v7696_v21 }
 0x40b   :  { %5720 = vmatpush1.bf16.msra.mxu1 %v7691_v38  ;;  %5892 = vmatpush1.bf16.msra.mxu0 %v7694_v40  ;;  %v7721_v38 = vld [vmem:[#allocation14 + $0xa80] ss:$28 sps:$4 sm:$0xff]   ;;  %v7724_v40 = vld [vmem:[#allocation14 + $0xa88] ss:$28 sps:$4 sm:$0xff]  }
 0x40c   :  { %5721 = vmatprep.subr.bf16.mxu1 %v7699_v41  ;;  %5893 = vmatprep.subr.bf16.mxu0 %v7702_v43  ;;  %v7729_v43 = vld [vmem:[#allocation14 + $0xabc] ss:$28 sps:$4 sm:$0xff]  }
 0x40f   :  { %5722 = vmatpush1.bf16.msra.mxu1 %v7697_v45  ;;  %5894 = vmatpush1.bf16.msra.mxu0 %v7700_v46  ;;  %v7732_v45 = vld [vmem:[#allocation14 + $0xac4] ss:$28 sps:$4 sm:$0xff]   ;;  %v7727_v46 = vld [vmem:[#allocation14 + $0xab8] ss:$28 sps:$4 sm:$0xff]  }
 0x410   :  { %5723 = vmatprep.subr.bf16.mxu1 %v7705_v47  ;;  %5895 = vmatprep.subr.bf16.mxu0 %v7708_v48  ;;  %v7730_v47 = vld [vmem:[#allocation14 + $0xac0] ss:$28 sps:$4 sm:$0xff]   ;;  %v7735_v48 = vld [vmem:[#allocation14 + $0xaf4] ss:$28 sps:$4 sm:$0xff]  }
 0x413   :  { %5724 = vmatpush1.bf16.msra.mxu1 %v7703_v53  ;;  %5896 = vmatpush1.bf16.msra.mxu0 %v7706_v54  ;;  %v2639_v0 = vpop.f32.mrb[4].mxu1  ;;  %v7733_v53 = vld [vmem:[#allocation14 + $0xaf0] ss:$28 sps:$4 sm:$0xff]   ;;  %v7736_v54 = vld [vmem:[#allocation14 + $0xaf8] ss:$28 sps:$4 sm:$0xff]  }
 0x414   :  { %v7220_v11 = vadd.f32 %v2639_v0, %v1089_v57  ;;  %v2725_v3 = vpop.f32.mrb[16].mxu0  ;;  %v2641_v4 = vpop.f32.mrb[5].mxu1  ;;  %5725 = vmatprep.subr.bf16.mxu1 %v7711_v59  ;;  %5897 = vmatprep.subr.bf16.mxu0 %v7714_v60  ;;  %v7744_v59 = vld [vmem:[#allocation14 + $0xb34] ss:$28 sps:$4 sm:$0xff]   ;;  %v7739_v60 = vld [vmem:[#allocation14 + $0xb28] ss:$28 sps:$4 sm:$0xff]  }
 0x415   :  { %v7224_v8 = vadd.f32 %v2725_v3, %v1097_v61  ;;  %v7221_v9 = vadd.f32 %v2641_v4, %v1093_v62  ;;  %v2727_v12 = vpop.f32.mrb[17].mxu0  ;;  %v2643_v13 = vpop.f32.mrb[6].mxu1  ;;  %v7745_v0 = vld [vmem:[#allocation14 + $0xb60] ss:$28 sps:$4 sm:$0xff]   ;;  %v7751_v3 = vld [vmem:[#allocation14 + $0xb98] ss:$28 sps:$4 sm:$0xff]  }
 0x416   :  { %v7225_v14 = vadd.f32 %v2727_v12, %v1101_v63  ;;  %v7222_v34 = vadd.f32 %v2643_v13, %v1089_v57  ;;  %v2729_v10 = vpop.f32.mrb[18].mxu0  ;;  %v2645_v5 = vpop.f32.mrb[7].mxu1  ;;  %v2738_v26 = vmax.f32 %v7220_v11, 0.0  ;;  %v7741_v57 = vld [vmem:[#allocation14 + $0xb2c] ss:$28 sps:$4 sm:$0xff]  }
 0x417   :  { %v7226_v15 = vadd.f32 %v2729_v10, %v1097_v61  ;;  %v7223_v16 = vadd.f32 %v2645_v5, %v1093_v62  ;;  %v2731_v20 = vpop.f32.mrb[19].mxu0  ;;  %5726 = vmatpush1.bf16.msra.mxu1 %v7709_v1  ;;  %5898 = vmatpush1.bf16.msra.mxu0 %v7712_v2  ;;  %v2740_v29 = vmax.f32 %v7224_v8, 0.0  ;;  %v2739_v30 = vmax.f32 %v7221_v9, 0.0  ;;  %v7742_v61 = vld [vmem:[#allocation14 + $0xb30] ss:$28 sps:$4 sm:$0xff]  }
 0x418   :  { %v2746_v39 = vmax.f32 %v7222_v34, 0.0  ;;  %v7227_v27 = vadd.f32 %v2731_v20, %v1101_v63  ;;  %5727 = vmatprep.subr.bf16.mxu1 %v7717_v6  ;;  %5899 = vmatprep.subr.bf16.mxu0 %v7720_v7  ;;  %v2741_v33 = vmax.f32 %v7225_v14, 0.0  ;;  %v7747_v62 = vld [vmem:[#allocation14 + $0xb64] ss:$28 sps:$4 sm:$0xff]   ;;  %v7750_v63 = vld [vmem:[#allocation14 + $0xb6c] ss:$28 sps:$4 sm:$0xff]  }
 0x419   :  { %v2748_v31 = vmax.f32 %v7226_v15, 0.0  ;;  %v2747_v32 = vmax.f32 %v7223_v16, 0.0  ;;  %v7748_v1 = vld [vmem:[#allocation14 + $0xb68] ss:$28 sps:$4 sm:$0xff]   ;;  %v7753_v2 = vld [vmem:[#allocation14 + $0xb9c] ss:$28 sps:$4 sm:$0xff]  }
 0x41a   :  { %v8641_v17 = vpack.c.bf16 %v2746_v39, %v2738_v26  ;;  %v2749_v18 = vmax.f32 %v7227_v27, 0.0  ;;  %v7756_v11 = vld [vmem:[#allocation14 + $0xba4] ss:$28 sps:$4 sm:$0xff]   ;;  %v7759_v6 = vld [vmem:[#allocation14 + $0xbd4] ss:$28 sps:$4 sm:$0xff]  }
 0x41b   :  { %v8643_v19 = vpack.c.bf16 %v2748_v31, %v2740_v29  ;;  %v8645_v21 = vpack.c.bf16 %v2747_v32, %v2739_v30  ;;  %5728 = vmatpush1.bf16.msra.mxu1 %v7715_v22  ;;  %5900 = vmatpush1.bf16.msra.mxu0 %v7718_v25  ;;  %v7754_v4 = vld [vmem:[#allocation14 + $0xba0] ss:$28 sps:$4 sm:$0xff]   ;;  %v7757_v8 = vld [vmem:[#allocation14 + $0xbd0] ss:$28 sps:$4 sm:$0xff]   ;;  %v7760_v9 = vld [vmem:[#allocation14 + $0xbd8] ss:$28 sps:$4 sm:$0xff]  }
 0x41c   :  { %v8647_v41 = vpack.c.bf16 %v2749_v18, %v2741_v33  ;;  %5740 = vmatprep.subr.bf16.mxu1 %v7723_v55  ;;  %5912 = vmatprep.subr.bf16.mxu0 %v7726_v28  ;;  %v7762_v7 = vld [vmem:[#allocation14 + $0xbdc] ss:$28 sps:$4 sm:$0xff]   ;;  %v7765_v12 = vld [vmem:[#allocation14 + $0xc0c] ss:$28 sps:$4 sm:$0xff]   ;;  %v7768_v13 = vld [vmem:[#allocation14 + $0xc14] ss:$28 sps:$4 sm:$0xff]  }
 0x41d   :  { %5729 = vmatprep.mubr.bf16.mxu1 %v8645_v21  ;;  %5901 = vmatprep.mubr.bf16.mxu0 %v8645_v21  ;;  %v7763_v14 = vld [vmem:[#allocation14 + $0xc08] ss:$28 sps:$4 sm:$0xff]   ;;  %v7766_v34 = vld [vmem:[#allocation14 + $0xc10] ss:$28 sps:$4 sm:$0xff]   ;;  %v7769_v15 = vld [vmem:[#allocation14 + $0xc40] ss:$28 sps:$4 sm:$0xff]  }
 0x41e   :  { %5730 = vmatmul.mubr.bf16.vlgmr.msra.gmra.mrb[8].mxu1 %v8641_v17  ;;  %5902 = vmatmul.mubr.bf16.vlgmr.msra.gmra.mrb[20].mxu0 %v8641_v17  ;;  %v7771_v10 = vld [vmem:[#allocation14 + $0xc44] ss:$28 sps:$4 sm:$0xff]   ;;  %v7774_v5 = vld [vmem:[#allocation14 + $0xc4c] ss:$28 sps:$4 sm:$0xff]   ;;  %v7777_v20 = vld [vmem:[#allocation14 + $0xc7c] ss:$28 sps:$4 sm:$0xff]  }
 0x41f   :  { %5741 = vmatpush1.bf16.msra.mxu1 %v7721_v38  ;;  %5913 = vmatpush1.bf16.msra.mxu0 %v7724_v40  ;;  %v7772_v16 = vld [vmem:[#allocation14 + $0xc48] ss:$28 sps:$4 sm:$0xff]   ;;  %v7775_v25 = vld [vmem:[#allocation14 + $0xc78] ss:$28 sps:$4 sm:$0xff]   ;;  %v7778_v26 = vld [vmem:[#allocation14 + $0xc80] ss:$28 sps:$4 sm:$0xff]  }
 0x420   :  { %5772 = vmatprep.mubr.bf16.mxu1 %v8647_v41  ;;  %5944 = vmatprep.mubr.bf16.mxu0 %v8647_v41  ;;  %v7780_v22 = vld [vmem:[#allocation14 + $0xc84] ss:$28 sps:$4 sm:$0xff]   ;;  %v7783_v39 = vld [vmem:[#allocation14 + $0xcb4] ss:$28 sps:$4 sm:$0xff]   ;;  %v7786_v27 = vld [vmem:[#allocation14 + $0xcbc] ss:$28 sps:$4 sm:$0xff]  }
 0x421   :  { %5742 = vmatprep.subr.bf16.mxu1 %v7729_v43  ;;  %5914 = vmatprep.subr.bf16.mxu0 %v7732_v45  ;;  %v7781_v55 = vld [vmem:[#allocation14 + $0xcb0] ss:$28 sps:$4 sm:$0xff]   ;;  %v7784_v28 = vld [vmem:[#allocation14 + $0xcb8] ss:$28 sps:$4 sm:$0xff]   ;;  %v7787_v31 = vld [vmem:[#allocation14 + $0xce8] ss:$28 sps:$4 sm:$0xff]  }
 0x422   :  { %v7789_v29 = vld [vmem:[#allocation14 + $0xcec] ss:$28 sps:$4 sm:$0xff]   ;;  %v7792_v30 = vld [vmem:[#allocation14 + $0xcf4] ss:$28 sps:$4 sm:$0xff]   ;;  %v7795_v33 = vld [vmem:[#allocation14 + $0xd24] ss:$28 sps:$4 sm:$0xff]  }
 0x423   :  { %5743 = vmatpush1.bf16.msra.mxu1 %v7727_v46  ;;  %5915 = vmatpush1.bf16.msra.mxu0 %v7730_v47  ;;  %v7790_v32 = vld [vmem:[#allocation14 + $0xcf0] ss:$28 sps:$4 sm:$0xff]   ;;  %v7793_v38 = vld [vmem:[#allocation14 + $0xd20] ss:$28 sps:$4 sm:$0xff]   ;;  %v7796_v40 = vld [vmem:[#allocation14 + $0xd28] ss:$28 sps:$4 sm:$0xff]  }
 0x424   :  { %5744 = vmatprep.subr.bf16.mxu1 %v7735_v48  ;;  %5916 = vmatprep.subr.bf16.mxu0 %v7738_v52  ;;  %v7798_v18 = vld [vmem:[#allocation14 + $0xd2c] ss:$28 sps:$4 sm:$0xff]   ;;  %v7801_v43 = vld [vmem:[#allocation14 + $0xd5c] ss:$28 sps:$4 sm:$0xff]   ;;  %v7804_v45 = vld [vmem:[#allocation14 + $0xd64] ss:$28 sps:$4 sm:$0xff]  }
 0x425   :  { %v7799_v46 = vld [vmem:[#allocation14 + $0xd58] ss:$28 sps:$4 sm:$0xff]   ;;  %v7802_v47 = vld [vmem:[#allocation14 + $0xd60] ss:$28 sps:$4 sm:$0xff]  }
 0x426   :  { %v7807_v48 = vld [vmem:[#allocation14 + $0xd94] ss:$28 sps:$4 sm:$0xff]   ;;  %v7810_v52 = vld [vmem:[#allocation14 + $0xd9c] ss:$28 sps:$4 sm:$0xff]  }
 0x427   :  { %5745 = vmatpush1.bf16.msra.mxu1 %v7733_v53  ;;  %5917 = vmatpush1.bf16.msra.mxu0 %v7736_v54  ;;  %v7805_v53 = vld [vmem:[#allocation14 + $0xd90] ss:$28 sps:$4 sm:$0xff]   ;;  %v7808_v54 = vld [vmem:[#allocation14 + $0xd98] ss:$28 sps:$4 sm:$0xff]  }
 0x428   :  { %5746 = vmatprep.subr.bf16.mxu1 %v7741_v57  ;;  %5918 = vmatprep.subr.bf16.mxu0 %v7744_v59  ;;  %v7813_v57 = vld [vmem:[#allocation14 + $0xdcc] ss:$28 sps:$4 sm:$0xff]   ;;  %v7816_v59 = vld [vmem:[#allocation14 + $0xdd4] ss:$28 sps:$4 sm:$0xff]  }
 0x42b   :  { %5747 = vmatpush1.bf16.msra.mxu1 %v7739_v60  ;;  %5919 = vmatpush1.bf16.msra.mxu0 %v7742_v61  ;;  %v7811_v60 = vld [vmem:[#allocation14 + $0xdc8] ss:$28 sps:$4 sm:$0xff]   ;;  %v7814_v61 = vld [vmem:[#allocation14 + $0xdd0] ss:$28 sps:$4 sm:$0xff]  }
 0x42c   :  { %5748 = vmatprep.subr.bf16.mxu1 %v7747_v62  ;;  %5920 = vmatprep.subr.bf16.mxu0 %v7750_v63  ;;  %v7819_v62 = vld [vmem:[#allocation14 + $0x14] ss:$28 sps:$4 sm:$0xff]  }
 0x42d   :  { %v7820_v63 = vld [vmem:[#allocation14 + $0x1d8] ss:$28 sps:$4 sm:$0xff]  }
 0x42f   :  { %5749 = vmatpush1.bf16.msra.mxu1 %v7745_v0  ;;  %5921 = vmatpush1.bf16.msra.mxu0 %v7748_v1  ;;  %v7817_v0 = vld [vmem:[#allocation14 + $0x10] ss:$28 sps:$4 sm:$0xff]   ;;  %v7821_v1 = vld [vmem:[#allocation14 + $0x18] ss:$28 sps:$4 sm:$0xff]  }
 0x430   :  { %5750 = vmatprep.subr.bf16.mxu1 %v7753_v2  ;;  %5922 = vmatprep.subr.bf16.mxu0 %v7756_v11  ;;  %v7824_v2 = vld [vmem:[#allocation14 + $0x4c] ss:$28 sps:$4 sm:$0xff]  }
 0x431   :  { %v7825_v11 = vld [vmem:[#allocation14 + $0x210] ss:$28 sps:$4 sm:$0xff]  }
 0x433   :  { %5751 = vmatpush1.bf16.msra.mxu1 %v7751_v3  ;;  %5923 = vmatpush1.bf16.msra.mxu0 %v7754_v4  ;;  %v7822_v3 = vld [vmem:[#allocation14 + $0x48] ss:$28 sps:$4 sm:$0xff]   ;;  %v7826_v4 = vld [vmem:[#allocation14 + $0x50] ss:$28 sps:$4 sm:$0xff]  }
 0x434   :  { %5752 = vmatprep.subr.bf16.mxu1 %v7759_v6  ;;  %5924 = vmatprep.subr.bf16.mxu0 %v7762_v7  ;;  %v7829_v6 = vld [vmem:[#allocation14 + $0x84] ss:$28 sps:$4 sm:$0xff]  }
 0x435   :  { %v7830_v7 = vld [vmem:[#allocation14 + $0x248] ss:$28 sps:$4 sm:$0xff]  }
 0x437   :  { %5753 = vmatpush1.bf16.msra.mxu1 %v7757_v8  ;;  %5925 = vmatpush1.bf16.msra.mxu0 %v7760_v9  ;;  %v7827_v8 = vld [vmem:[#allocation14 + $0x80] ss:$28 sps:$4 sm:$0xff]   ;;  %v7831_v9 = vld [vmem:[#allocation14 + $0x88] ss:$28 sps:$4 sm:$0xff]  }
 0x438   :  { %5754 = vmatprep.subr.bf16.mxu1 %v7765_v12  ;;  %5926 = vmatprep.subr.bf16.mxu0 %v7768_v13  ;;  %v7834_v12 = vld [vmem:[#allocation14 + $0xbc] ss:$28 sps:$4 sm:$0xff]  }
 0x439   :  { %v7835_v13 = vld [vmem:[#allocation14 + $0x280] ss:$28 sps:$4 sm:$0xff]  }
 0x43b   :  { %5755 = vmatpush1.bf16.msra.mxu1 %v7763_v14  ;;  %5927 = vmatpush1.bf16.msra.mxu0 %v7766_v34  ;;  %v7832_v14 = vld [vmem:[#allocation14 + $0xb8] ss:$28 sps:$4 sm:$0xff]   ;;  %v7836_v34 = vld [vmem:[#allocation14 + $0xc0] ss:$28 sps:$4 sm:$0xff]  }
 0x43c   :  { %5756 = vmatprep.subr.bf16.mxu1 %v7771_v10  ;;  %5928 = vmatprep.subr.bf16.mxu0 %v7774_v5  ;;  %v7839_v10 = vld [vmem:[#allocation14 + $0xf4] ss:$28 sps:$4 sm:$0xff]  }
 0x43d   :  { %v7837_v5 = vld [vmem:[#allocation14 + $0xf0] ss:$28 sps:$4 sm:$0xff]  }
 0x43f   :  { %5757 = vmatpush1.bf16.msra.mxu1 %v7769_v15  ;;  %5929 = vmatpush1.bf16.msra.mxu0 %v7772_v16  ;;  %v7841_v15 = vld [vmem:[#allocation14 + $0xf8] ss:$28 sps:$4 sm:$0xff]   ;;  %v7844_v16 = vld [vmem:[#allocation14 + $0x12c] ss:$28 sps:$4 sm:$0xff]  }
 0x440   :  { %5758 = vmatprep.subr.bf16.mxu1 %v7777_v20  ;;  %5930 = vmatprep.subr.bf16.mxu0 %v7780_v22  ;;  %v7845_v20 = vld [vmem:[#allocation14 + $0x2f0] ss:$28 sps:$4 sm:$0xff]   ;;  %v7842_v22 = vld [vmem:[#allocation14 + $0x128] ss:$28 sps:$4 sm:$0xff]  }
 0x443   :  { %5759 = vmatpush1.bf16.msra.mxu1 %v7775_v25  ;;  %5931 = vmatpush1.bf16.msra.mxu0 %v7778_v26  ;;  %v7846_v25 = vld [vmem:[#allocation14 + $0x130] ss:$28 sps:$4 sm:$0xff]   ;;  %v7849_v26 = vld [vmem:[#allocation14 + $0x164] ss:$28 sps:$4 sm:$0xff]  }
 0x444   :  { %5760 = vmatprep.subr.bf16.mxu1 %v7783_v39  ;;  %5932 = vmatprep.subr.bf16.mxu0 %v7786_v27  ;;  %v7850_v39 = vld [vmem:[#allocation14 + $0x328] ss:$28 sps:$4 sm:$0xff]   ;;  %v7847_v27 = vld [vmem:[#allocation14 + $0x160] ss:$28 sps:$4 sm:$0xff]  }
 0x447   :  { %5761 = vmatpush1.bf16.msra.mxu1 %v7781_v55  ;;  %5933 = vmatpush1.bf16.msra.mxu0 %v7784_v28  ;;  %v7851_v55 = vld [vmem:[#allocation14 + $0x168] ss:$28 sps:$4 sm:$0xff]   ;;  %v7854_v28 = vld [vmem:[#allocation14 + $0x19c] ss:$28 sps:$4 sm:$0xff]  }
 0x448   :  { %5762 = vmatprep.subr.bf16.mxu1 %v7789_v29  ;;  %5934 = vmatprep.subr.bf16.mxu0 %v7792_v30  ;;  %v7855_v29 = vld [vmem:[#allocation14 + $0x360] ss:$28 sps:$4 sm:$0xff]   ;;  %v7852_v30 = vld [vmem:[#allocation14 + $0x198] ss:$28 sps:$4 sm:$0xff]  }
 0x44b   :  { %5763 = vmatpush1.bf16.msra.mxu1 %v7787_v31  ;;  %5935 = vmatpush1.bf16.msra.mxu0 %v7790_v32  ;;  %v7856_v31 = vld [vmem:[#allocation14 + $0x1a0] ss:$28 sps:$4 sm:$0xff]   ;;  %v7859_v32 = vld [vmem:[#allocation14 + $0x1d4] ss:$28 sps:$4 sm:$0xff]  }
 0x44c   :  { %5764 = vmatprep.subr.bf16.mxu1 %v7795_v33  ;;  %5936 = vmatprep.subr.bf16.mxu0 %v7798_v18  ;;  %v7860_v33 = vld [vmem:[#allocation14 + $0x558] ss:$28 sps:$4 sm:$0xff]   ;;  %v7857_v18 = vld [vmem:[#allocation14 + $0x1d0] ss:$28 sps:$4 sm:$0xff]  }
 0x44f   :  { %5765 = vmatpush1.bf16.msra.mxu1 %v7793_v38  ;;  %5937 = vmatpush1.bf16.msra.mxu0 %v7796_v40  ;;  %v7861_v38 = vld [vmem:[#allocation14 + $0x398] ss:$28 sps:$4 sm:$0xff]   ;;  %v7864_v40 = vld [vmem:[#allocation14 + $0x20c] ss:$28 sps:$4 sm:$0xff]  }
 0x450   :  { %5766 = vmatprep.subr.bf16.mxu1 %v7801_v43  ;;  %5938 = vmatprep.subr.bf16.mxu0 %v7804_v45  ;;  %v7865_v43 = vld [vmem:[#allocation14 + $0x590] ss:$28 sps:$4 sm:$0xff]   ;;  %v7862_v45 = vld [vmem:[#allocation14 + $0x208] ss:$28 sps:$4 sm:$0xff]  }
 0x453   :  { %5767 = vmatpush1.bf16.msra.mxu1 %v7799_v46  ;;  %5939 = vmatpush1.bf16.msra.mxu0 %v7802_v47  ;;  %v7866_v46 = vld [vmem:[#allocation14 + $0x3d0] ss:$28 sps:$4 sm:$0xff]   ;;  %v7869_v47 = vld [vmem:[#allocation14 + $0x244] ss:$28 sps:$4 sm:$0xff]  }
 0x454   :  { %5768 = vmatprep.subr.bf16.mxu1 %v7807_v48  ;;  %5940 = vmatprep.subr.bf16.mxu0 %v7810_v52  ;;  %v7870_v48 = vld [vmem:[#allocation14 + $0x5c8] ss:$28 sps:$4 sm:$0xff]   ;;  %v7867_v52 = vld [vmem:[#allocation14 + $0x240] ss:$28 sps:$4 sm:$0xff]  }
 0x457   :  { %5769 = vmatpush1.bf16.msra.mxu1 %v7805_v53  ;;  %5941 = vmatpush1.bf16.msra.mxu0 %v7808_v54  ;;  %v7871_v53 = vld [vmem:[#allocation14 + $0x408] ss:$28 sps:$4 sm:$0xff]   ;;  %v7874_v54 = vld [vmem:[#allocation14 + $0x27c] ss:$28 sps:$4 sm:$0xff]  }
 0x458   :  { %5770 = vmatprep.subr.bf16.mxu1 %v7813_v57  ;;  %5942 = vmatprep.subr.bf16.mxu0 %v7816_v59  ;;  %v7875_v57 = vld [vmem:[#allocation14 + $0x600] ss:$28 sps:$4 sm:$0xff]   ;;  %v7872_v59 = vld [vmem:[#allocation14 + $0x278] ss:$28 sps:$4 sm:$0xff]  }
 0x45b   :  { %5771 = vmatpush1.bf16.msra.mxu1 %v7811_v60  ;;  %5943 = vmatpush1.bf16.msra.mxu0 %v7814_v61  ;;  %v7876_v60 = vld [vmem:[#allocation14 + $0x440] ss:$28 sps:$4 sm:$0xff]   ;;  %v7879_v61 = vld [vmem:[#allocation14 + $0x2b4] ss:$28 sps:$4 sm:$0xff]  }
 0x45c   :  { %5955 = vmatprep.subr.bf16.mxu1 %v7819_v62  ;;  %7124 = vmatprep.subr.bf16.mxu0 %v7820_v63  ;;  %v7880_v62 = vld [vmem:[#allocation14 + $0x638] ss:$28 sps:$4 sm:$0xff]   ;;  %v7877_v63 = vld [vmem:[#allocation14 + $0x2b0] ss:$28 sps:$4 sm:$0xff]  }
 0x45e   :  { %5773 = vmatmul.mubr.bf16.vlgmr.msra.gmra.mrb[8].mxu1 %v8643_v19  ;;  %5945 = vmatmul.mubr.bf16.vlgmr.msra.gmra.mrb[20].mxu0 %v8643_v19 }
 0x45f   :  { %5956 = vmatpush1.bf16.msra.mxu1 %v7817_v0  ;;  %5987 = vmatprep.mubr.bf16.mxu1 %v8615_v35  ;;  %v7881_v0 = vld [vmem:[#allocation14 + $0x478] ss:$28 sps:$4 sm:$0xff]  }
 0x460   :  { %7125 = vmatpush3.bf16.msra.mxu0 %v7821_v1  ;;  %6159 = vmatprep.mubr.bf16.mxu0 %v8615_v35  ;;  %v7840_v35 = vld [vmem:[#allocation14 + $0x2b8] ss:$28 sps:$4 sm:$0xff]   ;;  %v7884_v1 = vld [vmem:[#allocation14 + $0x2ec] ss:$28 sps:$4 sm:$0xff]  }
 0x461   :  { %5957 = vmatprep.subr.bf16.mxu1 %v7824_v2  ;;  %7126 = vmatprep.subr.bf16.mxu0 %v7825_v11  ;;  %v7885_v2 = vld [vmem:[#allocation14 + $0x670] ss:$28 sps:$4 sm:$0xff]   ;;  %v7882_v11 = vld [vmem:[#allocation14 + $0x2e8] ss:$28 sps:$4 sm:$0xff]  }
 0x463   :  { %5958 = vmatpush1.bf16.msra.mxu1 %v7822_v3  ;;  %v7886_v3 = vld [vmem:[#allocation14 + $0x4b0] ss:$28 sps:$4 sm:$0xff]  }
 0x464   :  { %7127 = vmatpush3.bf16.msra.mxu0 %v7826_v4  ;;  %5959 = vmatprep.subr.bf16.mxu1 %v7829_v6  ;;  %v7889_v4 = vld [vmem:[#allocation14 + $0x324] ss:$28 sps:$4 sm:$0xff]  }
 0x465   :  { %7128 = vmatprep.subr.bf16.mxu0 %v7830_v7  ;;  %v7890_v6 = vld [vmem:[#allocation14 + $0x6a8] ss:$28 sps:$4 sm:$0xff]   ;;  %v7887_v7 = vld [vmem:[#allocation14 + $0x320] ss:$28 sps:$4 sm:$0xff]  }
 0x467   :  { %5960 = vmatpush1.bf16.msra.mxu1 %v7827_v8  ;;  %v7891_v8 = vld [vmem:[#allocation14 + $0x4e8] ss:$28 sps:$4 sm:$0xff]  }
 0x468   :  { %7129 = vmatpush3.bf16.msra.mxu0 %v7831_v9  ;;  %5961 = vmatprep.subr.bf16.mxu1 %v7834_v12  ;;  %v7894_v9 = vld [vmem:[#allocation14 + $0x35c] ss:$28 sps:$4 sm:$0xff]  }
 0x469   :  { %7130 = vmatprep.subr.bf16.mxu0 %v7835_v13  ;;  %v7895_v12 = vld [vmem:[#allocation14 + $0x6e0] ss:$28 sps:$4 sm:$0xff]   ;;  %v7892_v13 = vld [vmem:[#allocation14 + $0x358] ss:$28 sps:$4 sm:$0xff]  }
 0x46b   :  { %5962 = vmatpush1.bf16.msra.mxu1 %v7832_v14  ;;  %v7896_v14 = vld [vmem:[#allocation14 + $0x520] ss:$28 sps:$4 sm:$0xff]  }
 0x46c   :  { %7131 = vmatpush3.bf16.msra.mxu0 %v7836_v34  ;;  %5963 = vmatprep.subr.bf16.mxu1 %v7839_v10  ;;  %v7899_v34 = vld [vmem:[#allocation14 + $0x394] ss:$28 sps:$4 sm:$0xff]  }
 0x46d   :  { %7132 = vmatprep.subr.bf16.mxu0 %v7840_v35  ;;  %v7900_v10 = vld [vmem:[#allocation14 + $0x8d8] ss:$28 sps:$4 sm:$0xff]   ;;  %v7897_v35 = vld [vmem:[#allocation14 + $0x390] ss:$28 sps:$4 sm:$0xff]  }
 0x46f   :  { %5964 = vmatpush1.bf16.msra.mxu1 %v7837_v5  ;;  %v7901_v5 = vld [vmem:[#allocation14 + $0x718] ss:$28 sps:$4 sm:$0xff]  }
 0x470   :  { %7133 = vmatpush3.bf16.msra.mxu0 %v7841_v15  ;;  %5965 = vmatprep.subr.bf16.mxu1 %v7844_v16  ;;  %v7904_v15 = vld [vmem:[#allocation14 + $0x3cc] ss:$28 sps:$4 sm:$0xff]  }
 0x471   :  { %7134 = vmatprep.subr.bf16.mxu0 %v7845_v20  ;;  %v7905_v16 = vld [vmem:[#allocation14 + $0x910] ss:$28 sps:$4 sm:$0xff]   ;;  %v7902_v20 = vld [vmem:[#allocation14 + $0x3c8] ss:$28 sps:$4 sm:$0xff]  }
 0x473   :  { %5966 = vmatpush1.bf16.msra.mxu1 %v7842_v22  ;;  %v7906_v22 = vld [vmem:[#allocation14 + $0x750] ss:$28 sps:$4 sm:$0xff]  }
 0x474   :  { %7135 = vmatpush3.bf16.msra.mxu0 %v7846_v25  ;;  %5967 = vmatprep.subr.bf16.mxu1 %v7849_v26  ;;  %v7909_v25 = vld [vmem:[#allocation14 + $0x404] ss:$28 sps:$4 sm:$0xff]  }
 0x475   :  { %7136 = vmatprep.subr.bf16.mxu0 %v7850_v39  ;;  %v7910_v26 = vld [vmem:[#allocation14 + $0x948] ss:$28 sps:$4 sm:$0xff]   ;;  %v7907_v39 = vld [vmem:[#allocation14 + $0x400] ss:$28 sps:$4 sm:$0xff]  }
 0x477   :  { %5968 = vmatpush1.bf16.msra.mxu1 %v7847_v27  ;;  %v7914_v27 = vld [vmem:[#allocation14 + $0x43c] ss:$28 sps:$4 sm:$0xff]  }
 0x478   :  { %7137 = vmatpush3.bf16.msra.mxu0 %v7851_v55  ;;  %5969 = vmatprep.subr.bf16.mxu1 %v7854_v28  ;;  %v7915_v55 = vld [vmem:[#allocation14 + $0x980] ss:$28 sps:$4 sm:$0xff]   ;;  %v7912_v28 = vld [vmem:[#allocation14 + $0x438] ss:$28 sps:$4 sm:$0xff]  }
 0x479   :  { %7138 = vmatprep.subr.bf16.mxu0 %v7855_v29  ;;  %v7919_v29 = vld [vmem:[#allocation14 + $0x474] ss:$28 sps:$4 sm:$0xff]  }
 0x47b   :  { %5970 = vmatpush1.bf16.msra.mxu1 %v7852_v30  ;;  %v7920_v30 = vld [vmem:[#allocation14 + $0x9b8] ss:$28 sps:$4 sm:$0xff]  }
 0x47c   :  { %7139 = vmatpush3.bf16.msra.mxu0 %v7856_v31  ;;  %5971 = vmatprep.subr.bf16.mxu1 %v7859_v32  ;;  %v7917_v31 = vld [vmem:[#allocation14 + $0x470] ss:$28 sps:$4 sm:$0xff]   ;;  %v7921_v32 = vld [vmem:[#allocation14 + $0x7f8] ss:$28 sps:$4 sm:$0xff]  }
 0x47d   :  { %7146 = vmatprep.subr.bf16.mxu0 %v7860_v33  ;;  %v7924_v33 = vld [vmem:[#allocation14 + $0x4ac] ss:$28 sps:$4 sm:$0xff]  }
 0x47f   :  { %6160 = vmatmul.mubr.bf16.vlgmr.msra.gmra.mrb[24].mxu0 %v8611_v23  ;;  %5972 = vmatpush1.bf16.msra.mxu1 %v7857_v18  ;;  %v7925_v18 = vld [vmem:[#allocation14 + $0x9f0] ss:$28 sps:$4 sm:$0xff]  }
 0x480   :  { %7147 = vmatpush3.bf16.msra.mxu0 %v7861_v38  ;;  %6200 = vmatprep.mubr.bf16.mxu0 %v8617_v37  ;;  %v7922_v38 = vld [vmem:[#allocation14 + $0x4a8] ss:$28 sps:$4 sm:$0xff]  }
 0x481   :  { %5973 = vmatprep.subr.bf16.mxu1 %v7864_v40  ;;  %7148 = vmatprep.subr.bf16.mxu0 %v7865_v43  ;;  %v7926_v40 = vld [vmem:[#allocation14 + $0x830] ss:$28 sps:$4 sm:$0xff]   ;;  %v7929_v43 = vld [vmem:[#allocation14 + $0x4e4] ss:$28 sps:$4 sm:$0xff]  }
 0x483   :  { %5974 = vmatpush1.bf16.msra.mxu1 %v7862_v45  ;;  %v7930_v45 = vld [vmem:[#allocation14 + $0xa28] ss:$28 sps:$4 sm:$0xff]  }
 0x484   :  { %7149 = vmatpush3.bf16.msra.mxu0 %v7866_v46  ;;  %5975 = vmatprep.subr.bf16.mxu1 %v7869_v47  ;;  %v7927_v46 = vld [vmem:[#allocation14 + $0x4e0] ss:$28 sps:$4 sm:$0xff]   ;;  %v7931_v47 = vld [vmem:[#allocation14 + $0x868] ss:$28 sps:$4 sm:$0xff]  }
 0x485   :  { %7150 = vmatprep.subr.bf16.mxu0 %v7870_v48  ;;  %v7934_v48 = vld [vmem:[#allocation14 + $0x51c] ss:$28 sps:$4 sm:$0xff]  }
 0x487   :  { %5976 = vmatpush1.bf16.msra.mxu1 %v7867_v52  ;;  %v7935_v52 = vld [vmem:[#allocation14 + $0xa60] ss:$28 sps:$4 sm:$0xff]  }
 0x488   :  { %7151 = vmatpush3.bf16.msra.mxu0 %v7871_v53  ;;  %5977 = vmatprep.subr.bf16.mxu1 %v7874_v54  ;;  %v7932_v53 = vld [vmem:[#allocation14 + $0x518] ss:$28 sps:$4 sm:$0xff]   ;;  %v7936_v54 = vld [vmem:[#allocation14 + $0x8a0] ss:$28 sps:$4 sm:$0xff]  }
 0x489   :  { %7152 = vmatprep.subr.bf16.mxu0 %v7875_v57  ;;  %v7939_v57 = vld [vmem:[#allocation14 + $0x554] ss:$28 sps:$4 sm:$0xff]  }
 0x48b   :  { %5978 = vmatpush1.bf16.msra.mxu1 %v7872_v59  ;;  %v7940_v59 = vld [vmem:[#allocation14 + $0xc58] ss:$28 sps:$4 sm:$0xff]  }
 0x48c   :  { %7153 = vmatpush3.bf16.msra.mxu0 %v7876_v60  ;;  %5979 = vmatprep.subr.bf16.mxu1 %v7879_v61  ;;  %v7937_v60 = vld [vmem:[#allocation14 + $0x550] ss:$28 sps:$4 sm:$0xff]   ;;  %v7941_v61 = vld [vmem:[#allocation14 + $0xa98] ss:$28 sps:$4 sm:$0xff]  }
 0x48d   :  { %7154 = vmatprep.subr.bf16.mxu0 %v7880_v62  ;;  %v7944_v62 = vld [vmem:[#allocation14 + $0x58c] ss:$28 sps:$4 sm:$0xff]  }
 0x48f   :  { %5980 = vmatpush1.bf16.msra.mxu1 %v7877_v63  ;;  %v7945_v63 = vld [vmem:[#allocation14 + $0xc90] ss:$28 sps:$4 sm:$0xff]  }
 0x490   :  { %7155 = vmatpush3.bf16.msra.mxu0 %v7881_v0  ;;  %5981 = vmatprep.subr.bf16.mxu1 %v7884_v1  ;;  %v7942_v0 = vld [vmem:[#allocation14 + $0x588] ss:$28 sps:$4 sm:$0xff]   ;;  %v7946_v1 = vld [vmem:[#allocation14 + $0xad0] ss:$28 sps:$4 sm:$0xff]  }
 0x491   :  { %7156 = vmatprep.subr.bf16.mxu0 %v7885_v2  ;;  %v7949_v2 = vld [vmem:[#allocation14 + $0x5c4] ss:$28 sps:$4 sm:$0xff]  }
 0x493   :  { %5982 = vmatpush1.bf16.msra.mxu1 %v7882_v11  ;;  %v7950_v11 = vld [vmem:[#allocation14 + $0xcc8] ss:$28 sps:$4 sm:$0xff]  }
 0x494   :  { %7157 = vmatpush3.bf16.msra.mxu0 %v7886_v3  ;;  %5983 = vmatprep.subr.bf16.mxu1 %v7889_v4  ;;  %v7947_v3 = vld [vmem:[#allocation14 + $0x5c0] ss:$28 sps:$4 sm:$0xff]   ;;  %v7951_v4 = vld [vmem:[#allocation14 + $0xb08] ss:$28 sps:$4 sm:$0xff]  }
 0x495   :  { %7158 = vmatprep.subr.bf16.mxu0 %v7890_v6  ;;  %v7954_v6 = vld [vmem:[#allocation14 + $0x5fc] ss:$28 sps:$4 sm:$0xff]  }
 0x497   :  { %5984 = vmatpush1.bf16.msra.mxu1 %v7887_v7  ;;  %v7955_v7 = vld [vmem:[#allocation14 + $0xd00] ss:$28 sps:$4 sm:$0xff]  }
 0x498   :  { %7159 = vmatpush3.bf16.msra.mxu0 %v7891_v8  ;;  %5985 = vmatprep.subr.bf16.mxu1 %v7894_v9  ;;  %v7952_v8 = vld [vmem:[#allocation14 + $0x5f8] ss:$28 sps:$4 sm:$0xff]   ;;  %v7956_v9 = vld [vmem:[#allocation14 + $0xb40] ss:$28 sps:$4 sm:$0xff]  }
 0x499   :  { %7160 = vmatprep.subr.bf16.mxu0 %v7895_v12  ;;  %v7959_v12 = vld [vmem:[#allocation14 + $0x634] ss:$28 sps:$4 sm:$0xff]  }
 0x49b   :  { %5986 = vmatpush1.bf16.msra.mxu1 %v7892_v13  ;;  %v7960_v13 = vld [vmem:[#allocation14 + $0xd38] ss:$28 sps:$4 sm:$0xff]  }
 0x49c   :  { %7161 = vmatpush3.bf16.msra.mxu0 %v7896_v14  ;;  %5998 = vmatprep.subr.bf16.mxu1 %v7899_v34  ;;  %v7957_v14 = vld [vmem:[#allocation14 + $0x630] ss:$28 sps:$4 sm:$0xff]   ;;  %v7961_v34 = vld [vmem:[#allocation14 + $0xb78] ss:$28 sps:$4 sm:$0xff]  }
 0x49d   :  { %7168 = vmatprep.subr.bf16.mxu0 %v7900_v10  ;;  %v7964_v10 = vld [vmem:[#allocation14 + $0x66c] ss:$28 sps:$4 sm:$0xff]  }
 0x49e   :  { %5988 = vmatmul.mubr.bf16.vlgmr.msra.gmra.mrb[12].mxu1 %v8611_v23  ;;  %v7911_v23 = vld [vmem:[#allocation14 + $0x788] ss:$28 sps:$4 sm:$0xff]  }
 0x49f   :  { %6201 = vmatmul.mubr.bf16.vlgmr.msra.gmra.mrb[28].mxu0 %v8613_v24  ;;  %5999 = vmatpush1.bf16.msra.mxu1 %v7897_v35  ;;  %v7965_v35 = vld [vmem:[#allocation14 + $0xd70] ss:$28 sps:$4 sm:$0xff]  }
 0x4a0   :  { %6030 = vmatprep.mubr.bf16.mxu1 %v8617_v37  ;;  %7169 = vmatpush3.bf16.msra.mxu0 %v7901_v5  ;;  %v7916_v37 = vld [vmem:[#allocation14 + $0x7c0] ss:$28 sps:$4 sm:$0xff]   ;;  %v7962_v5 = vld [vmem:[#allocation14 + $0x668] ss:$28 sps:$4 sm:$0xff]  }
 0x4a1   :  { %6241 = vmatprep.mubr.bf16.mxu0 %v8645_v21  ;;  %6000 = vmatprep.subr.bf16.mxu1 %v7904_v15  ;;  %v7966_v15 = vld [vmem:[#allocation14 + $0xbb0] ss:$28 sps:$4 sm:$0xff]  }
 0x4a2   :  { %7170 = vmatprep.subr.bf16.mxu0 %v7905_v16  ;;  %v7969_v16 = vld [vmem:[#allocation14 + $0x6a4] ss:$28 sps:$4 sm:$0xff]  }
 0x4a3   :  { %6001 = vmatpush1.bf16.msra.mxu1 %v7902_v20  ;;  %v7970_v20 = vld [vmem:[#allocation14 + $0xda8] ss:$28 sps:$4 sm:$0xff]  }
 0x4a4   :  { %7171 = vmatpush3.bf16.msra.mxu0 %v7906_v22  ;;  %6002 = vmatprep.subr.bf16.mxu1 %v7909_v25  ;;  %v7967_v22 = vld [vmem:[#allocation14 + $0x6a0] ss:$28 sps:$4 sm:$0xff]   ;;  %v7971_v25 = vld [vmem:[#allocation14 + $0xbe8] ss:$28 sps:$4 sm:$0xff]  }
 0x4a5   :  { %7172 = vmatprep.subr.bf16.mxu0 %v7910_v26  ;;  %v7974_v26 = vld [vmem:[#allocation14 + $0x6dc] ss:$28 sps:$4 sm:$0xff]  }
 0x4a7   :  { %6003 = vmatpush1.bf16.msra.mxu1 %v7907_v39  ;;  %v7975_v39 = vld [vmem:[#allocation14 + $0xde0] ss:$28 sps:$4 sm:$0xff]  }
 0x4a8   :  { %7173 = vmatpush3.bf16.msra.mxu0 %v7911_v23  ;;  %6004 = vmatprep.subr.bf16.mxu1 %v7914_v27  ;;  %v7972_v23 = vld [vmem:[#allocation14 + $0x6d8] ss:$28 sps:$4 sm:$0xff]   ;;  %v7976_v27 = vld [vmem:[#allocation14 + $0xc20] ss:$28 sps:$4 sm:$0xff]  }
 0x4a9   :  { %7174 = vmatprep.subr.bf16.mxu0 %v7915_v55  ;;  %v7979_v55 = vld [vmem:[#allocation14 + $0x714] ss:$28 sps:$4 sm:$0xff]  }
 0x4ab   :  { %6005 = vmatpush1.bf16.msra.mxu1 %v7912_v28  ;;  %v7977_v28 = vld [vmem:[#allocation14 + $0x710] ss:$28 sps:$4 sm:$0xff]  }
 0x4ac   :  { %7175 = vmatpush3.bf16.msra.mxu0 %v7916_v37  ;;  %6006 = vmatprep.subr.bf16.mxu1 %v7919_v29  ;;  %v7982_v37 = vld [vmem:[#allocation14 + $0x74c] ss:$28 sps:$4 sm:$0xff]  }
 0x4ad   :  { %7176 = vmatprep.subr.bf16.mxu0 %v7920_v30  ;;  %v7980_v29 = vld [vmem:[#allocation14 + $0x748] ss:$28 sps:$4 sm:$0xff]  }
 0x4ae   :  { %v7985_v30 = vld [vmem:[#allocation14 + $0x784] ss:$28 sps:$4 sm:$0xff]  }
 0x4af   :  { %6007 = vmatpush1.bf16.msra.mxu1 %v7917_v31  ;;  %v7983_v31 = vld [vmem:[#allocation14 + $0x780] ss:$28 sps:$4 sm:$0xff]  }
 0x4b0   :  { %7177 = vmatpush3.bf16.msra.mxu0 %v7921_v32  ;;  %6008 = vmatprep.subr.bf16.mxu1 %v7924_v33  ;;  %v7988_v32 = vld [vmem:[#allocation14 + $0x7bc] ss:$28 sps:$4 sm:$0xff]  }
 0x4b1   :  { %7178 = vmatprep.subr.bf16.mxu0 %v7925_v18  ;;  %v7986_v33 = vld [vmem:[#allocation14 + $0x7b8] ss:$28 sps:$4 sm:$0xff]  }
 0x4b2   :  { %v7991_v18 = vld [vmem:[#allocation14 + $0x7f4] ss:$28 sps:$4 sm:$0xff]  }
 0x4b3   :  { %6009 = vmatpush1.bf16.msra.mxu1 %v7922_v38  ;;  %v7989_v38 = vld [vmem:[#allocation14 + $0x7f0] ss:$28 sps:$4 sm:$0xff]  }
 0x4b4   :  { %7179 = vmatpush3.bf16.msra.mxu0 %v7926_v40  ;;  %6010 = vmatprep.subr.bf16.mxu1 %v7929_v43  ;;  %v7992_v40 = vld [vmem:[#allocation14 + $0x828] ss:$28 sps:$4 sm:$0xff]  }
 0x4b5   :  { %7180 = vmatprep.subr.bf16.mxu0 %v7930_v45  ;;  %v7997_v43 = vld [vmem:[#allocation14 + $0x864] ss:$28 sps:$4 sm:$0xff]   ;;  %v8000_v45 = vld [vmem:[#allocation14 + $0x89c] ss:$28 sps:$4 sm:$0xff]  }
 0x4b7   :  { %6011 = vmatpush1.bf16.msra.mxu1 %v7927_v46  ;;  %v7998_v46 = vld [vmem:[#allocation14 + $0x898] ss:$28 sps:$4 sm:$0xff]  }
 0x4b8   :  { %7181 = vmatpush3.bf16.msra.mxu0 %v7931_v47  ;;  %6012 = vmatprep.subr.bf16.mxu1 %v7934_v48  ;;  %v8003_v47 = vld [vmem:[#allocation14 + $0x8d4] ss:$28 sps:$4 sm:$0xff]  }
 0x4b9   :  { %7182 = vmatprep.subr.bf16.mxu0 %v7935_v52  ;;  %v8001_v48 = vld [vmem:[#allocation14 + $0x8d0] ss:$28 sps:$4 sm:$0xff]  }
 0x4ba   :  { %v8006_v52 = vld [vmem:[#allocation14 + $0x90c] ss:$28 sps:$4 sm:$0xff]  }
 0x4bb   :  { %6013 = vmatpush1.bf16.msra.mxu1 %v7932_v53  ;;  %v8004_v53 = vld [vmem:[#allocation14 + $0x908] ss:$28 sps:$4 sm:$0xff]  }
 0x4bc   :  { %7183 = vmatpush3.bf16.msra.mxu0 %v7936_v54  ;;  %6014 = vmatprep.subr.bf16.mxu1 %v7939_v57  ;;  %v8009_v54 = vld [vmem:[#allocation14 + $0x944] ss:$28 sps:$4 sm:$0xff]  }
 0x4bd   :  { %7190 = vmatprep.subr.bf16.mxu0 %v7940_v59  ;;  %v8007_v57 = vld [vmem:[#allocation14 + $0x940] ss:$28 sps:$4 sm:$0xff]  }
 0x4be   :  { %v8012_v59 = vld [vmem:[#allocation14 + $0x97c] ss:$28 sps:$4 sm:$0xff]  }
 0x4bf   :  { %6242 = vmatmul.mubr.bf16.vlgmr.msra.gmra.mrb[32].mxu0 %v8641_v17  ;;  %6015 = vmatpush1.bf16.msra.mxu1 %v7937_v60  ;;  %v8010_v60 = vld [vmem:[#allocation14 + $0x978] ss:$28 sps:$4 sm:$0xff]  }
 0x4c0   :  { %7191 = vmatpush3.bf16.msra.mxu0 %v7941_v61  ;;  %6282 = vmatprep.mubr.bf16.mxu0 %v8647_v41  ;;  %v8015_v61 = vld [vmem:[#allocation14 + $0x9b4] ss:$28 sps:$4 sm:$0xff]  }
 0x4c1   :  { %6016 = vmatprep.subr.bf16.mxu1 %v7944_v62  ;;  %7192 = vmatprep.subr.bf16.mxu0 %v7945_v63  ;;  %v8013_v62 = vld [vmem:[#allocation14 + $0x9b0] ss:$28 sps:$4 sm:$0xff]  }
 0x4c2   :  { %v8018_v63 = vld [vmem:[#allocation14 + $0x9ec] ss:$28 sps:$4 sm:$0xff]  }
 0x4c3   :  { %6017 = vmatpush1.bf16.msra.mxu1 %v7942_v0  ;;  %v8016_v0 = vld [vmem:[#allocation14 + $0x9e8] ss:$28 sps:$4 sm:$0xff]  }
 0x4c4   :  { %7193 = vmatpush3.bf16.msra.mxu0 %v7946_v1  ;;  %6018 = vmatprep.subr.bf16.mxu1 %v7949_v2  ;;  %v8021_v1 = vld [vmem:[#allocation14 + $0xa24] ss:$28 sps:$4 sm:$0xff]  }
 0x4c5   :  { %7194 = vmatprep.subr.bf16.mxu0 %v7950_v11  ;;  %v8019_v2 = vld [vmem:[#allocation14 + $0xa20] ss:$28 sps:$4 sm:$0xff]  }
 0x4c6   :  { %v8024_v11 = vld [vmem:[#allocation14 + $0xa5c] ss:$28 sps:$4 sm:$0xff]  }
 0x4c7   :  { %6019 = vmatpush1.bf16.msra.mxu1 %v7947_v3  ;;  %v8022_v3 = vld [vmem:[#allocation14 + $0xa58] ss:$28 sps:$4 sm:$0xff]  }
 0x4c8   :  { %7195 = vmatpush3.bf16.msra.mxu0 %v7951_v4  ;;  %6020 = vmatprep.subr.bf16.mxu1 %v7954_v6  ;;  %v8027_v4 = vld [vmem:[#allocation14 + $0xa94] ss:$28 sps:$4 sm:$0xff]  }
 0x4c9   :  { %7196 = vmatprep.subr.bf16.mxu0 %v7955_v7  ;;  %v8025_v6 = vld [vmem:[#allocation14 + $0xa90] ss:$28 sps:$4 sm:$0xff]  }
 0x4ca   :  { %v8030_v7 = vld [vmem:[#allocation14 + $0xacc] ss:$28 sps:$4 sm:$0xff]  }
 0x4cb   :  { %6021 = vmatpush1.bf16.msra.mxu1 %v7952_v8  ;;  %v8028_v8 = vld [vmem:[#allocation14 + $0xac8] ss:$28 sps:$4 sm:$0xff]  }
 0x4cc   :  { %7197 = vmatpush3.bf16.msra.mxu0 %v7956_v9  ;;  %6022 = vmatprep.subr.bf16.mxu1 %v7959_v12  ;;  %v8033_v9 = vld [vmem:[#allocation14 + $0xb04] ss:$28 sps:$4 sm:$0xff]  }
 0x4cd   :  { %7198 = vmatprep.subr.bf16.mxu0 %v7960_v13  ;;  %v8031_v12 = vld [vmem:[#allocation14 + $0xb00] ss:$28 sps:$4 sm:$0xff]  }
 0x4ce   :  { %v8036_v13 = vld [vmem:[#allocation14 + $0xb3c] ss:$28 sps:$4 sm:$0xff]  }
 0x4cf   :  { %6023 = vmatpush1.bf16.msra.mxu1 %v7957_v14  ;;  %v8034_v14 = vld [vmem:[#allocation14 + $0xb38] ss:$28 sps:$4 sm:$0xff]  }
 0x4d0   :  { %7199 = vmatpush3.bf16.msra.mxu0 %v7961_v34  ;;  %6024 = vmatprep.subr.bf16.mxu1 %v7964_v10  ;;  %v8039_v34 = vld [vmem:[#allocation14 + $0xb74] ss:$28 sps:$4 sm:$0xff]  }
 0x4d1   :  { %7200 = vmatprep.subr.bf16.mxu0 %v7965_v35  ;;  %v8037_v10 = vld [vmem:[#allocation14 + $0xb70] ss:$28 sps:$4 sm:$0xff]   ;;  %v8672_v35 = vld [vmem:[#allocation16] sm:$0xff] }
 0x4d3   :  { %6025 = vmatpush1.bf16.msra.mxu1 %v7962_v5  ;;  %v3283_v5 = vrot.slane %v8672_v35, %v8576_v56 }
 0x4d4   :  { %7201 = vmatpush3.bf16.msra.mxu0 %v7966_v15  ;;  %6026 = vmatprep.subr.bf16.mxu1 %v7969_v16  ;;  %v3279_v15 = vrot.slane %v8672_v35, %v8531_v44  ;;  %v3287_v16 = vrot.slane %v8672_v35, %v8579_v58  ;;  %v8048_v58 = vld [vmem:[#allocation14 + $0xc1c] ss:$28 sps:$4 sm:$0xff]  }
 0x4d5   :  { %7202 = vmatprep.subr.bf16.mxu0 %v7970_v20  ;;  %v8040_v20 = vld [vmem:[#allocation14 + $0xba8] ss:$28 sps:$4 sm:$0xff]  }
 0x4d7   :  { %6027 = vmatpush1.bf16.msra.mxu1 %v7967_v22  ;;  %v8045_v22 = vld [vmem:[#allocation14 + $0xbe4] ss:$28 sps:$4 sm:$0xff]  }
 0x4d8   :  { %7203 = vmatpush3.bf16.msra.mxu0 %v7971_v25  ;;  %6028 = vmatprep.subr.bf16.mxu1 %v7974_v26 }
 0x4d9   :  { %7204 = vmatprep.subr.bf16.mxu0 %v7975_v39 }
 0x4db   :  { %6029 = vmatpush1.bf16.msra.mxu1 %v7972_v23 }
 0x4dc   :  { %7205 = vmatpush3.bf16.msra.mxu0 %v7976_v27  ;;  %6041 = vmatprep.subr.bf16.mxu1 %v7979_v55 }
 0x4de   :  { %6031 = vmatmul.mubr.bf16.vlgmr.msra.gmra.mrb[12].mxu1 %v8613_v24  ;;  %v7994_v24 = vld [vmem:[#allocation14 + $0x82c] ss:$28 sps:$4 sm:$0xff]  }
 0x4df   :  { %6283 = vmatmul.mubr.bf16.vlgmr.msra.gmra.mrb[36].mxu0 %v8643_v19  ;;  %6042 = vmatpush1.bf16.msra.mxu1 %v7977_v28 }
 0x4e0   :  { %6073 = vmatprep.mubr.bf16.mxu1 %v8645_v21  ;;  %6043 = vmatprep.subr.bf16.mxu1 %v7982_v37  ;;  %v7995_v21 = vld [vmem:[#allocation14 + $0x860] ss:$28 sps:$4 sm:$0xff]  }
 0x4e3   :  { %6044 = vmatpush1.bf16.msra.mxu1 %v7980_v29  ;;  %v8043_v29 = vld [vmem:[#allocation14 + $0xbe0] ss:$28 sps:$4 sm:$0xff]  }
 0x4e4   :  { %6045 = vmatprep.subr.bf16.mxu1 %v7985_v30 }
 0x4e7   :  { %6046 = vmatpush1.bf16.msra.mxu1 %v7983_v31 }
 0x4e8   :  { %6047 = vmatprep.subr.bf16.mxu1 %v7988_v32 }
 0x4eb   :  { %6048 = vmatpush1.bf16.msra.mxu1 %v7986_v33 }
 0x4ec   :  { %6049 = vmatprep.subr.bf16.mxu1 %v7991_v18 }
 0x4ef   :  { %6050 = vmatpush1.bf16.msra.mxu1 %v7989_v38  ;;  %v8046_v38 = vld [vmem:[#allocation14 + $0xc18] ss:$28 sps:$4 sm:$0xff]  }
 0x4f0   :  { %6051 = vmatprep.subr.bf16.mxu1 %v7994_v24  ;;  %v8051_v24 = vld [vmem:[#allocation14 + $0xc54] ss:$28 sps:$4 sm:$0xff]  }
 0x4f3   :  { %6052 = vmatpush1.bf16.msra.mxu1 %v7992_v40  ;;  %v8049_v40 = vld [vmem:[#allocation14 + $0xc50] ss:$28 sps:$4 sm:$0xff]  }
 0x4f4   :  { %6053 = vmatprep.subr.bf16.mxu1 %v7997_v43  ;;  %v8054_v43 = vld [vmem:[#allocation14 + $0xc8c] ss:$28 sps:$4 sm:$0xff]  }
 0x4f7   :  { %6054 = vmatpush1.bf16.msra.mxu1 %v7995_v21 }
 0x4f8   :  { %6055 = vmatprep.subr.bf16.mxu1 %v8000_v45 }
 0x4fb   :  { %6056 = vmatpush1.bf16.msra.mxu1 %v7998_v46  ;;  %v8052_v46 = vld [vmem:[#allocation14 + $0xc88] ss:$28 sps:$4 sm:$0xff]  }
 0x4fc   :  { %6057 = vmatprep.subr.bf16.mxu1 %v8003_v47 }
 0x4ff   :  { %6058 = vmatpush1.bf16.msra.mxu1 %v8001_v48  ;;  %v8057_v48 = vld [vmem:[#allocation14 + $0xcc4] ss:$28 sps:$4 sm:$0xff]  }
 0x500   :  { %6059 = vmatprep.subr.bf16.mxu1 %v8006_v52 }
 0x503   :  { %6060 = vmatpush1.bf16.msra.mxu1 %v8004_v53 }
 0x504   :  { %6061 = vmatprep.subr.bf16.mxu1 %v8009_v54 }
 0x507   :  { %6062 = vmatpush1.bf16.msra.mxu1 %v8007_v57  ;;  %v8055_v57 = vld [vmem:[#allocation14 + $0xcc0] ss:$28 sps:$4 sm:$0xff]  }
 0x508   :  { %6063 = vmatprep.subr.bf16.mxu1 %v8012_v59 }
 0x50b   :  { %6064 = vmatpush1.bf16.msra.mxu1 %v8010_v60  ;;  %v8060_v60 = vld [vmem:[#allocation14 + $0xcfc] ss:$28 sps:$4 sm:$0xff]  }
 0x50c   :  { %6065 = vmatprep.subr.bf16.mxu1 %v8015_v61 }
 0x50f   :  { %6066 = vmatpush1.bf16.msra.mxu1 %v8013_v62  ;;  %v8058_v62 = vld [vmem:[#allocation14 + $0xcf8] ss:$28 sps:$4 sm:$0xff]  }
 0x510   :  { %6067 = vmatprep.subr.bf16.mxu1 %v8018_v63  ;;  %v8063_v63 = vld [vmem:[#allocation14 + $0xd34] ss:$28 sps:$4 sm:$0xff]  }
 0x513   :  { %6068 = vmatpush1.bf16.msra.mxu1 %v8016_v0  ;;  %v8061_v0 = vld [vmem:[#allocation14 + $0xd30] ss:$28 sps:$4 sm:$0xff]  }
 0x514   :  { %6069 = vmatprep.subr.bf16.mxu1 %v8021_v1  ;;  %v8066_v1 = vld [vmem:[#allocation14 + $0xd6c] ss:$28 sps:$4 sm:$0xff]  }
 0x517   :  { %6070 = vmatpush1.bf16.msra.mxu1 %v8019_v2  ;;  %v8064_v2 = vld [vmem:[#allocation14 + $0xd68] ss:$28 sps:$4 sm:$0xff]  }
 0x518   :  { %6071 = vmatprep.subr.bf16.mxu1 %v8024_v11  ;;  %v8069_v11 = vld [vmem:[#allocation14 + $0xda4] ss:$28 sps:$4 sm:$0xff]  }
 0x51b   :  { %6072 = vmatpush1.bf16.msra.mxu1 %v8022_v3 }
 0x51c   :  { %6084 = vmatprep.subr.bf16.mxu1 %v8027_v4 }
 0x51e   :  { %6074 = vmatmul.mubr.bf16.vlgmr.msra.gmra.mrb[12].mxu1 %v8641_v17  ;;  %v8042_v17 = vld [vmem:[#allocation14 + $0xbac] ss:$28 sps:$4 sm:$0xff]  }
 0x51f   :  { %6085 = vmatpush1.bf16.msra.mxu1 %v8025_v6  ;;  %6116 = vmatprep.mubr.bf16.mxu1 %v8647_v41  ;;  %v3275_v41 = vrot.slane %v8672_v35, %v8528_v42  ;;  %v8067_v6 = vld [vmem:[#allocation14 + $0xda0] ss:$28 sps:$4 sm:$0xff]  }
 0x520   :  { %6086 = vmatprep.subr.bf16.mxu1 %v8030_v7 }
 0x523   :  { %6087 = vmatpush1.bf16.msra.mxu1 %v8028_v8 }
 0x524   :  { %6088 = vmatprep.subr.bf16.mxu1 %v8033_v9  ;;  %v8072_v9 = vld [vmem:[#allocation14 + $0xddc] ss:$28 sps:$4 sm:$0xff]  }
 0x527   :  { %6089 = vmatpush1.bf16.msra.mxu1 %v8031_v12 }
 0x528   :  { %6090 = vmatprep.subr.bf16.mxu1 %v8036_v13 }
 0x52b   :  { %6091 = vmatpush1.bf16.msra.mxu1 %v8034_v14  ;;  %v8070_v14 = vld [vmem:[#allocation14 + $0xdd8] ss:$28 sps:$4 sm:$0xff]  }
 0x52c   :  { %6092 = vmatprep.subr.bf16.mxu1 %v8039_v34  ;;  %v3299_v34 = vrot.slane %v8672_v35, %v1096_v50 }
 0x52f   :  { %6093 = vmatpush1.bf16.msra.mxu1 %v8037_v10 }
 0x530   :  { %6094 = vmatprep.subr.bf16.mxu1 %v8042_v17 }
 0x531   :  { %v5774_v25 = vpop.f32.mrb[8].mxu1  ;;  %v5946_v26 = vpop.f32.mrb[20].mxu0 }
 0x532   :  { %v7228_v39 = vadd.f32 %v5774_v25, %v3275_v41  ;;  %v7232_v23 = vadd.f32 %v5946_v26, %v3283_v5  ;;  %v5776_v27 = vpop.f32.mrb[9].mxu1  ;;  %v5948_v55 = vpop.f32.mrb[21].mxu0 }
 0x533   :  { %v7229_v42 = vadd.f32 %v5776_v27, %v3279_v15  ;;  %v7233_v28 = vadd.f32 %v5948_v55, %v3287_v16  ;;  %v5778_v37 = vpop.f32.mrb[10].mxu1  ;;  %v5950_v56 = vpop.f32.mrb[22].mxu0  ;;  %6095 = vmatpush1.bf16.msra.mxu1 %v8040_v20 }
 0x534   :  { %8073 = vtanh.f32 %v7228_v39  ;;  %v7230_v44 = vadd.f32 %v5778_v37, %v3275_v41  ;;  %v5780_v30 = vpop.f32.mrb[11].mxu1  ;;  %v5952_v31 = vpop.f32.mrb[23].mxu0  ;;  %6096 = vmatprep.subr.bf16.mxu1 %v8045_v22  ;;  %v7234_v32 = vadd.f32 %v5950_v56, %v3283_v5 }
 0x535   :  { %8075 = vtanh.f32 %v7232_v23  ;;  %v7231_v33 = vadd.f32 %v5780_v30, %v3279_v15  ;;  %v7235_v18 = vadd.f32 %v5952_v31, %v3287_v16 }
 0x536   :  { %8077 = vtanh.f32 %v7229_v42 }
 0x537   :  { %8079 = vtanh.f32 %v7233_v28  ;;  %6097 = vmatpush1.bf16.msra.mxu1 %v8043_v29 }
 0x538   :  { %8081 = vtanh.f32 %v7230_v44  ;;  %6098 = vmatprep.subr.bf16.mxu1 %v8048_v58 }
 0x539   :  { %8083 = vtanh.f32 %v7234_v32 }
 0x53a   :  { %8085 = vtanh.f32 %v7231_v33 }
 0x53b   :  { %8087 = vtanh.f32 %v7235_v18  ;;  %6099 = vmatpush1.bf16.msra.mxu1 %v8046_v38  ;;  %v3291_v38 = vrot.slane %v8672_v35, %v1088_v49 }
 0x53c   :  { %6100 = vmatprep.subr.bf16.mxu1 %v8051_v24  ;;  %v3295_v24 = vrot.slane %v8672_v35, %v1092_v51 }
 0x53e   :  { %v8074_v21 = vpop.eup %8073 }
 0x53f   :  { %v8076_v45 = vpop.eup %8075  ;;  %6305 = vst [vmem:[#allocation17] sm:$0xff] %v8074_v21  ;;  %6101 = vmatpush1.bf16.msra.mxu1 %v8049_v40 }
 0x540   :  { %v8078_v47 = vpop.eup %8077  ;;  %6307 = vst [vmem:[#allocation17 + $0x10] sm:$0xff] %v8076_v45  ;;  %6102 = vmatprep.subr.bf16.mxu1 %v8054_v43 }
 0x541   :  { %v8080_v52 = vpop.eup %8079  ;;  %6306 = vst [vmem:[#allocation17 + $0x8] sm:$0xff] %v8078_v47 }
 0x542   :  { %v8082_v53 = vpop.eup %8081  ;;  %6308 = vst [vmem:[#allocation17 + $0x18] sm:$0xff] %v8080_v52 }
 0x543   :  { %v8084_v54 = vpop.eup %8083  ;;  %6312 = vst [vmem:[#allocation17 + $0x38] sm:$0xff] %v8082_v53  ;;  %6103 = vmatpush1.bf16.msra.mxu1 %v8052_v46 }
 0x544   :  { %v8086_v59 = vpop.eup %8085  ;;  %6314 = vst [vmem:[#allocation17 + $0x48] sm:$0xff] %v8084_v54  ;;  %6104 = vmatprep.subr.bf16.mxu1 %v8057_v48 }
 0x545   :  { %v8088_v61 = vpop.eup %8087  ;;  %6313 = vst [vmem:[#allocation17 + $0x40] sm:$0xff] %v8086_v59 }
 0x546   :  { %6315 = vst [vmem:[#allocation17 + $0x50] sm:$0xff] %v8088_v61 }
 0x547   :  { %6105 = vmatpush1.bf16.msra.mxu1 %v8055_v57 }
 0x548   :  { %6106 = vmatprep.subr.bf16.mxu1 %v8060_v60 }
 0x54b   :  { %6107 = vmatpush1.bf16.msra.mxu1 %v8058_v62 }
 0x54c   :  { %6108 = vmatprep.subr.bf16.mxu1 %v8063_v63 }
 0x54f   :  { %6109 = vmatpush1.bf16.msra.mxu1 %v8061_v0 }
 0x550   :  { %6110 = vmatprep.subr.bf16.mxu1 %v8066_v1 }
 0x552   :  { %v7140_v3 = vpop.f32.mrb[24].mxu0 }
 0x553   :  { %v7141_v4 = vpop.f32.mrb[25].mxu0  ;;  %6111 = vmatpush1.bf16.msra.mxu1 %v8064_v2 }
 0x554   :  { %v7142_v7 = vadd.f32 %v7141_v4, %v7140_v3  ;;  %v7143_v8 = vpop.f32.mrb[26].mxu0  ;;  %6112 = vmatprep.subr.bf16.mxu1 %v8069_v11 }
 0x555   :  { %v7144_v12 = vpop.f32.mrb[27].mxu0 }
 0x556   :  { %v7145_v13 = vadd.f32 %v7144_v12, %v7143_v8  ;;  %v6162_v41 = vadd.f32 %v7142_v7, %v3299_v34 }
 0x557   :  { %6113 = vmatpush1.bf16.msra.mxu1 %v8067_v6 }
 0x558   :  { %6114 = vmatprep.subr.bf16.mxu1 %v8072_v9  ;;  %v6165_v20 = vadd.f32 %v7145_v13, %v3299_v34 }
 0x55b   :  { %6115 = vmatpush1.bf16.msra.mxu1 %v8070_v14 }
 0x55e   :  { %6117 = vmatmul.mubr.bf16.vlgmr.msra.gmra.mrb[12].mxu1 %v8643_v19 }
 0x572   :  { %v7162_v10 = vpop.f32.mrb[28].mxu0 }
 0x573   :  { %v7163_v17 = vpop.f32.mrb[29].mxu0 }
 0x574   :  { %v7164_v5 = vadd.f32 %v7163_v17, %v7162_v10  ;;  %v7165_v15 = vpop.f32.mrb[30].mxu0 }
 0x575   :  { %v7166_v16 = vpop.f32.mrb[31].mxu0 }
 0x576   :  { %v6203_v22 = vadd.f32 %v7164_v5, %v6162_v41  ;;  %v7167_v25 = vadd.f32 %v7166_v16, %v7165_v15 }
 0x578   :  { %v6206_v26 = vadd.f32 %v7167_v25, %v6165_v20 }
 0x592   :  { %v7184_v39 = vpop.f32.mrb[32].mxu0 }
 0x593   :  { %v7185_v23 = vpop.f32.mrb[33].mxu0 }
 0x594   :  { %v7186_v27 = vadd.f32 %v7185_v23, %v7184_v39  ;;  %v7187_v55 = vpop.f32.mrb[34].mxu0 }
 0x595   :  { %v7188_v42 = vpop.f32.mrb[35].mxu0 }
 0x596   :  { %v6244_v19 = vadd.f32 %v7186_v27, %v6203_v22  ;;  %v7189_v28 = vadd.f32 %v7188_v42, %v7187_v55 }
 0x598   :  { %v6247_v37 = vadd.f32 %v7189_v28, %v6206_v26 }
 0x5b2   :  { %v7206_v56 = vpop.f32.mrb[36].mxu0 }
 0x5b3   :  { %v7207_v50 = vpop.f32.mrb[37].mxu0 }
 0x5b4   :  { %v7208_v29 = vadd.f32 %v7207_v50, %v7206_v56  ;;  %v7209_v44 = vpop.f32.mrb[38].mxu0 }
 0x5b5   :  { %v7210_v30 = vpop.f32.mrb[39].mxu0 }
 0x5b6   :  { %v6285_v31 = vadd.f32 %v7208_v29, %v6244_v19  ;;  %v7211_v58 = vadd.f32 %v7210_v30, %v7209_v44 }
 0x5b8   :  { %8089 = vtanh.f32 %v6285_v31  ;;  %v6288_v32 = vadd.f32 %v7211_v58, %v6247_v37 }
 0x5ba   :  { %8091 = vtanh.f32 %v6288_v32 }
 0x5c2   :  { %v8090_v33 = vpop.eup %8089 }
 0x5c3   :  { %6311 = vst [vmem:[#allocation17 + $0x30] sm:$0xff] %v8090_v33 }
 0x5c4   :  { %v8092_v18 = vpop.eup %8091 }
 0x5c5   :  { %6318 = vst [vmem:[#allocation17 + $0x68] sm:$0xff] %v8092_v18 }
 0x631   :  { %v6118_v40 = vpop.f32.mrb[12].mxu1 }
 0x632   :  { %v7236_v43 = vadd.f32 %v6118_v40, %v3291_v38  ;;  %v6120_v21 = vpop.f32.mrb[13].mxu1 }
 0x633   :  { %v7237_v45 = vadd.f32 %v6120_v21, %v3295_v24  ;;  %v6122_v46 = vpop.f32.mrb[14].mxu1 }
 0x634   :  { %8093 = vtanh.f32 %v7236_v43  ;;  %v7238_v47 = vadd.f32 %v6122_v46, %v3291_v38  ;;  %v6124_v48 = vpop.f32.mrb[15].mxu1 }
 0x635   :  { %8095 = vtanh.f32 %v7237_v45  ;;  %v7239_v52 = vadd.f32 %v6124_v48, %v3295_v24 }
 0x636   :  { %8097 = vtanh.f32 %v7238_v47 }
 0x637   :  { %8099 = vtanh.f32 %v7239_v52 }
 0x63e   :  { %v8094_v53 = vpop.eup %8093 }
 0x63f   :  { %v8096_v49 = vpop.eup %8095  ;;  %6309 = vst [vmem:[#allocation17 + $0x20] sm:$0xff] %v8094_v53 }
 0x640   :  { %v8098_v36 = vpop.eup %8097  ;;  %6310 = vst [vmem:[#allocation17 + $0x28] sm:$0xff] %v8096_v49 }
 0x641   :  { %v8100_v51 = vpop.eup %8099  ;;  %6316 = vst [vmem:[#allocation17 + $0x58] sm:$0xff] %v8098_v36 }
 0x642   :  { %6317 = vst [vmem:[#allocation17 + $0x60] sm:$0xff] %v8100_v51 }
 0x643   :  { %8310 = shalt.err (!%p8307_p6)
}
 0x644   :  { %s8311_s27 = scalar_lea.hbm %s8713_s9, 1792 }
 0x645   :  { %p8312_p7 = scmp.ne.s32.totalorder %s8713_s9, %s8311_s27  ;;  %p8315_p8 = scmp.lt.u32.totalorder %s8311_s27, %s8713_s9 }
 0x647   :  { %p8317_p9 = pnand %p8315_p8, %p8312_p7 }
 0x649   :  { %8320 = shalt.err (!%p8317_p9)
}
 0x64a   :  { %s8352_s14 = smov 896   ;;  %s8353_s15 = smov 56  }
 0x64b   :  { %6330 = dma.vmem_to_hbm [thread:$0]  %s6325_s29, 1792, %s8713_s9, [#allocation4], %s8352_s14, %s8352_s14, %s8353_s15  }
 0x64c   :  { %8331 = dma.done.wait [#allocation4], 1792  }
 0x64d   :  { %8332 = vsyncadd [#allocation4], 4294965504 }
 0x64e   :  { %6334 = vsyncpa [#allocation3], 1 }
 0x64f   :  { %6335 = vsyncpa [#allocation6], 1 }
 0x650   :  { %6336 = vsyncpa [#allocation9], 1 }
 0x651   :  { %6337 = vsyncpa [#allocation12], 1 }
 0x652   :  { %6338 = vsyncpa [#allocation15], 1 }
 0x653   :  { %6339 = vsyncpa [#allocation4], 1 }

</bundles_post_ra>
